<compile_context>
chip_gen: v7x
topology: tpu7x:2x2x1
jax: 0.10.0
libtpu: 0.0.40
codegen_flags: <defaults>
</compile_context>

<pallas_src>
import functools
import math

import jax
import jax.numpy as jnp
from jax.experimental import pallas as pl
from jax.experimental.pallas import tpu as pltpu


# ---------------------------------------------------------------------------
# Fused MAB kernel: q/k/v projection -> temporal attention -> output FC,
# for one (batch, vertex-tile) block. All slabs are [rows, tn] (vertices on lanes).
# ---------------------------------------------------------------------------
def _mab_kernel(qin_ref, kin_ref, wq_ref, bq_ref, wkv_ref, bkv_ref,
                wo_ref, bo_ref, g_ref, gt_ref, o_ref, kv_buf, *, nh, hd):
    Sq = qin_ref.shape[0]          # query time steps
    Sk = kin_ref.shape[0]          # key/value time steps
    D = nh * hd

    wq = wq_ref[...]               # [D, Cin]   (1/sqrt(d) already folded in)
    bq = bq_ref[...]               # [D, 1]
    wkv = wkv_ref[...]             # [2D, Cin]  (wk | wv fused)
    bkv = bkv_ref[...]             # [2D, 1]
    wo = wo_ref[...]               # [Cout, D]
    bo = bo_ref[...]               # [Cout, 1]
    g = g_ref[...]                 # [nh, D]    head group-sum matrix
    gt = gt_ref[...]               # [D, nh]    head group-broadcast matrix

    # --- fused K/V projection: relu(Wkv @ x + b), kept resident in VMEM scratch ---
    for sk in range(Sk):
        kv = jnp.dot(wkv, kin_ref[sk], preferred_element_type=jnp.float32)
        kv_buf[sk] = jnp.maximum(kv + bkv, 0.0)                    # [2D, tn]

    # --- per-query-step attention + output FC ---
    for sq in range(Sq):
        q = jnp.dot(wq, qin_ref[sq], preferred_element_type=jnp.float32)
        q = jnp.maximum(q + bq, 0.0)                               # [D, tn]

        # scores[h, n] per key step: lane-dense VPU multiply + tiny MXU group-sum.
        scores = []
        for sk in range(Sk):
            prod = q * kv_buf[sk, :D, :]                           # [D, tn]
            scores.append(jnp.dot(g, prod, preferred_element_type=jnp.float32))  # [nh, tn]

        # numerically-stable softmax over the (unrolled) key-time axis
        m = scores[0]
        for sk in range(1, Sk):
            m = jnp.maximum(m, scores[sk])
        ps = [jnp.exp(s - m) for s in scores]
        l = ps[0]
        for sk in range(1, Sk):
            l = l + ps[sk]
        inv = pl.reciprocal(l, approx=True)                        # EUP slot, ~free

        # PV: broadcast per-head weights back to head_dim rows via constant matmul.
        acc = None
        for sk in range(Sk):
            w = ps[sk] * inv                                       # [nh, tn]
            w_full = jnp.dot(gt, w, preferred_element_type=jnp.float32)  # [D, tn]
            term = w_full * kv_buf[sk, D:, :]
            acc = term if acc is None else acc + term

        # merged-head output FC (+ folded BN + ReLU)
        out = jnp.dot(wo, acc, preferred_element_type=jnp.float32)
        o_ref[sq] = jnp.maximum(out + bo, 0.0)                     # [Cout, tn]


def _mab_fused(q_cm, k_cm, p, *, nh, hd, tn):
    """q_cm: [Bq, Sq, Cin, Np] channel-major (Bq==1 for batch-broadcast inducing pts);
    k_cm: [B, Sk, Cin, Np]. Returns [B, Sq, Cout, Np] channel-major."""
    Bq, Sq, Cin, Np = q_cm.shape
    B, Sk = k_cm.shape[0], k_cm.shape[1]
    D = nh * hd
    Cout = p["wo_t"].shape[0]
    nt = Np // tn
    grid = (B, nt)

    # reuse block 0 across the batch when the Q input is batch-broadcast (mab0's I)
    if Bq == B:
        q_map = lambda b, j: (b, 0, 0, j)
    else:
        q_map = lambda b, j: (0, 0, 0, j)

    proj_f = 2 * Cin * D * Sq + 2 * Cin * 2 * D * Sk
    attn_f = Sq * Sk * (4 * D + 4 * nh * D)
    fc_f = 2 * D * Cout * Sq
    cost = pl.CostEstimate(
        flops=int(B * Np * (proj_f + attn_f + fc_f)),
        transcendentals=int(B * Np * Sq * Sk * nh),
        bytes_accessed=int(4 * (Bq * Sq * Cin * Np + B * Sk * Cin * Np
                                + B * Sq * Cout * Np)),
    )

    return pl.pallas_call(
        functools.partial(_mab_kernel, nh=nh, hd=hd),
        out_shape=jax.ShapeDtypeStruct((B, Sq, Cout, Np), jnp.float32),
        grid_spec=pltpu.PrefetchScalarGridSpec(
            num_scalar_prefetch=0,
            grid=grid,
            in_specs=[
                pl.BlockSpec((None, Sq, Cin, tn), q_map),
                pl.BlockSpec((None, Sk, Cin, tn), lambda b, j: (b, 0, 0, j)),
                pl.BlockSpec((D, Cin), lambda b, j: (0, 0)),        # grid-invariant weights
                pl.BlockSpec((D, 1), lambda b, j: (0, 0)),
                pl.BlockSpec((2 * D, Cin), lambda b, j: (0, 0)),
                pl.BlockSpec((2 * D, 1), lambda b, j: (0, 0)),
                pl.BlockSpec((Cout, D), lambda b, j: (0, 0)),
                pl.BlockSpec((Cout, 1), lambda b, j: (0, 0)),
                pl.BlockSpec((nh, D), lambda b, j: (0, 0)),
                pl.BlockSpec((D, nh), lambda b, j: (0, 0)),
            ],
            out_specs=pl.BlockSpec((None, Sq, Cout, tn), lambda b, j: (b, 0, 0, j)),
            scratch_shapes=[pltpu.VMEM((Sk, 2 * D, tn), jnp.float32)],
        ),
        compiler_params=pltpu.CompilerParams(
            dimension_semantics=("parallel", "parallel"),
        ),
        cost_estimate=cost,
    )(q_cm, k_cm, p["wq_t"], p["bq_t"], p["wkv_t"], p["bkv_t"],
      p["wo_t"], p["bo_t"], p["g"], p["gt"])


# ---------------------------------------------------------------------------
# temporalAttention forward (mask=None path).
# ---------------------------------------------------------------------------
def temporal_attention_forward(X, STE, params, *, K, d, mask=None):
    """X, STE: [B, P, N, D] f32. Returns [B, P, N, D] f32."""
    if mask is not None:
        # TODO(synk): masked attention branch (mask @ ones + masked_fill) not implemented.
        raise NotImplementedError("temporalAttention mask path not implemented")
    nh, hd = d, K
    B, P, N, _ = X.shape

    # channel-major layout: vertices on lanes  ->  [B, S, C, N]
    Xc = jnp.concatenate(
        [jnp.transpose(X, (0, 1, 3, 2)), jnp.transpose(STE, (0, 1, 3, 2))], axis=2)
    I_cm = jnp.transpose(params["I"], (0, 1, 3, 2))                  # [1, S, 2D, N]

    # vertex tiling: full-lane (128) tiles when possible, pad N otherwise
    if N > 128:
        tn = 128
        Np = ((N + 127) // 128) * 128
    else:
        tn = N
        Np = N
    if Np != N:
        pad = [(0, 0), (0, 0), (0, 0), (0, Np - N)]
        Xc = jnp.pad(Xc, pad)
        I_cm = jnp.pad(I_cm, pad)

    H = _mab_fused(I_cm, Xc, params["mab0"], nh=nh, hd=hd, tn=tn)    # [B, S, 2D, Np]
    out = _mab_fused(Xc, H, params["mab1"], nh=nh, hd=hd, tn=tn)     # [B, P, D, Np]
    out = jnp.transpose(out, (0, 1, 3, 2))
    return out[:, :, :N, :]


# ---------------------------------------------------------------------------
# Parameter init mirroring the PyTorch module (xavier conv weights, zero bias,
# eval-mode BatchNorm2d with default running stats folded into the weights).
# Kernel-ready tensors: transposed, k|v fused, 1/sqrt(d) folded into wq/bq.
# ---------------------------------------------------------------------------
def _folded_fc(key, cin, cout, eps=1e-5):
    limit = math.sqrt(6.0 / (cin + cout))
    w = jax.random.uniform(key, (cin, cout), jnp.float32, -limit, limit)
    b = jnp.zeros((cout,), jnp.float32)
    s = 1.0 / jnp.sqrt(jnp.ones((cout,), jnp.float32) + eps)   # gamma=1,beta=0,mean=0,var=1
    return w * s[None, :], b * s


def init_params(key, *, K, d, num_vertices, set_dim):
    D = K * d
    nh, hd = d, K
    ks = jax.random.split(key, 3)

    fan_in = set_dim * num_vertices * 2 * D
    fan_out = 1 * num_vertices * 2 * D
    lim = math.sqrt(6.0 / (fan_in + fan_out))
    I = jax.random.uniform(ks[0], (1, set_dim, num_vertices, 2 * D), jnp.float32, -lim, lim)

    scale = 1.0 / math.sqrt(d)          # reference: attention /= self.d ** 0.5
    g = (jnp.arange(D)[None, :] // hd == jnp.arange(nh)[:, None]).astype(jnp.float32)

    def mab_params(kmab, in_dim, out_dim):
        kq, kk, kv, ko = jax.random.split(kmab, 4)
        wq, bq = _folded_fc(kq, in_dim, D)
        wk, bk = _folded_fc(kk, in_dim, D)
        wv, bv = _folded_fc(kv, in_dim, D)
        wo, bo = _folded_fc(ko, D, out_dim)
        return {
            "wq_t": jnp.transpose(wq * scale),
            "bq_t": (bq * scale).reshape(D, 1),
            "wkv_t": jnp.transpose(jnp.concatenate([wk, wv], axis=1)),
            "bkv_t": jnp.concatenate([bk, bv]).reshape(2 * D, 1),
            "wo_t": jnp.transpose(wo),
            "bo_t": bo.reshape(out_dim, 1),
            "g": g,
            "gt": jnp.transpose(g),
        }

    return {
        "I": I,
        "mab0": mab_params(ks[1], 2 * D, 2 * D),
        "mab1": mab_params(ks[2], 2 * D, D),
    }


if __name__ == "__main__":
    # small shapes consistent with the module (full 128-lane vertex tile)
    B, P, N = 2, 8, 128         # batch, num_step, num_vertices
    K, d, set_dim = 4, 8, 4     # attention config; D = K * d = 32
    D = K * d

    key = jax.random.PRNGKey(0)
    kx, kste, kp = jax.random.split(key, 3)
    X = jax.random.normal(kx, (B, P, N, D), jnp.float32)
    STE = jax.random.normal(kste, (B, P, N, D), jnp.float32)
    params = init_params(kp, K=K, d=d, num_vertices=N, set_dim=set_dim)

    out = temporal_attention_forward(X, STE, params, K=K, d=d, mask=None)
    jax.block_until_ready(out)
    assert out.shape == (B, P, N, D), out.shape
    print("KERNEL_OK")
</pallas_src>

<mosaic_0001>
module attributes {stable_mosaic.version = 11 : i64} {
  func.func @_mab_kernel(%arg0: i32, %arg1: i32, %arg2: memref<1x4x64x128xf32, #tpu.memory_space<vmem>>, %arg3: memref<1x8x64x128xf32, #tpu.memory_space<vmem>>, %arg4: memref<32x64xf32, #tpu.memory_space<vmem>>, %arg5: memref<32x1xf32, #tpu.memory_space<vmem>>, %arg6: memref<64x64xf32, #tpu.memory_space<vmem>>, %arg7: memref<64x1xf32, #tpu.memory_space<vmem>>, %arg8: memref<64x32xf32, #tpu.memory_space<vmem>>, %arg9: memref<64x1xf32, #tpu.memory_space<vmem>>, %arg10: memref<8x32xf32, #tpu.memory_space<vmem>>, %arg11: memref<32x8xf32, #tpu.memory_space<vmem>>, %arg12: memref<1x4x64x128xf32, #tpu.memory_space<vmem>>, %arg13: memref<8x64x128xf32, #tpu.memory_space<vmem>>) attributes {dimension_semantics = [#tpu.dimension_semantics<parallel>, #tpu.dimension_semantics<parallel>], iteration_bounds = array<i64: 2, 1>, scalar_prefetch = 0 : i64, scratch_operands = 1 : i64, tpu.core_type = #tpu.core_type<tc>, window_params = [{transform_indices = @transform_0, window_bounds = array<i64: 1, 4, 64, 128>}, {transform_indices = @transform_1, window_bounds = array<i64: 1, 8, 64, 128>}, {pipeline_mode = #tpu.pipeline_mode<synchronous>, transform_indices = @transform_2, window_bounds = array<i64: 32, 64>}, {pipeline_mode = #tpu.pipeline_mode<synchronous>, transform_indices = @transform_3, window_bounds = array<i64: 32, 1>}, {pipeline_mode = #tpu.pipeline_mode<synchronous>, transform_indices = @transform_4, window_bounds = array<i64: 64, 64>}, {pipeline_mode = #tpu.pipeline_mode<synchronous>, transform_indices = @transform_5, window_bounds = array<i64: 64, 1>}, {pipeline_mode = #tpu.pipeline_mode<synchronous>, transform_indices = @transform_6, window_bounds = array<i64: 64, 32>}, {pipeline_mode = #tpu.pipeline_mode<synchronous>, transform_indices = @transform_7, window_bounds = array<i64: 64, 1>}, {pipeline_mode = #tpu.pipeline_mode<synchronous>, transform_indices = @transform_8, window_bounds = array<i64: 8, 32>}, {pipeline_mode = #tpu.pipeline_mode<synchronous>, transform_indices = @transform_9, window_bounds = array<i64: 32, 8>}, {transform_indices = @transform_10, window_bounds = array<i64: 1, 4, 64, 128>}]} {
    %c0 = arith.constant 0 : index
    %c0_0 = arith.constant 0 : index
    %0 = vector.load %arg4[%c0, %c0_0] : memref<32x64xf32, #tpu.memory_space<vmem>>, vector<32x64xf32>
    %c0_1 = arith.constant 0 : index
    %c0_2 = arith.constant 0 : index
    %1 = vector.load %arg5[%c0_1, %c0_2] : memref<32x1xf32, #tpu.memory_space<vmem>>, vector<32x1xf32>
    %c0_3 = arith.constant 0 : index
    %c0_4 = arith.constant 0 : index
    %2 = vector.load %arg6[%c0_3, %c0_4] : memref<64x64xf32, #tpu.memory_space<vmem>>, vector<64x64xf32>
    %c0_5 = arith.constant 0 : index
    %c0_6 = arith.constant 0 : index
    %3 = vector.load %arg7[%c0_5, %c0_6] : memref<64x1xf32, #tpu.memory_space<vmem>>, vector<64x1xf32>
    %c0_7 = arith.constant 0 : index
    %c0_8 = arith.constant 0 : index
    %4 = vector.load %arg8[%c0_7, %c0_8] : memref<64x32xf32, #tpu.memory_space<vmem>>, vector<64x32xf32>
    %c0_9 = arith.constant 0 : index
    %c0_10 = arith.constant 0 : index
    %5 = vector.load %arg9[%c0_9, %c0_10] : memref<64x1xf32, #tpu.memory_space<vmem>>, vector<64x1xf32>
    %c0_11 = arith.constant 0 : index
    %c0_12 = arith.constant 0 : index
    %6 = vector.load %arg10[%c0_11, %c0_12] : memref<8x32xf32, #tpu.memory_space<vmem>>, vector<8x32xf32>
    %c0_13 = arith.constant 0 : index
    %c0_14 = arith.constant 0 : index
    %7 = vector.load %arg11[%c0_13, %c0_14] : memref<32x8xf32, #tpu.memory_space<vmem>>, vector<32x8xf32>
    %c0_15 = arith.constant 0 : index
    %c0_16 = arith.constant 0 : index
    %c0_17 = arith.constant 0 : index
    %c0_18 = arith.constant 0 : index
    %8 = vector.load %arg3[%c0_15, %c0_16, %c0_17, %c0_18] : memref<1x8x64x128xf32, #tpu.memory_space<vmem>>, vector<1x1x64x128xf32>
    %9 = vector.shape_cast %8 : vector<1x1x64x128xf32> to vector<64x128xf32>
    %cst = arith.constant dense<0.000000e+00> : vector<64x128xf32>
    %10 = tpu.matmul %2, %9, %cst {dimension_numbers = #tpu.dot_dimension_numbers<[1], [0], [0], [1], [0, 0, 1, 1], [], []>} : vector<64x64xf32>, vector<64x128xf32>, vector<64x128xf32> -> vector<64x128xf32>
    %11 = vector.broadcast %3 : vector<64x1xf32> to vector<64x128xf32>
    %12 = arith.addf %10, %11 : vector<64x128xf32>
    %cst_19 = arith.constant 0.000000e+00 : f32
    %13 = vector.broadcast %cst_19 : f32 to vector<64x128xf32>
    %14 = arith.maximumf %12, %13 : vector<64x128xf32>
    %c0_20 = arith.constant 0 : index
    %c0_21 = arith.constant 0 : index
    %c0_22 = arith.constant 0 : index
    %15 = vector.load %arg13[%c0_20, %c0_21, %c0_22] : memref<8x64x128xf32, #tpu.memory_space<vmem>>, vector<1x64x128xf32>
    %16 = vector.shape_cast %15 : vector<1x64x128xf32> to vector<64x128xf32>
    %17 = vector.shape_cast %14 : vector<64x128xf32> to vector<1x64x128xf32>
    tpu.vector_store %arg13[%c0_20, %c0_21, %c0_22], %17 {strides = array<i32>} : memref<8x64x128xf32, #tpu.memory_space<vmem>>, vector<1x64x128xf32>,
    %c0_23 = arith.constant 0 : index
    %c1 = arith.constant 1 : index
    %c0_24 = arith.constant 0 : index
    %c0_25 = arith.constant 0 : index
    %18 = vector.load %arg3[%c0_23, %c1, %c0_24, %c0_25] : memref<1x8x64x128xf32, #tpu.memory_space<vmem>>, vector<1x1x64x128xf32>
    %19 = vector.shape_cast %18 : vector<1x1x64x128xf32> to vector<64x128xf32>
    %cst_26 = arith.constant dense<0.000000e+00> : vector<64x128xf32>
    %20 = tpu.matmul %2, %19, %cst_26 {dimension_numbers = #tpu.dot_dimension_numbers<[1], [0], [0], [1], [0, 0, 1, 1], [], []>} : vector<64x64xf32>, vector<64x128xf32>, vector<64x128xf32> -> vector<64x128xf32>
    %21 = vector.broadcast %3 : vector<64x1xf32> to vector<64x128xf32>
    %22 = arith.addf %20, %21 : vector<64x128xf32>
    %cst_27 = arith.constant 0.000000e+00 : f32
    %23 = vector.broadcast %cst_27 : f32 to vector<64x128xf32>
    %24 = arith.maximumf %22, %23 : vector<64x128xf32>
    %c1_28 = arith.constant 1 : index
    %c0_29 = arith.constant 0 : index
    %c0_30 = arith.constant 0 : index
    %25 = vector.load %arg13[%c1_28, %c0_29, %c0_30] : memref<8x64x128xf32, #tpu.memory_space<vmem>>, vector<1x64x128xf32>
    %26 = vector.shape_cast %25 : vector<1x64x128xf32> to vector<64x128xf32>
    %27 = vector.shape_cast %24 : vector<64x128xf32> to vector<1x64x128xf32>
    tpu.vector_store %arg13[%c1_28, %c0_29, %c0_30], %27 {strides = array<i32>} : memref<8x64x128xf32, #tpu.memory_space<vmem>>, vector<1x64x128xf32>,
    %c0_31 = arith.constant 0 : index
    %c2 = arith.constant 2 : index
    %c0_32 = arith.constant 0 : index
    %c0_33 = arith.constant 0 : index
    %28 = vector.load %arg3[%c0_31, %c2, %c0_32, %c0_33] : memref<1x8x64x128xf32, #tpu.memory_space<vmem>>, vector<1x1x64x128xf32>
    %29 = vector.shape_cast %28 : vector<1x1x64x128xf32> to vector<64x128xf32>
    %cst_34 = arith.constant dense<0.000000e+00> : vector<64x128xf32>
    %30 = tpu.matmul %2, %29, %cst_34 {dimension_numbers = #tpu.dot_dimension_numbers<[1], [0], [0], [1], [0, 0, 1, 1], [], []>} : vector<64x64xf32>, vector<64x128xf32>, vector<64x128xf32> -> vector<64x128xf32>
    %31 = vector.broadcast %3 : vector<64x1xf32> to vector<64x128xf32>
    %32 = arith.addf %30, %31 : vector<64x128xf32>
    %cst_35 = arith.constant 0.000000e+00 : f32
    %33 = vector.broadcast %cst_35 : f32 to vector<64x128xf32>
    %34 = arith.maximumf %32, %33 : vector<64x128xf32>
    %c2_36 = arith.constant 2 : index
    %c0_37 = arith.constant 0 : index
    %c0_38 = arith.constant 0 : index
    %35 = vector.load %arg13[%c2_36, %c0_37, %c0_38] : memref<8x64x128xf32, #tpu.memory_space<vmem>>, vector<1x64x128xf32>
    %36 = vector.shape_cast %35 : vector<1x64x128xf32> to vector<64x128xf32>
    %37 = vector.shape_cast %34 : vector<64x128xf32> to vector<1x64x128xf32>
    tpu.vector_store %arg13[%c2_36, %c0_37, %c0_38], %37 {strides = array<i32>} : memref<8x64x128xf32, #tpu.memory_space<vmem>>, vector<1x64x128xf32>,
    %c0_39 = arith.constant 0 : index
    %c3 = arith.constant 3 : index
    %c0_40 = arith.constant 0 : index
    %c0_41 = arith.constant 0 : index
    %38 = vector.load %arg3[%c0_39, %c3, %c0_40, %c0_41] : memref<1x8x64x128xf32, #tpu.memory_space<vmem>>, vector<1x1x64x128xf32>
    %39 = vector.shape_cast %38 : vector<1x1x64x128xf32> to vector<64x128xf32>
    %cst_42 = arith.constant dense<0.000000e+00> : vector<64x128xf32>
    %40 = tpu.matmul %2, %39, %cst_42 {dimension_numbers = #tpu.dot_dimension_numbers<[1], [0], [0], [1], [0, 0, 1, 1], [], []>} : vector<64x64xf32>, vector<64x128xf32>, vector<64x128xf32> -> vector<64x128xf32>
    %41 = vector.broadcast %3 : vector<64x1xf32> to vector<64x128xf32>
    %42 = arith.addf %40, %41 : vector<64x128xf32>
    %cst_43 = arith.constant 0.000000e+00 : f32
    %43 = vector.broadcast %cst_43 : f32 to vector<64x128xf32>
    %44 = arith.maximumf %42, %43 : vector<64x128xf32>
    %c3_44 = arith.constant 3 : index
    %c0_45 = arith.constant 0 : index
    %c0_46 = arith.constant 0 : index
    %45 = vector.load %arg13[%c3_44, %c0_45, %c0_46] : memref<8x64x128xf32, #tpu.memory_space<vmem>>, vector<1x64x128xf32>
    %46 = vector.shape_cast %45 : vector<1x64x128xf32> to vector<64x128xf32>
    %47 = vector.shape_cast %44 : vector<64x128xf32> to vector<1x64x128xf32>
    tpu.vector_store %arg13[%c3_44, %c0_45, %c0_46], %47 {strides = array<i32>} : memref<8x64x128xf32, #tpu.memory_space<vmem>>, vector<1x64x128xf32>,
    %c0_47 = arith.constant 0 : index
    %c4 = arith.constant 4 : index
    %c0_48 = arith.constant 0 : index
    %c0_49 = arith.constant 0 : index
    %48 = vector.load %arg3[%c0_47, %c4, %c0_48, %c0_49] : memref<1x8x64x128xf32, #tpu.memory_space<vmem>>, vector<1x1x64x128xf32>
    %49 = vector.shape_cast %48 : vector<1x1x64x128xf32> to vector<64x128xf32>
    %cst_50 = arith.constant dense<0.000000e+00> : vector<64x128xf32>
    %50 = tpu.matmul %2, %49, %cst_50 {dimension_numbers = #tpu.dot_dimension_numbers<[1], [0], [0], [1], [0, 0, 1, 1], [], []>} : vector<64x64xf32>, vector<64x128xf32>, vector<64x128xf32> -> vector<64x128xf32>
    %51 = vector.broadcast %3 : vector<64x1xf32> to vector<64x128xf32>
    %52 = arith.addf %50, %51 : vector<64x128xf32>
    %cst_51 = arith.constant 0.000000e+00 : f32
    %53 = vector.broadcast %cst_51 : f32 to vector<64x128xf32>
    %54 = arith.maximumf %52, %53 : vector<64x128xf32>
    %c4_52 = arith.constant 4 : index
    %c0_53 = arith.constant 0 : index
    %c0_54 = arith.constant 0 : index
    %55 = vector.load %arg13[%c4_52, %c0_53, %c0_54] : memref<8x64x128xf32, #tpu.memory_space<vmem>>, vector<1x64x128xf32>
    %56 = vector.shape_cast %55 : vector<1x64x128xf32> to vector<64x128xf32>
    %57 = vector.shape_cast %54 : vector<64x128xf32> to vector<1x64x128xf32>
    tpu.vector_store %arg13[%c4_52, %c0_53, %c0_54], %57 {strides = array<i32>} : memref<8x64x128xf32, #tpu.memory_space<vmem>>, vector<1x64x128xf32>,
    %c0_55 = arith.constant 0 : index
    %c5 = arith.constant 5 : index
    %c0_56 = arith.constant 0 : index
    %c0_57 = arith.constant 0 : index
    %58 = vector.load %arg3[%c0_55, %c5, %c0_56, %c0_57] : memref<1x8x64x128xf32, #tpu.memory_space<vmem>>, vector<1x1x64x128xf32>
    %59 = vector.shape_cast %58 : vector<1x1x64x128xf32> to vector<64x128xf32>
    %cst_58 = arith.constant dense<0.000000e+00> : vector<64x128xf32>
    %60 = tpu.matmul %2, %59, %cst_58 {dimension_numbers = #tpu.dot_dimension_numbers<[1], [0], [0], [1], [0, 0, 1, 1], [], []>} : vector<64x64xf32>, vector<64x128xf32>, vector<64x128xf32> -> vector<64x128xf32>
    %61 = vector.broadcast %3 : vector<64x1xf32> to vector<64x128xf32>
    %62 = arith.addf %60, %61 : vector<64x128xf32>
    %cst_59 = arith.constant 0.000000e+00 : f32
    %63 = vector.broadcast %cst_59 : f32 to vector<64x128xf32>
    %64 = arith.maximumf %62, %63 : vector<64x128xf32>
    %c5_60 = arith.constant 5 : index
    %c0_61 = arith.constant 0 : index
    %c0_62 = arith.constant 0 : index
    %65 = vector.load %arg13[%c5_60, %c0_61, %c0_62] : memref<8x64x128xf32, #tpu.memory_space<vmem>>, vector<1x64x128xf32>
    %66 = vector.shape_cast %65 : vector<1x64x128xf32> to vector<64x128xf32>
    %67 = vector.shape_cast %64 : vector<64x128xf32> to vector<1x64x128xf32>
    tpu.vector_store %arg13[%c5_60, %c0_61, %c0_62], %67 {strides = array<i32>} : memref<8x64x128xf32, #tpu.memory_space<vmem>>, vector<1x64x128xf32>,
    %c0_63 = arith.constant 0 : index
    %c6 = arith.constant 6 : index
    %c0_64 = arith.constant 0 : index
    %c0_65 = arith.constant 0 : index
    %68 = vector.load %arg3[%c0_63, %c6, %c0_64, %c0_65] : memref<1x8x64x128xf32, #tpu.memory_space<vmem>>, vector<1x1x64x128xf32>
    %69 = vector.shape_cast %68 : vector<1x1x64x128xf32> to vector<64x128xf32>
    %cst_66 = arith.constant dense<0.000000e+00> : vector<64x128xf32>
    %70 = tpu.matmul %2, %69, %cst_66 {dimension_numbers = #tpu.dot_dimension_numbers<[1], [0], [0], [1], [0, 0, 1, 1], [], []>} : vector<64x64xf32>, vector<64x128xf32>, vector<64x128xf32> -> vector<64x128xf32>
    %71 = vector.broadcast %3 : vector<64x1xf32> to vector<64x128xf32>
    %72 = arith.addf %70, %71 : vector<64x128xf32>
    %cst_67 = arith.constant 0.000000e+00 : f32
    %73 = vector.broadcast %cst_67 : f32 to vector<64x128xf32>
    %74 = arith.maximumf %72, %73 : vector<64x128xf32>
    %c6_68 = arith.constant 6 : index
    %c0_69 = arith.constant 0 : index
    %c0_70 = arith.constant 0 : index
    %75 = vector.load %arg13[%c6_68, %c0_69, %c0_70] : memref<8x64x128xf32, #tpu.memory_space<vmem>>, vector<1x64x128xf32>
    %76 = vector.shape_cast %75 : vector<1x64x128xf32> to vector<64x128xf32>
    %77 = vector.shape_cast %74 : vector<64x128xf32> to vector<1x64x128xf32>
    tpu.vector_store %arg13[%c6_68, %c0_69, %c0_70], %77 {strides = array<i32>} : memref<8x64x128xf32, #tpu.memory_space<vmem>>, vector<1x64x128xf32>,
    %c0_71 = arith.constant 0 : index
    %c7 = arith.constant 7 : index
    %c0_72 = arith.constant 0 : index
    %c0_73 = arith.constant 0 : index
    %78 = vector.load %arg3[%c0_71, %c7, %c0_72, %c0_73] : memref<1x8x64x128xf32, #tpu.memory_space<vmem>>, vector<1x1x64x128xf32>
    %79 = vector.shape_cast %78 : vector<1x1x64x128xf32> to vector<64x128xf32>
    %cst_74 = arith.constant dense<0.000000e+00> : vector<64x128xf32>
    %80 = tpu.matmul %2, %79, %cst_74 {dimension_numbers = #tpu.dot_dimension_numbers<[1], [0], [0], [1], [0, 0, 1, 1], [], []>} : vector<64x64xf32>, vector<64x128xf32>, vector<64x128xf32> -> vector<64x128xf32>
    %81 = vector.broadcast %3 : vector<64x1xf32> to vector<64x128xf32>
    %82 = arith.addf %80, %81 : vector<64x128xf32>
    %cst_75 = arith.constant 0.000000e+00 : f32
    %83 = vector.broadcast %cst_75 : f32 to vector<64x128xf32>
    %84 = arith.maximumf %82, %83 : vector<64x128xf32>
    %c7_76 = arith.constant 7 : index
    %c0_77 = arith.constant 0 : index
    %c0_78 = arith.constant 0 : index
    %85 = vector.load %arg13[%c7_76, %c0_77, %c0_78] : memref<8x64x128xf32, #tpu.memory_space<vmem>>, vector<1x64x128xf32>
    %86 = vector.shape_cast %85 : vector<1x64x128xf32> to vector<64x128xf32>
    %87 = vector.shape_cast %84 : vector<64x128xf32> to vector<1x64x128xf32>
    tpu.vector_store %arg13[%c7_76, %c0_77, %c0_78], %87 {strides = array<i32>} : memref<8x64x128xf32, #tpu.memory_space<vmem>>, vector<1x64x128xf32>,
    %c0_79 = arith.constant 0 : index
    %c0_80 = arith.constant 0 : index
    %c0_81 = arith.constant 0 : index
    %c0_82 = arith.constant 0 : index
    %88 = vector.load %arg2[%c0_79, %c0_80, %c0_81, %c0_82] : memref<1x4x64x128xf32, #tpu.memory_space<vmem>>, vector<1x1x64x128xf32>
    %89 = vector.shape_cast %88 : vector<1x1x64x128xf32> to vector<64x128xf32>
    %cst_83 = arith.constant dense<0.000000e+00> : vector<32x128xf32>
    %90 = tpu.matmul %0, %89, %cst_83 {dimension_numbers = #tpu.dot_dimension_numbers<[1], [0], [0], [1], [0, 0, 1, 1], [], []>} : vector<32x64xf32>, vector<64x128xf32>, vector<32x128xf32> -> vector<32x128xf32>
    %91 = vector.broadcast %1 : vector<32x1xf32> to vector<32x128xf32>
    %92 = arith.addf %90, %91 : vector<32x128xf32>
    %cst_84 = arith.constant 0.000000e+00 : f32
    %93 = vector.broadcast %cst_84 : f32 to vector<32x128xf32>
    %94 = arith.maximumf %92, %93 : vector<32x128xf32>
    %c0_85 = arith.constant 0 : index
    %c0_86 = arith.constant 0 : index
    %c0_87 = arith.constant 0 : index
    %95 = vector.load %arg13[%c0_85, %c0_86, %c0_87] : memref<8x64x128xf32, #tpu.memory_space<vmem>>, vector<1x32x128xf32>
    %96 = vector.shape_cast %95 : vector<1x32x128xf32> to vector<32x128xf32>
    %97 = arith.mulf %94, %96 : vector<32x128xf32>
    %cst_88 = arith.constant dense<0.000000e+00> : vector<8x128xf32>
    %98 = tpu.matmul %6, %97, %cst_88 {dimension_numbers = #tpu.dot_dimension_numbers<[1], [0], [0], [1], [0, 0, 1, 1], [], []>} : vector<8x32xf32>, vector<32x128xf32>, vector<8x128xf32> -> vector<8x128xf32>
    %c1_89 = arith.constant 1 : index
    %c0_90 = arith.constant 0 : index
    %c0_91 = arith.constant 0 : index
    %99 = vector.load %arg13[%c1_89, %c0_90, %c0_91] : memref<8x64x128xf32, #tpu.memory_space<vmem>>, vector<1x32x128xf32>
    %100 = vector.shape_cast %99 : vector<1x32x128xf32> to vector<32x128xf32>
    %101 = arith.mulf %94, %100 : vector<32x128xf32>
    %cst_92 = arith.constant dense<0.000000e+00> : vector<8x128xf32>
    %102 = tpu.matmul %6, %101, %cst_92 {dimension_numbers = #tpu.dot_dimension_numbers<[1], [0], [0], [1], [0, 0, 1, 1], [], []>} : vector<8x32xf32>, vector<32x128xf32>, vector<8x128xf32> -> vector<8x128xf32>
    %c2_93 = arith.constant 2 : index
    %c0_94 = arith.constant 0 : index
    %c0_95 = arith.constant 0 : index
    %103 = vector.load %arg13[%c2_93, %c0_94, %c0_95] : memref<8x64x128xf32, #tpu.memory_space<vmem>>, vector<1x32x128xf32>
    %104 = vector.shape_cast %103 : vector<1x32x128xf32> to vector<32x128xf32>
    %105 = arith.mulf %94, %104 : vector<32x128xf32>
    %cst_96 = arith.constant dense<0.000000e+00> : vector<8x128xf32>
    %106 = tpu.matmul %6, %105, %cst_96 {dimension_numbers = #tpu.dot_dimension_numbers<[1], [0], [0], [1], [0, 0, 1, 1], [], []>} : vector<8x32xf32>, vector<32x128xf32>, vector<8x128xf32> -> vector<8x128xf32>
    %c3_97 = arith.constant 3 : index
    %c0_98 = arith.constant 0 : index
    %c0_99 = arith.constant 0 : index
    %107 = vector.load %arg13[%c3_97, %c0_98, %c0_99] : memref<8x64x128xf32, #tpu.memory_space<vmem>>, vector<1x32x128xf32>
    %108 = vector.shape_cast %107 : vector<1x32x128xf32> to vector<32x128xf32>
    %109 = arith.mulf %94, %108 : vector<32x128xf32>
    %cst_100 = arith.constant dense<0.000000e+00> : vector<8x128xf32>
    %110 = tpu.matmul %6, %109, %cst_100 {dimension_numbers = #tpu.dot_dimension_numbers<[1], [0], [0], [1], [0, 0, 1, 1], [], []>} : vector<8x32xf32>, vector<32x128xf32>, vector<8x128xf32> -> vector<8x128xf32>
    %c4_101 = arith.constant 4 : index
    %c0_102 = arith.constant 0 : index
    %c0_103 = arith.constant 0 : index
    %111 = vector.load %arg13[%c4_101, %c0_102, %c0_103] : memref<8x64x128xf32, #tpu.memory_space<vmem>>, vector<1x32x128xf32>
    %112 = vector.shape_cast %111 : vector<1x32x128xf32> to vector<32x128xf32>
    %113 = arith.mulf %94, %112 : vector<32x128xf32>
    %cst_104 = arith.constant dense<0.000000e+00> : vector<8x128xf32>
    %114 = tpu.matmul %6, %113, %cst_104 {dimension_numbers = #tpu.dot_dimension_numbers<[1], [0], [0], [1], [0, 0, 1, 1], [], []>} : vector<8x32xf32>, vector<32x128xf32>, vector<8x128xf32> -> vector<8x128xf32>
    %c5_105 = arith.constant 5 : index
    %c0_106 = arith.constant 0 : index
    %c0_107 = arith.constant 0 : index
    %115 = vector.load %arg13[%c5_105, %c0_106, %c0_107] : memref<8x64x128xf32, #tpu.memory_space<vmem>>, vector<1x32x128xf32>
    %116 = vector.shape_cast %115 : vector<1x32x128xf32> to vector<32x128xf32>
    %117 = arith.mulf %94, %116 : vector<32x128xf32>
    %cst_108 = arith.constant dense<0.000000e+00> : vector<8x128xf32>
    %118 = tpu.matmul %6, %117, %cst_108 {dimension_numbers = #tpu.dot_dimension_numbers<[1], [0], [0], [1], [0, 0, 1, 1], [], []>} : vector<8x32xf32>, vector<32x128xf32>, vector<8x128xf32> -> vector<8x128xf32>
    %c6_109 = arith.constant 6 : index
    %c0_110 = arith.constant 0 : index
    %c0_111 = arith.constant 0 : index
    %119 = vector.load %arg13[%c6_109, %c0_110, %c0_111] : memref<8x64x128xf32, #tpu.memory_space<vmem>>, vector<1x32x128xf32>
    %120 = vector.shape_cast %119 : vector<1x32x128xf32> to vector<32x128xf32>
    %121 = arith.mulf %94, %120 : vector<32x128xf32>
    %cst_112 = arith.constant dense<0.000000e+00> : vector<8x128xf32>
    %122 = tpu.matmul %6, %121, %cst_112 {dimension_numbers = #tpu.dot_dimension_numbers<[1], [0], [0], [1], [0, 0, 1, 1], [], []>} : vector<8x32xf32>, vector<32x128xf32>, vector<8x128xf32> -> vector<8x128xf32>
    %c7_113 = arith.constant 7 : index
    %c0_114 = arith.constant 0 : index
    %c0_115 = arith.constant 0 : index
    %123 = vector.load %arg13[%c7_113, %c0_114, %c0_115] : memref<8x64x128xf32, #tpu.memory_space<vmem>>, vector<1x32x128xf32>
    %124 = vector.shape_cast %123 : vector<1x32x128xf32> to vector<32x128xf32>
    %125 = arith.mulf %94, %124 : vector<32x128xf32>
    %cst_116 = arith.constant dense<0.000000e+00> : vector<8x128xf32>
    %126 = tpu.matmul %6, %125, %cst_116 {dimension_numbers = #tpu.dot_dimension_numbers<[1], [0], [0], [1], [0, 0, 1, 1], [], []>} : vector<8x32xf32>, vector<32x128xf32>, vector<8x128xf32> -> vector<8x128xf32>
    %127 = arith.maximumf %98, %102 : vector<8x128xf32>
    %128 = arith.maximumf %127, %106 : vector<8x128xf32>
    %129 = arith.maximumf %128, %110 : vector<8x128xf32>
    %130 = arith.maximumf %129, %114 : vector<8x128xf32>
    %131 = arith.maximumf %130, %118 : vector<8x128xf32>
    %132 = arith.maximumf %131, %122 : vector<8x128xf32>
    %133 = arith.maximumf %132, %126 : vector<8x128xf32>
    %134 = arith.subf %98, %133 : vector<8x128xf32>
    %135 = math.exp %134 : vector<8x128xf32>
    %136 = arith.subf %102, %133 : vector<8x128xf32>
    %137 = math.exp %136 : vector<8x128xf32>
    %138 = arith.subf %106, %133 : vector<8x128xf32>
    %139 = math.exp %138 : vector<8x128xf32>
    %140 = arith.subf %110, %133 : vector<8x128xf32>
    %141 = math.exp %140 : vector<8x128xf32>
    %142 = arith.subf %114, %133 : vector<8x128xf32>
    %143 = math.exp %142 : vector<8x128xf32>
    %144 = arith.subf %118, %133 : vector<8x128xf32>
    %145 = math.exp %144 : vector<8x128xf32>
    %146 = arith.subf %122, %133 : vector<8x128xf32>
    %147 = math.exp %146 : vector<8x128xf32>
    %148 = arith.subf %126, %133 : vector<8x128xf32>
    %149 = math.exp %148 : vector<8x128xf32>
    %150 = arith.addf %135, %137 : vector<8x128xf32>
    %151 = arith.addf %150, %139 : vector<8x128xf32>
    %152 = arith.addf %151, %141 : vector<8x128xf32>
    %153 = arith.addf %152, %143 : vector<8x128xf32>
    %154 = arith.addf %153, %145 : vector<8x128xf32>
    %155 = arith.addf %154, %147 : vector<8x128xf32>
    %156 = arith.addf %155, %149 : vector<8x128xf32>
    %157 = tpu.reciprocal %156 {approx = true} : vector<8x128xf32> -> vector<8x128xf32>
    %158 = arith.mulf %135, %157 : vector<8x128xf32>
    %cst_117 = arith.constant dense<0.000000e+00> : vector<32x128xf32>
    %159 = tpu.matmul %7, %158, %cst_117 {dimension_numbers = #tpu.dot_dimension_numbers<[1], [0], [0], [1], [0, 0, 1, 1], [], []>} : vector<32x8xf32>, vector<8x128xf32>, vector<32x128xf32> -> vector<32x128xf32>
    %c0_118 = arith.constant 0 : index
    %c32 = arith.constant 32 : index
    %c0_119 = arith.constant 0 : index
    %160 = vector.load %arg13[%c0_118, %c32, %c0_119] : memref<8x64x128xf32, #tpu.memory_space<vmem>>, vector<1x32x128xf32>
    %161 = vector.shape_cast %160 : vector<1x32x128xf32> to vector<32x128xf32>
    %162 = arith.mulf %159, %161 : vector<32x128xf32>
    %163 = arith.mulf %137, %157 : vector<8x128xf32>
    %cst_120 = arith.constant dense<0.000000e+00> : vector<32x128xf32>
    %164 = tpu.matmul %7, %163, %cst_120 {dimension_numbers = #tpu.dot_dimension_numbers<[1], [0], [0], [1], [0, 0, 1, 1], [], []>} : vector<32x8xf32>, vector<8x128xf32>, vector<32x128xf32> -> vector<32x128xf32>
    %c1_121 = arith.constant 1 : index
    %c32_122 = arith.constant 32 : index
    %c0_123 = arith.constant 0 : index
    %165 = vector.load %arg13[%c1_121, %c32_122, %c0_123] : memref<8x64x128xf32, #tpu.memory_space<vmem>>, vector<1x32x128xf32>
    %166 = vector.shape_cast %165 : vector<1x32x128xf32> to vector<32x128xf32>
    %167 = arith.mulf %164, %166 : vector<32x128xf32>
    %168 = arith.addf %162, %167 : vector<32x128xf32>
    %169 = arith.mulf %139, %157 : vector<8x128xf32>
    %cst_124 = arith.constant dense<0.000000e+00> : vector<32x128xf32>
    %170 = tpu.matmul %7, %169, %cst_124 {dimension_numbers = #tpu.dot_dimension_numbers<[1], [0], [0], [1], [0, 0, 1, 1], [], []>} : vector<32x8xf32>, vector<8x128xf32>, vector<32x128xf32> -> vector<32x128xf32>
    %c2_125 = arith.constant 2 : index
    %c32_126 = arith.constant 32 : index
    %c0_127 = arith.constant 0 : index
    %171 = vector.load %arg13[%c2_125, %c32_126, %c0_127] : memref<8x64x128xf32, #tpu.memory_space<vmem>>, vector<1x32x128xf32>
    %172 = vector.shape_cast %171 : vector<1x32x128xf32> to vector<32x128xf32>
    %173 = arith.mulf %170, %172 : vector<32x128xf32>
    %174 = arith.addf %168, %173 : vector<32x128xf32>
    %175 = arith.mulf %141, %157 : vector<8x128xf32>
    %cst_128 = arith.constant dense<0.000000e+00> : vector<32x128xf32>
    %176 = tpu.matmul %7, %175, %cst_128 {dimension_numbers = #tpu.dot_dimension_numbers<[1], [0], [0], [1], [0, 0, 1, 1], [], []>} : vector<32x8xf32>, vector<8x128xf32>, vector<32x128xf32> -> vector<32x128xf32>
    %c3_129 = arith.constant 3 : index
    %c32_130 = arith.constant 32 : index
    %c0_131 = arith.constant 0 : index
    %177 = vector.load %arg13[%c3_129, %c32_130, %c0_131] : memref<8x64x128xf32, #tpu.memory_space<vmem>>, vector<1x32x128xf32>
    %178 = vector.shape_cast %177 : vector<1x32x128xf32> to vector<32x128xf32>
    %179 = arith.mulf %176, %178 : vector<32x128xf32>
    %180 = arith.addf %174, %179 : vector<32x128xf32>
    %181 = arith.mulf %143, %157 : vector<8x128xf32>
    %cst_132 = arith.constant dense<0.000000e+00> : vector<32x128xf32>
    %182 = tpu.matmul %7, %181, %cst_132 {dimension_numbers = #tpu.dot_dimension_numbers<[1], [0], [0], [1], [0, 0, 1, 1], [], []>} : vector<32x8xf32>, vector<8x128xf32>, vector<32x128xf32> -> vector<32x128xf32>
    %c4_133 = arith.constant 4 : index
    %c32_134 = arith.constant 32 : index
    %c0_135 = arith.constant 0 : index
    %183 = vector.load %arg13[%c4_133, %c32_134, %c0_135] : memref<8x64x128xf32, #tpu.memory_space<vmem>>, vector<1x32x128xf32>
    %184 = vector.shape_cast %183 : vector<1x32x128xf32> to vector<32x128xf32>
    %185 = arith.mulf %182, %184 : vector<32x128xf32>
    %186 = arith.addf %180, %185 : vector<32x128xf32>
    %187 = arith.mulf %145, %157 : vector<8x128xf32>
    %cst_136 = arith.constant dense<0.000000e+00> : vector<32x128xf32>
    %188 = tpu.matmul %7, %187, %cst_136 {dimension_numbers = #tpu.dot_dimension_numbers<[1], [0], [0], [1], [0, 0, 1, 1], [], []>} : vector<32x8xf32>, vector<8x128xf32>, vector<32x128xf32> -> vector<32x128xf32>
    %c5_137 = arith.constant 5 : index
    %c32_138 = arith.constant 32 : index
    %c0_139 = arith.constant 0 : index
    %189 = vector.load %arg13[%c5_137, %c32_138, %c0_139] : memref<8x64x128xf32, #tpu.memory_space<vmem>>, vector<1x32x128xf32>
    %190 = vector.shape_cast %189 : vector<1x32x128xf32> to vector<32x128xf32>
    %191 = arith.mulf %188, %190 : vector<32x128xf32>
    %192 = arith.addf %186, %191 : vector<32x128xf32>
    %193 = arith.mulf %147, %157 : vector<8x128xf32>
    %cst_140 = arith.constant dense<0.000000e+00> : vector<32x128xf32>
    %194 = tpu.matmul %7, %193, %cst_140 {dimension_numbers = #tpu.dot_dimension_numbers<[1], [0], [0], [1], [0, 0, 1, 1], [], []>} : vector<32x8xf32>, vector<8x128xf32>, vector<32x128xf32> -> vector<32x128xf32>
    %c6_141 = arith.constant 6 : index
    %c32_142 = arith.constant 32 : index
    %c0_143 = arith.constant 0 : index
    %195 = vector.load %arg13[%c6_141, %c32_142, %c0_143] : memref<8x64x128xf32, #tpu.memory_space<vmem>>, vector<1x32x128xf32>
    %196 = vector.shape_cast %195 : vector<1x32x128xf32> to vector<32x128xf32>
    %197 = arith.mulf %194, %196 : vector<32x128xf32>
    %198 = arith.addf %192, %197 : vector<32x128xf32>
    %199 = arith.mulf %149, %157 : vector<8x128xf32>
    %cst_144 = arith.constant dense<0.000000e+00> : vector<32x128xf32>
    %200 = tpu.matmul %7, %199, %cst_144 {dimension_numbers = #tpu.dot_dimension_numbers<[1], [0], [0], [1], [0, 0, 1, 1], [], []>} : vector<32x8xf32>, vector<8x128xf32>, vector<32x128xf32> -> vector<32x128xf32>
    %c7_145 = arith.constant 7 : index
    %c32_146 = arith.constant 32 : index
    %c0_147 = arith.constant 0 : index
    %201 = vector.load %arg13[%c7_145, %c32_146, %c0_147] : memref<8x64x128xf32, #tpu.memory_space<vmem>>, vector<1x32x128xf32>
    %202 = vector.shape_cast %201 : vector<1x32x128xf32> to vector<32x128xf32>
    %203 = arith.mulf %200, %202 : vector<32x128xf32>
    %204 = arith.addf %198, %203 : vector<32x128xf32>
    %cst_148 = arith.constant dense<0.000000e+00> : vector<64x128xf32>
    %205 = tpu.matmul %4, %204, %cst_148 {dimension_numbers = #tpu.dot_dimension_numbers<[1], [0], [0], [1], [0, 0, 1, 1], [], []>} : vector<64x32xf32>, vector<32x128xf32>, vector<64x128xf32> -> vector<64x128xf32>
    %206 = vector.broadcast %5 : vector<64x1xf32> to vector<64x128xf32>
    %207 = arith.addf %205, %206 : vector<64x128xf32>
    %cst_149 = arith.constant 0.000000e+00 : f32
    %208 = vector.broadcast %cst_149 : f32 to vector<64x128xf32>
    %209 = arith.maximumf %207, %208 : vector<64x128xf32>
    %c0_150 = arith.constant 0 : index
    %c0_151 = arith.constant 0 : index
    %c0_152 = arith.constant 0 : index
    %c0_153 = arith.constant 0 : index
    %210 = vector.load %arg12[%c0_150, %c0_151, %c0_152, %c0_153] : memref<1x4x64x128xf32, #tpu.memory_space<vmem>>, vector<1x1x64x128xf32>
    %211 = vector.shape_cast %210 : vector<1x1x64x128xf32> to vector<64x128xf32>
    %212 = vector.shape_cast %209 : vector<64x128xf32> to vector<1x1x64x128xf32>
    tpu.vector_store %arg12[%c0_150, %c0_151, %c0_152, %c0_153], %212 {strides = array<i32>} : memref<1x4x64x128xf32, #tpu.memory_space<vmem>>, vector<1x1x64x128xf32>,
    %c0_154 = arith.constant 0 : index
    %c1_155 = arith.constant 1 : index
    %c0_156 = arith.constant 0 : index
    %c0_157 = arith.constant 0 : index
    %213 = vector.load %arg2[%c0_154, %c1_155, %c0_156, %c0_157] : memref<1x4x64x128xf32, #tpu.memory_space<vmem>>, vector<1x1x64x128xf32>
    %214 = vector.shape_cast %213 : vector<1x1x64x128xf32> to vector<64x128xf32>
    %cst_158 = arith.constant dense<0.000000e+00> : vector<32x128xf32>
    %215 = tpu.matmul %0, %214, %cst_158 {dimension_numbers = #tpu.dot_dimension_numbers<[1], [0], [0], [1], [0, 0, 1, 1], [], []>} : vector<32x64xf32>, vector<64x128xf32>, vector<32x128xf32> -> vector<32x128xf32>
    %216 = vector.broadcast %1 : vector<32x1xf32> to vector<32x128xf32>
    %217 = arith.addf %215, %216 : vector<32x128xf32>
    %cst_159 = arith.constant 0.000000e+00 : f32
    %218 = vector.broadcast %cst_159 : f32 to vector<32x128xf32>
    %219 = arith.maximumf %217, %218 : vector<32x128xf32>
    %c0_160 = arith.constant 0 : index
    %c0_161 = arith.constant 0 : index
    %c0_162 = arith.constant 0 : index
    %220 = vector.load %arg13[%c0_160, %c0_161, %c0_162] : memref<8x64x128xf32, #tpu.memory_space<vmem>>, vector<1x32x128xf32>
    %221 = vector.shape_cast %220 : vector<1x32x128xf32> to vector<32x128xf32>
    %222 = arith.mulf %219, %221 : vector<32x128xf32>
    %cst_163 = arith.constant dense<0.000000e+00> : vector<8x128xf32>
    %223 = tpu.matmul %6, %222, %cst_163 {dimension_numbers = #tpu.dot_dimension_numbers<[1], [0], [0], [1], [0, 0, 1, 1], [], []>} : vector<8x32xf32>, vector<32x128xf32>, vector<8x128xf32> -> vector<8x128xf32>
    %c1_164 = arith.constant 1 : index
    %c0_165 = arith.constant 0 : index
    %c0_166 = arith.constant 0 : index
    %224 = vector.load %arg13[%c1_164, %c0_165, %c0_166] : memref<8x64x128xf32, #tpu.memory_space<vmem>>, vector<1x32x128xf32>
    %225 = vector.shape_cast %224 : vector<1x32x128xf32> to vector<32x128xf32>
    %226 = arith.mulf %219, %225 : vector<32x128xf32>
    %cst_167 = arith.constant dense<0.000000e+00> : vector<8x128xf32>
    %227 = tpu.matmul %6, %226, %cst_167 {dimension_numbers = #tpu.dot_dimension_numbers<[1], [0], [0], [1], [0, 0, 1, 1], [], []>} : vector<8x32xf32>, vector<32x128xf32>, vector<8x128xf32> -> vector<8x128xf32>
    %c2_168 = arith.constant 2 : index
    %c0_169 = arith.constant 0 : index
    %c0_170 = arith.constant 0 : index
    %228 = vector.load %arg13[%c2_168, %c0_169, %c0_170] : memref<8x64x128xf32, #tpu.memory_space<vmem>>, vector<1x32x128xf32>
    %229 = vector.shape_cast %228 : vector<1x32x128xf32> to vector<32x128xf32>
    %230 = arith.mulf %219, %229 : vector<32x128xf32>
    %cst_171 = arith.constant dense<0.000000e+00> : vector<8x128xf32>
    %231 = tpu.matmul %6, %230, %cst_171 {dimension_numbers = #tpu.dot_dimension_numbers<[1], [0], [0], [1], [0, 0, 1, 1], [], []>} : vector<8x32xf32>, vector<32x128xf32>, vector<8x128xf32> -> vector<8x128xf32>
    %c3_172 = arith.constant 3 : index
    %c0_173 = arith.constant 0 : index
    %c0_174 = arith.constant 0 : index
    %232 = vector.load %arg13[%c3_172, %c0_173, %c0_174] : memref<8x64x128xf32, #tpu.memory_space<vmem>>, vector<1x32x128xf32>
    %233 = vector.shape_cast %232 : vector<1x32x128xf32> to vector<32x128xf32>
    %234 = arith.mulf %219, %233 : vector<32x128xf32>
    %cst_175 = arith.constant dense<0.000000e+00> : vector<8x128xf32>
    %235 = tpu.matmul %6, %234, %cst_175 {dimension_numbers = #tpu.dot_dimension_numbers<[1], [0], [0], [1], [0, 0, 1, 1], [], []>} : vector<8x32xf32>, vector<32x128xf32>, vector<8x128xf32> -> vector<8x128xf32>
    %c4_176 = arith.constant 4 : index
    %c0_177 = arith.constant 0 : index
    %c0_178 = arith.constant 0 : index
    %236 = vector.load %arg13[%c4_176, %c0_177, %c0_178] : memref<8x64x128xf32, #tpu.memory_space<vmem>>, vector<1x32x128xf32>
    %237 = vector.shape_cast %236 : vector<1x32x128xf32> to vector<32x128xf32>
    %238 = arith.mulf %219, %237 : vector<32x128xf32>
    %cst_179 = arith.constant dense<0.000000e+00> : vector<8x128xf32>
    %239 = tpu.matmul %6, %238, %cst_179 {dimension_numbers = #tpu.dot_dimension_numbers<[1], [0], [0], [1], [0, 0, 1, 1], [], []>} : vector<8x32xf32>, vector<32x128xf32>, vector<8x128xf32> -> vector<8x128xf32>
    %c5_180 = arith.constant 5 : index
    %c0_181 = arith.constant 0 : index
    %c0_182 = arith.constant 0 : index
    %240 = vector.load %arg13[%c5_180, %c0_181, %c0_182] : memref<8x64x128xf32, #tpu.memory_space<vmem>>, vector<1x32x128xf32>
    %241 = vector.shape_cast %240 : vector<1x32x128xf32> to vector<32x128xf32>
    %242 = arith.mulf %219, %241 : vector<32x128xf32>
    %cst_183 = arith.constant dense<0.000000e+00> : vector<8x128xf32>
    %243 = tpu.matmul %6, %242, %cst_183 {dimension_numbers = #tpu.dot_dimension_numbers<[1], [0], [0], [1], [0, 0, 1, 1], [], []>} : vector<8x32xf32>, vector<32x128xf32>, vector<8x128xf32> -> vector<8x128xf32>
    %c6_184 = arith.constant 6 : index
    %c0_185 = arith.constant 0 : index
    %c0_186 = arith.constant 0 : index
    %244 = vector.load %arg13[%c6_184, %c0_185, %c0_186] : memref<8x64x128xf32, #tpu.memory_space<vmem>>, vector<1x32x128xf32>
    %245 = vector.shape_cast %244 : vector<1x32x128xf32> to vector<32x128xf32>
    %246 = arith.mulf %219, %245 : vector<32x128xf32>
    %cst_187 = arith.constant dense<0.000000e+00> : vector<8x128xf32>
    %247 = tpu.matmul %6, %246, %cst_187 {dimension_numbers = #tpu.dot_dimension_numbers<[1], [0], [0], [1], [0, 0, 1, 1], [], []>} : vector<8x32xf32>, vector<32x128xf32>, vector<8x128xf32> -> vector<8x128xf32>
    %c7_188 = arith.constant 7 : index
    %c0_189 = arith.constant 0 : index
    %c0_190 = arith.constant 0 : index
    %248 = vector.load %arg13[%c7_188, %c0_189, %c0_190] : memref<8x64x128xf32, #tpu.memory_space<vmem>>, vector<1x32x128xf32>
    %249 = vector.shape_cast %248 : vector<1x32x128xf32> to vector<32x128xf32>
    %250 = arith.mulf %219, %249 : vector<32x128xf32>
    %cst_191 = arith.constant dense<0.000000e+00> : vector<8x128xf32>
    %251 = tpu.matmul %6, %250, %cst_191 {dimension_numbers = #tpu.dot_dimension_numbers<[1], [0], [0], [1], [0, 0, 1, 1], [], []>} : vector<8x32xf32>, vector<32x128xf32>, vector<8x128xf32> -> vector<8x128xf32>
    %252 = arith.maximumf %223, %227 : vector<8x128xf32>
    %253 = arith.maximumf %252, %231 : vector<8x128xf32>
    %254 = arith.maximumf %253, %235 : vector<8x128xf32>
    %255 = arith.maximumf %254, %239 : vector<8x128xf32>
    %256 = arith.maximumf %255, %243 : vector<8x128xf32>
    %257 = arith.maximumf %256, %247 : vector<8x128xf32>
    %258 = arith.maximumf %257, %251 : vector<8x128xf32>
    %259 = arith.subf %223, %258 : vector<8x128xf32>
    %260 = math.exp %259 : vector<8x128xf32>
    %261 = arith.subf %227, %258 : vector<8x128xf32>
    %262 = math.exp %261 : vector<8x128xf32>
    %263 = arith.subf %231, %258 : vector<8x128xf32>
    %264 = math.exp %263 : vector<8x128xf32>
    %265 = arith.subf %235, %258 : vector<8x128xf32>
    %266 = math.exp %265 : vector<8x128xf32>
    %267 = arith.subf %239, %258 : vector<8x128xf32>
    %268 = math.exp %267 : vector<8x128xf32>
    %269 = arith.subf %243, %258 : vector<8x128xf32>
    %270 = math.exp %269 : vector<8x128xf32>
    %271 = arith.subf %247, %258 : vector<8x128xf32>
    %272 = math.exp %271 : vector<8x128xf32>
    %273 = arith.subf %251, %258 : vector<8x128xf32>
    %274 = math.exp %273 : vector<8x128xf32>
    %275 = arith.addf %260, %262 : vector<8x128xf32>
    %276 = arith.addf %275, %264 : vector<8x128xf32>
    %277 = arith.addf %276, %266 : vector<8x128xf32>
    %278 = arith.addf %277, %268 : vector<8x128xf32>
    %279 = arith.addf %278, %270 : vector<8x128xf32>
    %280 = arith.addf %279, %272 : vector<8x128xf32>
    %281 = arith.addf %280, %274 : vector<8x128xf32>
    %282 = tpu.reciprocal %281 {approx = true} : vector<8x128xf32> -> vector<8x128xf32>
    %283 = arith.mulf %260, %282 : vector<8x128xf32>
    %cst_192 = arith.constant dense<0.000000e+00> : vector<32x128xf32>
    %284 = tpu.matmul %7, %283, %cst_192 {dimension_numbers = #tpu.dot_dimension_numbers<[1], [0], [0], [1], [0, 0, 1, 1], [], []>} : vector<32x8xf32>, vector<8x128xf32>, vector<32x128xf32> -> vector<32x128xf32>
    %c0_193 = arith.constant 0 : index
    %c32_194 = arith.constant 32 : index
    %c0_195 = arith.constant 0 : index
    %285 = vector.load %arg13[%c0_193, %c32_194, %c0_195] : memref<8x64x128xf32, #tpu.memory_space<vmem>>, vector<1x32x128xf32>
    %286 = vector.shape_cast %285 : vector<1x32x128xf32> to vector<32x128xf32>
    %287 = arith.mulf %284, %286 : vector<32x128xf32>
    %288 = arith.mulf %262, %282 : vector<8x128xf32>
    %cst_196 = arith.constant dense<0.000000e+00> : vector<32x128xf32>
    %289 = tpu.matmul %7, %288, %cst_196 {dimension_numbers = #tpu.dot_dimension_numbers<[1], [0], [0], [1], [0, 0, 1, 1], [], []>} : vector<32x8xf32>, vector<8x128xf32>, vector<32x128xf32> -> vector<32x128xf32>
    %c1_197 = arith.constant 1 : index
    %c32_198 = arith.constant 32 : index
    %c0_199 = arith.constant 0 : index
    %290 = vector.load %arg13[%c1_197, %c32_198, %c0_199] : memref<8x64x128xf32, #tpu.memory_space<vmem>>, vector<1x32x128xf32>
    %291 = vector.shape_cast %290 : vector<1x32x128xf32> to vector<32x128xf32>
    %292 = arith.mulf %289, %291 : vector<32x128xf32>
    %293 = arith.addf %287, %292 : vector<32x128xf32>
    %294 = arith.mulf %264, %282 : vector<8x128xf32>
    %cst_200 = arith.constant dense<0.000000e+00> : vector<32x128xf32>
    %295 = tpu.matmul %7, %294, %cst_200 {dimension_numbers = #tpu.dot_dimension_numbers<[1], [0], [0], [1], [0, 0, 1, 1], [], []>} : vector<32x8xf32>, vector<8x128xf32>, vector<32x128xf32> -> vector<32x128xf32>
    %c2_201 = arith.constant 2 : index
    %c32_202 = arith.constant 32 : index
    %c0_203 = arith.constant 0 : index
    %296 = vector.load %arg13[%c2_201, %c32_202, %c0_203] : memref<8x64x128xf32, #tpu.memory_space<vmem>>, vector<1x32x128xf32>
    %297 = vector.shape_cast %296 : vector<1x32x128xf32> to vector<32x128xf32>
    %298 = arith.mulf %295, %297 : vector<32x128xf32>
    %299 = arith.addf %293, %298 : vector<32x128xf32>
    %300 = arith.mulf %266, %282 : vector<8x128xf32>
    %cst_204 = arith.constant dense<0.000000e+00> : vector<32x128xf32>
    %301 = tpu.matmul %7, %300, %cst_204 {dimension_numbers = #tpu.dot_dimension_numbers<[1], [0], [0], [1], [0, 0, 1, 1], [], []>} : vector<32x8xf32>, vector<8x128xf32>, vector<32x128xf32> -> vector<32x128xf32>
    %c3_205 = arith.constant 3 : index
    %c32_206 = arith.constant 32 : index
    %c0_207 = arith.constant 0 : index
    %302 = vector.load %arg13[%c3_205, %c32_206, %c0_207] : memref<8x64x128xf32, #tpu.memory_space<vmem>>, vector<1x32x128xf32>
    %303 = vector.shape_cast %302 : vector<1x32x128xf32> to vector<32x128xf32>
    %304 = arith.mulf %301, %303 : vector<32x128xf32>
    %305 = arith.addf %299, %304 : vector<32x128xf32>
    %306 = arith.mulf %268, %282 : vector<8x128xf32>
    %cst_208 = arith.constant dense<0.000000e+00> : vector<32x128xf32>
    %307 = tpu.matmul %7, %306, %cst_208 {dimension_numbers = #tpu.dot_dimension_numbers<[1], [0], [0], [1], [0, 0, 1, 1], [], []>} : vector<32x8xf32>, vector<8x128xf32>, vector<32x128xf32> -> vector<32x128xf32>
    %c4_209 = arith.constant 4 : index
    %c32_210 = arith.constant 32 : index
    %c0_211 = arith.constant 0 : index
    %308 = vector.load %arg13[%c4_209, %c32_210, %c0_211] : memref<8x64x128xf32, #tpu.memory_space<vmem>>, vector<1x32x128xf32>
    %309 = vector.shape_cast %308 : vector<1x32x128xf32> to vector<32x128xf32>
    %310 = arith.mulf %307, %309 : vector<32x128xf32>
    %311 = arith.addf %305, %310 : vector<32x128xf32>
    %312 = arith.mulf %270, %282 : vector<8x128xf32>
    %cst_212 = arith.constant dense<0.000000e+00> : vector<32x128xf32>
    %313 = tpu.matmul %7, %312, %cst_212 {dimension_numbers = #tpu.dot_dimension_numbers<[1], [0], [0], [1], [0, 0, 1, 1], [], []>} : vector<32x8xf32>, vector<8x128xf32>, vector<32x128xf32> -> vector<32x128xf32>
    %c5_213 = arith.constant 5 : index
    %c32_214 = arith.constant 32 : index
    %c0_215 = arith.constant 0 : index
    %314 = vector.load %arg13[%c5_213, %c32_214, %c0_215] : memref<8x64x128xf32, #tpu.memory_space<vmem>>, vector<1x32x128xf32>
    %315 = vector.shape_cast %314 : vector<1x32x128xf32> to vector<32x128xf32>
    %316 = arith.mulf %313, %315 : vector<32x128xf32>
    %317 = arith.addf %311, %316 : vector<32x128xf32>
    %318 = arith.mulf %272, %282 : vector<8x128xf32>
    %cst_216 = arith.constant dense<0.000000e+00> : vector<32x128xf32>
    %319 = tpu.matmul %7, %318, %cst_216 {dimension_numbers = #tpu.dot_dimension_numbers<[1], [0], [0], [1], [0, 0, 1, 1], [], []>} : vector<32x8xf32>, vector<8x128xf32>, vector<32x128xf32> -> vector<32x128xf32>
    %c6_217 = arith.constant 6 : index
    %c32_218 = arith.constant 32 : index
    %c0_219 = arith.constant 0 : index
    %320 = vector.load %arg13[%c6_217, %c32_218, %c0_219] : memref<8x64x128xf32, #tpu.memory_space<vmem>>, vector<1x32x128xf32>
    %321 = vector.shape_cast %320 : vector<1x32x128xf32> to vector<32x128xf32>
    %322 = arith.mulf %319, %321 : vector<32x128xf32>
    %323 = arith.addf %317, %322 : vector<32x128xf32>
    %324 = arith.mulf %274, %282 : vector<8x128xf32>
    %cst_220 = arith.constant dense<0.000000e+00> : vector<32x128xf32>
    %325 = tpu.matmul %7, %324, %cst_220 {dimension_numbers = #tpu.dot_dimension_numbers<[1], [0], [0], [1], [0, 0, 1, 1], [], []>} : vector<32x8xf32>, vector<8x128xf32>, vector<32x128xf32> -> vector<32x128xf32>
    %c7_221 = arith.constant 7 : index
    %c32_222 = arith.constant 32 : index
    %c0_223 = arith.constant 0 : index
    %326 = vector.load %arg13[%c7_221, %c32_222, %c0_223] : memref<8x64x128xf32, #tpu.memory_space<vmem>>, vector<1x32x128xf32>
    %327 = vector.shape_cast %326 : vector<1x32x128xf32> to vector<32x128xf32>
    %328 = arith.mulf %325, %327 : vector<32x128xf32>
    %329 = arith.addf %323, %328 : vector<32x128xf32>
    %cst_224 = arith.constant dense<0.000000e+00> : vector<64x128xf32>
    %330 = tpu.matmul %4, %329, %cst_224 {dimension_numbers = #tpu.dot_dimension_numbers<[1], [0], [0], [1], [0, 0, 1, 1], [], []>} : vector<64x32xf32>, vector<32x128xf32>, vector<64x128xf32> -> vector<64x128xf32>
    %331 = vector.broadcast %5 : vector<64x1xf32> to vector<64x128xf32>
    %332 = arith.addf %330, %331 : vector<64x128xf32>
    %cst_225 = arith.constant 0.000000e+00 : f32
    %333 = vector.broadcast %cst_225 : f32 to vector<64x128xf32>
    %334 = arith.maximumf %332, %333 : vector<64x128xf32>
    %c0_226 = arith.constant 0 : index
    %c1_227 = arith.constant 1 : index
    %c0_228 = arith.constant 0 : index
    %c0_229 = arith.constant 0 : index
    %335 = vector.load %arg12[%c0_226, %c1_227, %c0_228, %c0_229] : memref<1x4x64x128xf32, #tpu.memory_space<vmem>>, vector<1x1x64x128xf32>
    %336 = vector.shape_cast %335 : vector<1x1x64x128xf32> to vector<64x128xf32>
    %337 = vector.shape_cast %334 : vector<64x128xf32> to vector<1x1x64x128xf32>
    tpu.vector_store %arg12[%c0_226, %c1_227, %c0_228, %c0_229], %337 {strides = array<i32>} : memref<1x4x64x128xf32, #tpu.memory_space<vmem>>, vector<1x1x64x128xf32>,
    %c0_230 = arith.constant 0 : index
    %c2_231 = arith.constant 2 : index
    %c0_232 = arith.constant 0 : index
    %c0_233 = arith.constant 0 : index
    %338 = vector.load %arg2[%c0_230, %c2_231, %c0_232, %c0_233] : memref<1x4x64x128xf32, #tpu.memory_space<vmem>>, vector<1x1x64x128xf32>
    %339 = vector.shape_cast %338 : vector<1x1x64x128xf32> to vector<64x128xf32>
    %cst_234 = arith.constant dense<0.000000e+00> : vector<32x128xf32>
    %340 = tpu.matmul %0, %339, %cst_234 {dimension_numbers = #tpu.dot_dimension_numbers<[1], [0], [0], [1], [0, 0, 1, 1], [], []>} : vector<32x64xf32>, vector<64x128xf32>, vector<32x128xf32> -> vector<32x128xf32>
    %341 = vector.broadcast %1 : vector<32x1xf32> to vector<32x128xf32>
    %342 = arith.addf %340, %341 : vector<32x128xf32>
    %cst_235 = arith.constant 0.000000e+00 : f32
    %343 = vector.broadcast %cst_235 : f32 to vector<32x128xf32>
    %344 = arith.maximumf %342, %343 : vector<32x128xf32>
    %c0_236 = arith.constant 0 : index
    %c0_237 = arith.constant 0 : index
    %c0_238 = arith.constant 0 : index
    %345 = vector.load %arg13[%c0_236, %c0_237, %c0_238] : memref<8x64x128xf32, #tpu.memory_space<vmem>>, vector<1x32x128xf32>
    %346 = vector.shape_cast %345 : vector<1x32x128xf32> to vector<32x128xf32>
    %347 = arith.mulf %344, %346 : vector<32x128xf32>
    %cst_239 = arith.constant dense<0.000000e+00> : vector<8x128xf32>
    %348 = tpu.matmul %6, %347, %cst_239 {dimension_numbers = #tpu.dot_dimension_numbers<[1], [0], [0], [1], [0, 0, 1, 1], [], []>} : vector<8x32xf32>, vector<32x128xf32>, vector<8x128xf32> -> vector<8x128xf32>
    %c1_240 = arith.constant 1 : index
    %c0_241 = arith.constant 0 : index
    %c0_242 = arith.constant 0 : index
    %349 = vector.load %arg13[%c1_240, %c0_241, %c0_242] : memref<8x64x128xf32, #tpu.memory_space<vmem>>, vector<1x32x128xf32>
    %350 = vector.shape_cast %349 : vector<1x32x128xf32> to vector<32x128xf32>
    %351 = arith.mulf %344, %350 : vector<32x128xf32>
    %cst_243 = arith.constant dense<0.000000e+00> : vector<8x128xf32>
    %352 = tpu.matmul %6, %351, %cst_243 {dimension_numbers = #tpu.dot_dimension_numbers<[1], [0], [0], [1], [0, 0, 1, 1], [], []>} : vector<8x32xf32>, vector<32x128xf32>, vector<8x128xf32> -> vector<8x128xf32>
    %c2_244 = arith.constant 2 : index
    %c0_245 = arith.constant 0 : index
    %c0_246 = arith.constant 0 : index
    %353 = vector.load %arg13[%c2_244, %c0_245, %c0_246] : memref<8x64x128xf32, #tpu.memory_space<vmem>>, vector<1x32x128xf32>
    %354 = vector.shape_cast %353 : vector<1x32x128xf32> to vector<32x128xf32>
    %355 = arith.mulf %344, %354 : vector<32x128xf32>
    %cst_247 = arith.constant dense<0.000000e+00> : vector<8x128xf32>
    %356 = tpu.matmul %6, %355, %cst_247 {dimension_numbers = #tpu.dot_dimension_numbers<[1], [0], [0], [1], [0, 0, 1, 1], [], []>} : vector<8x32xf32>, vector<32x128xf32>, vector<8x128xf32> -> vector<8x128xf32>
    %c3_248 = arith.constant 3 : index
    %c0_249 = arith.constant 0 : index
    %c0_250 = arith.constant 0 : index
    %357 = vector.load %arg13[%c3_248, %c0_249, %c0_250] : memref<8x64x128xf32, #tpu.memory_space<vmem>>, vector<1x32x128xf32>
    %358 = vector.shape_cast %357 : vector<1x32x128xf32> to vector<32x128xf32>
    %359 = arith.mulf %344, %358 : vector<32x128xf32>
    %cst_251 = arith.constant dense<0.000000e+00> : vector<8x128xf32>
    %360 = tpu.matmul %6, %359, %cst_251 {dimension_numbers = #tpu.dot_dimension_numbers<[1], [0], [0], [1], [0, 0, 1, 1], [], []>} : vector<8x32xf32>, vector<32x128xf32>, vector<8x128xf32> -> vector<8x128xf32>
    %c4_252 = arith.constant 4 : index
    %c0_253 = arith.constant 0 : index
    %c0_254 = arith.constant 0 : index
    %361 = vector.load %arg13[%c4_252, %c0_253, %c0_254] : memref<8x64x128xf32, #tpu.memory_space<vmem>>, vector<1x32x128xf32>
    %362 = vector.shape_cast %361 : vector<1x32x128xf32> to vector<32x128xf32>
    %363 = arith.mulf %344, %362 : vector<32x128xf32>
    %cst_255 = arith.constant dense<0.000000e+00> : vector<8x128xf32>
    %364 = tpu.matmul %6, %363, %cst_255 {dimension_numbers = #tpu.dot_dimension_numbers<[1], [0], [0], [1], [0, 0, 1, 1], [], []>} : vector<8x32xf32>, vector<32x128xf32>, vector<8x128xf32> -> vector<8x128xf32>
    %c5_256 = arith.constant 5 : index
    %c0_257 = arith.constant 0 : index
    %c0_258 = arith.constant 0 : index
    %365 = vector.load %arg13[%c5_256, %c0_257, %c0_258] : memref<8x64x128xf32, #tpu.memory_space<vmem>>, vector<1x32x128xf32>
    %366 = vector.shape_cast %365 : vector<1x32x128xf32> to vector<32x128xf32>
    %367 = arith.mulf %344, %366 : vector<32x128xf32>
    %cst_259 = arith.constant dense<0.000000e+00> : vector<8x128xf32>
    %368 = tpu.matmul %6, %367, %cst_259 {dimension_numbers = #tpu.dot_dimension_numbers<[1], [0], [0], [1], [0, 0, 1, 1], [], []>} : vector<8x32xf32>, vector<32x128xf32>, vector<8x128xf32> -> vector<8x128xf32>
    %c6_260 = arith.constant 6 : index
    %c0_261 = arith.constant 0 : index
    %c0_262 = arith.constant 0 : index
    %369 = vector.load %arg13[%c6_260, %c0_261, %c0_262] : memref<8x64x128xf32, #tpu.memory_space<vmem>>, vector<1x32x128xf32>
    %370 = vector.shape_cast %369 : vector<1x32x128xf32> to vector<32x128xf32>
    %371 = arith.mulf %344, %370 : vector<32x128xf32>
    %cst_263 = arith.constant dense<0.000000e+00> : vector<8x128xf32>
    %372 = tpu.matmul %6, %371, %cst_263 {dimension_numbers = #tpu.dot_dimension_numbers<[1], [0], [0], [1], [0, 0, 1, 1], [], []>} : vector<8x32xf32>, vector<32x128xf32>, vector<8x128xf32> -> vector<8x128xf32>
    %c7_264 = arith.constant 7 : index
    %c0_265 = arith.constant 0 : index
    %c0_266 = arith.constant 0 : index
    %373 = vector.load %arg13[%c7_264, %c0_265, %c0_266] : memref<8x64x128xf32, #tpu.memory_space<vmem>>, vector<1x32x128xf32>
    %374 = vector.shape_cast %373 : vector<1x32x128xf32> to vector<32x128xf32>
    %375 = arith.mulf %344, %374 : vector<32x128xf32>
    %cst_267 = arith.constant dense<0.000000e+00> : vector<8x128xf32>
    %376 = tpu.matmul %6, %375, %cst_267 {dimension_numbers = #tpu.dot_dimension_numbers<[1], [0], [0], [1], [0, 0, 1, 1], [], []>} : vector<8x32xf32>, vector<32x128xf32>, vector<8x128xf32> -> vector<8x128xf32>
    %377 = arith.maximumf %348, %352 : vector<8x128xf32>
    %378 = arith.maximumf %377, %356 : vector<8x128xf32>
    %379 = arith.maximumf %378, %360 : vector<8x128xf32>
    %380 = arith.maximumf %379, %364 : vector<8x128xf32>
    %381 = arith.maximumf %380, %368 : vector<8x128xf32>
    %382 = arith.maximumf %381, %372 : vector<8x128xf32>
    %383 = arith.maximumf %382, %376 : vector<8x128xf32>
    %384 = arith.subf %348, %383 : vector<8x128xf32>
    %385 = math.exp %384 : vector<8x128xf32>
    %386 = arith.subf %352, %383 : vector<8x128xf32>
    %387 = math.exp %386 : vector<8x128xf32>
    %388 = arith.subf %356, %383 : vector<8x128xf32>
    %389 = math.exp %388 : vector<8x128xf32>
    %390 = arith.subf %360, %383 : vector<8x128xf32>
    %391 = math.exp %390 : vector<8x128xf32>
    %392 = arith.subf %364, %383 : vector<8x128xf32>
    %393 = math.exp %392 : vector<8x128xf32>
    %394 = arith.subf %368, %383 : vector<8x128xf32>
    %395 = math.exp %394 : vector<8x128xf32>
    %396 = arith.subf %372, %383 : vector<8x128xf32>
    %397 = math.exp %396 : vector<8x128xf32>
    %398 = arith.subf %376, %383 : vector<8x128xf32>
    %399 = math.exp %398 : vector<8x128xf32>
    %400 = arith.addf %385, %387 : vector<8x128xf32>
    %401 = arith.addf %400, %389 : vector<8x128xf32>
    %402 = arith.addf %401, %391 : vector<8x128xf32>
    %403 = arith.addf %402, %393 : vector<8x128xf32>
    %404 = arith.addf %403, %395 : vector<8x128xf32>
    %405 = arith.addf %404, %397 : vector<8x128xf32>
    %406 = arith.addf %405, %399 : vector<8x128xf32>
    %407 = tpu.reciprocal %406 {approx = true} : vector<8x128xf32> -> vector<8x128xf32>
    %408 = arith.mulf %385, %407 : vector<8x128xf32>
    %cst_268 = arith.constant dense<0.000000e+00> : vector<32x128xf32>
    %409 = tpu.matmul %7, %408, %cst_268 {dimension_numbers = #tpu.dot_dimension_numbers<[1], [0], [0], [1], [0, 0, 1, 1], [], []>} : vector<32x8xf32>, vector<8x128xf32>, vector<32x128xf32> -> vector<32x128xf32>
    %c0_269 = arith.constant 0 : index
    %c32_270 = arith.constant 32 : index
    %c0_271 = arith.constant 0 : index
    %410 = vector.load %arg13[%c0_269, %c32_270, %c0_271] : memref<8x64x128xf32, #tpu.memory_space<vmem>>, vector<1x32x128xf32>
    %411 = vector.shape_cast %410 : vector<1x32x128xf32> to vector<32x128xf32>
    %412 = arith.mulf %409, %411 : vector<32x128xf32>
    %413 = arith.mulf %387, %407 : vector<8x128xf32>
    %cst_272 = arith.constant dense<0.000000e+00> : vector<32x128xf32>
    %414 = tpu.matmul %7, %413, %cst_272 {dimension_numbers = #tpu.dot_dimension_numbers<[1], [0], [0], [1], [0, 0, 1, 1], [], []>} : vector<32x8xf32>, vector<8x128xf32>, vector<32x128xf32> -> vector<32x128xf32>
    %c1_273 = arith.constant 1 : index
    %c32_274 = arith.constant 32 : index
    %c0_275 = arith.constant 0 : index
    %415 = vector.load %arg13[%c1_273, %c32_274, %c0_275] : memref<8x64x128xf32, #tpu.memory_space<vmem>>, vector<1x32x128xf32>
    %416 = vector.shape_cast %415 : vector<1x32x128xf32> to vector<32x128xf32>
    %417 = arith.mulf %414, %416 : vector<32x128xf32>
    %418 = arith.addf %412, %417 : vector<32x128xf32>
    %419 = arith.mulf %389, %407 : vector<8x128xf32>
    %cst_276 = arith.constant dense<0.000000e+00> : vector<32x128xf32>
    %420 = tpu.matmul %7, %419, %cst_276 {dimension_numbers = #tpu.dot_dimension_numbers<[1], [0], [0], [1], [0, 0, 1, 1], [], []>} : vector<32x8xf32>, vector<8x128xf32>, vector<32x128xf32> -> vector<32x128xf32>
    %c2_277 = arith.constant 2 : index
    %c32_278 = arith.constant 32 : index
    %c0_279 = arith.constant 0 : index
    %421 = vector.load %arg13[%c2_277, %c32_278, %c0_279] : memref<8x64x128xf32, #tpu.memory_space<vmem>>, vector<1x32x128xf32>
    %422 = vector.shape_cast %421 : vector<1x32x128xf32> to vector<32x128xf32>
    %423 = arith.mulf %420, %422 : vector<32x128xf32>
    %424 = arith.addf %418, %423 : vector<32x128xf32>
    %425 = arith.mulf %391, %407 : vector<8x128xf32>
    %cst_280 = arith.constant dense<0.000000e+00> : vector<32x128xf32>
    %426 = tpu.matmul %7, %425, %cst_280 {dimension_numbers = #tpu.dot_dimension_numbers<[1], [0], [0], [1], [0, 0, 1, 1], [], []>} : vector<32x8xf32>, vector<8x128xf32>, vector<32x128xf32> -> vector<32x128xf32>
    %c3_281 = arith.constant 3 : index
    %c32_282 = arith.constant 32 : index
    %c0_283 = arith.constant 0 : index
    %427 = vector.load %arg13[%c3_281, %c32_282, %c0_283] : memref<8x64x128xf32, #tpu.memory_space<vmem>>, vector<1x32x128xf32>
    %428 = vector.shape_cast %427 : vector<1x32x128xf32> to vector<32x128xf32>
    %429 = arith.mulf %426, %428 : vector<32x128xf32>
    %430 = arith.addf %424, %429 : vector<32x128xf32>
    %431 = arith.mulf %393, %407 : vector<8x128xf32>
    %cst_284 = arith.constant dense<0.000000e+00> : vector<32x128xf32>
    %432 = tpu.matmul %7, %431, %cst_284 {dimension_numbers = #tpu.dot_dimension_numbers<[1], [0], [0], [1], [0, 0, 1, 1], [], []>} : vector<32x8xf32>, vector<8x128xf32>, vector<32x128xf32> -> vector<32x128xf32>
    %c4_285 = arith.constant 4 : index
    %c32_286 = arith.constant 32 : index
    %c0_287 = arith.constant 0 : index
    %433 = vector.load %arg13[%c4_285, %c32_286, %c0_287] : memref<8x64x128xf32, #tpu.memory_space<vmem>>, vector<1x32x128xf32>
    %434 = vector.shape_cast %433 : vector<1x32x128xf32> to vector<32x128xf32>
    %435 = arith.mulf %432, %434 : vector<32x128xf32>
    %436 = arith.addf %430, %435 : vector<32x128xf32>
    %437 = arith.mulf %395, %407 : vector<8x128xf32>
    %cst_288 = arith.constant dense<0.000000e+00> : vector<32x128xf32>
    %438 = tpu.matmul %7, %437, %cst_288 {dimension_numbers = #tpu.dot_dimension_numbers<[1], [0], [0], [1], [0, 0, 1, 1], [], []>} : vector<32x8xf32>, vector<8x128xf32>, vector<32x128xf32> -> vector<32x128xf32>
    %c5_289 = arith.constant 5 : index
    %c32_290 = arith.constant 32 : index
    %c0_291 = arith.constant 0 : index
    %439 = vector.load %arg13[%c5_289, %c32_290, %c0_291] : memref<8x64x128xf32, #tpu.memory_space<vmem>>, vector<1x32x128xf32>
    %440 = vector.shape_cast %439 : vector<1x32x128xf32> to vector<32x128xf32>
    %441 = arith.mulf %438, %440 : vector<32x128xf32>
    %442 = arith.addf %436, %441 : vector<32x128xf32>
    %443 = arith.mulf %397, %407 : vector<8x128xf32>
    %cst_292 = arith.constant dense<0.000000e+00> : vector<32x128xf32>
    %444 = tpu.matmul %7, %443, %cst_292 {dimension_numbers = #tpu.dot_dimension_numbers<[1], [0], [0], [1], [0, 0, 1, 1], [], []>} : vector<32x8xf32>, vector<8x128xf32>, vector<32x128xf32> -> vector<32x128xf32>
    %c6_293 = arith.constant 6 : index
    %c32_294 = arith.constant 32 : index
    %c0_295 = arith.constant 0 : index
    %445 = vector.load %arg13[%c6_293, %c32_294, %c0_295] : memref<8x64x128xf32, #tpu.memory_space<vmem>>, vector<1x32x128xf32>
    %446 = vector.shape_cast %445 : vector<1x32x128xf32> to vector<32x128xf32>
    %447 = arith.mulf %444, %446 : vector<32x128xf32>
    %448 = arith.addf %442, %447 : vector<32x128xf32>
    %449 = arith.mulf %399, %407 : vector<8x128xf32>
    %cst_296 = arith.constant dense<0.000000e+00> : vector<32x128xf32>
    %450 = tpu.matmul %7, %449, %cst_296 {dimension_numbers = #tpu.dot_dimension_numbers<[1], [0], [0], [1], [0, 0, 1, 1], [], []>} : vector<32x8xf32>, vector<8x128xf32>, vector<32x128xf32> -> vector<32x128xf32>
    %c7_297 = arith.constant 7 : index
    %c32_298 = arith.constant 32 : index
    %c0_299 = arith.constant 0 : index
    %451 = vector.load %arg13[%c7_297, %c32_298, %c0_299] : memref<8x64x128xf32, #tpu.memory_space<vmem>>, vector<1x32x128xf32>
    %452 = vector.shape_cast %451 : vector<1x32x128xf32> to vector<32x128xf32>
    %453 = arith.mulf %450, %452 : vector<32x128xf32>
    %454 = arith.addf %448, %453 : vector<32x128xf32>
    %cst_300 = arith.constant dense<0.000000e+00> : vector<64x128xf32>
    %455 = tpu.matmul %4, %454, %cst_300 {dimension_numbers = #tpu.dot_dimension_numbers<[1], [0], [0], [1], [0, 0, 1, 1], [], []>} : vector<64x32xf32>, vector<32x128xf32>, vector<64x128xf32> -> vector<64x128xf32>
    %456 = vector.broadcast %5 : vector<64x1xf32> to vector<64x128xf32>
    %457 = arith.addf %455, %456 : vector<64x128xf32>
    %cst_301 = arith.constant 0.000000e+00 : f32
    %458 = vector.broadcast %cst_301 : f32 to vector<64x128xf32>
    %459 = arith.maximumf %457, %458 : vector<64x128xf32>
    %c0_302 = arith.constant 0 : index
    %c2_303 = arith.constant 2 : index
    %c0_304 = arith.constant 0 : index
    %c0_305 = arith.constant 0 : index
    %460 = vector.load %arg12[%c0_302, %c2_303, %c0_304, %c0_305] : memref<1x4x64x128xf32, #tpu.memory_space<vmem>>, vector<1x1x64x128xf32>
    %461 = vector.shape_cast %460 : vector<1x1x64x128xf32> to vector<64x128xf32>
    %462 = vector.shape_cast %459 : vector<64x128xf32> to vector<1x1x64x128xf32>
    tpu.vector_store %arg12[%c0_302, %c2_303, %c0_304, %c0_305], %462 {strides = array<i32>} : memref<1x4x64x128xf32, #tpu.memory_space<vmem>>, vector<1x1x64x128xf32>,
    %c0_306 = arith.constant 0 : index
    %c3_307 = arith.constant 3 : index
    %c0_308 = arith.constant 0 : index
    %c0_309 = arith.constant 0 : index
    %463 = vector.load %arg2[%c0_306, %c3_307, %c0_308, %c0_309] : memref<1x4x64x128xf32, #tpu.memory_space<vmem>>, vector<1x1x64x128xf32>
    %464 = vector.shape_cast %463 : vector<1x1x64x128xf32> to vector<64x128xf32>
    %cst_310 = arith.constant dense<0.000000e+00> : vector<32x128xf32>
    %465 = tpu.matmul %0, %464, %cst_310 {dimension_numbers = #tpu.dot_dimension_numbers<[1], [0], [0], [1], [0, 0, 1, 1], [], []>} : vector<32x64xf32>, vector<64x128xf32>, vector<32x128xf32> -> vector<32x128xf32>
    %466 = vector.broadcast %1 : vector<32x1xf32> to vector<32x128xf32>
    %467 = arith.addf %465, %466 : vector<32x128xf32>
    %cst_311 = arith.constant 0.000000e+00 : f32
    %468 = vector.broadcast %cst_311 : f32 to vector<32x128xf32>
    %469 = arith.maximumf %467, %468 : vector<32x128xf32>
    %c0_312 = arith.constant 0 : index
    %c0_313 = arith.constant 0 : index
    %c0_314 = arith.constant 0 : index
    %470 = vector.load %arg13[%c0_312, %c0_313, %c0_314] : memref<8x64x128xf32, #tpu.memory_space<vmem>>, vector<1x32x128xf32>
    %471 = vector.shape_cast %470 : vector<1x32x128xf32> to vector<32x128xf32>
    %472 = arith.mulf %469, %471 : vector<32x128xf32>
    %cst_315 = arith.constant dense<0.000000e+00> : vector<8x128xf32>
    %473 = tpu.matmul %6, %472, %cst_315 {dimension_numbers = #tpu.dot_dimension_numbers<[1], [0], [0], [1], [0, 0, 1, 1], [], []>} : vector<8x32xf32>, vector<32x128xf32>, vector<8x128xf32> -> vector<8x128xf32>
    %c1_316 = arith.constant 1 : index
    %c0_317 = arith.constant 0 : index
    %c0_318 = arith.constant 0 : index
    %474 = vector.load %arg13[%c1_316, %c0_317, %c0_318] : memref<8x64x128xf32, #tpu.memory_space<vmem>>, vector<1x32x128xf32>
    %475 = vector.shape_cast %474 : vector<1x32x128xf32> to vector<32x128xf32>
    %476 = arith.mulf %469, %475 : vector<32x128xf32>
    %cst_319 = arith.constant dense<0.000000e+00> : vector<8x128xf32>
    %477 = tpu.matmul %6, %476, %cst_319 {dimension_numbers = #tpu.dot_dimension_numbers<[1], [0], [0], [1], [0, 0, 1, 1], [], []>} : vector<8x32xf32>, vector<32x128xf32>, vector<8x128xf32> -> vector<8x128xf32>
    %c2_320 = arith.constant 2 : index
    %c0_321 = arith.constant 0 : index
    %c0_322 = arith.constant 0 : index
    %478 = vector.load %arg13[%c2_320, %c0_321, %c0_322] : memref<8x64x128xf32, #tpu.memory_space<vmem>>, vector<1x32x128xf32>
    %479 = vector.shape_cast %478 : vector<1x32x128xf32> to vector<32x128xf32>
    %480 = arith.mulf %469, %479 : vector<32x128xf32>
    %cst_323 = arith.constant dense<0.000000e+00> : vector<8x128xf32>
    %481 = tpu.matmul %6, %480, %cst_323 {dimension_numbers = #tpu.dot_dimension_numbers<[1], [0], [0], [1], [0, 0, 1, 1], [], []>} : vector<8x32xf32>, vector<32x128xf32>, vector<8x128xf32> -> vector<8x128xf32>
    %c3_324 = arith.constant 3 : index
    %c0_325 = arith.constant 0 : index
    %c0_326 = arith.constant 0 : index
    %482 = vector.load %arg13[%c3_324, %c0_325, %c0_326] : memref<8x64x128xf32, #tpu.memory_space<vmem>>, vector<1x32x128xf32>
    %483 = vector.shape_cast %482 : vector<1x32x128xf32> to vector<32x128xf32>
    %484 = arith.mulf %469, %483 : vector<32x128xf32>
    %cst_327 = arith.constant dense<0.000000e+00> : vector<8x128xf32>
    %485 = tpu.matmul %6, %484, %cst_327 {dimension_numbers = #tpu.dot_dimension_numbers<[1], [0], [0], [1], [0, 0, 1, 1], [], []>} : vector<8x32xf32>, vector<32x128xf32>, vector<8x128xf32> -> vector<8x128xf32>
    %c4_328 = arith.constant 4 : index
    %c0_329 = arith.constant 0 : index
    %c0_330 = arith.constant 0 : index
    %486 = vector.load %arg13[%c4_328, %c0_329, %c0_330] : memref<8x64x128xf32, #tpu.memory_space<vmem>>, vector<1x32x128xf32>
    %487 = vector.shape_cast %486 : vector<1x32x128xf32> to vector<32x128xf32>
    %488 = arith.mulf %469, %487 : vector<32x128xf32>
    %cst_331 = arith.constant dense<0.000000e+00> : vector<8x128xf32>
    %489 = tpu.matmul %6, %488, %cst_331 {dimension_numbers = #tpu.dot_dimension_numbers<[1], [0], [0], [1], [0, 0, 1, 1], [], []>} : vector<8x32xf32>, vector<32x128xf32>, vector<8x128xf32> -> vector<8x128xf32>
    %c5_332 = arith.constant 5 : index
    %c0_333 = arith.constant 0 : index
    %c0_334 = arith.constant 0 : index
    %490 = vector.load %arg13[%c5_332, %c0_333, %c0_334] : memref<8x64x128xf32, #tpu.memory_space<vmem>>, vector<1x32x128xf32>
    %491 = vector.shape_cast %490 : vector<1x32x128xf32> to vector<32x128xf32>
    %492 = arith.mulf %469, %491 : vector<32x128xf32>
    %cst_335 = arith.constant dense<0.000000e+00> : vector<8x128xf32>
    %493 = tpu.matmul %6, %492, %cst_335 {dimension_numbers = #tpu.dot_dimension_numbers<[1], [0], [0], [1], [0, 0, 1, 1], [], []>} : vector<8x32xf32>, vector<32x128xf32>, vector<8x128xf32> -> vector<8x128xf32>
    %c6_336 = arith.constant 6 : index
    %c0_337 = arith.constant 0 : index
    %c0_338 = arith.constant 0 : index
    %494 = vector.load %arg13[%c6_336, %c0_337, %c0_338] : memref<8x64x128xf32, #tpu.memory_space<vmem>>, vector<1x32x128xf32>
    %495 = vector.shape_cast %494 : vector<1x32x128xf32> to vector<32x128xf32>
    %496 = arith.mulf %469, %495 : vector<32x128xf32>
    %cst_339 = arith.constant dense<0.000000e+00> : vector<8x128xf32>
    %497 = tpu.matmul %6, %496, %cst_339 {dimension_numbers = #tpu.dot_dimension_numbers<[1], [0], [0], [1], [0, 0, 1, 1], [], []>} : vector<8x32xf32>, vector<32x128xf32>, vector<8x128xf32> -> vector<8x128xf32>
    %c7_340 = arith.constant 7 : index
    %c0_341 = arith.constant 0 : index
    %c0_342 = arith.constant 0 : index
    %498 = vector.load %arg13[%c7_340, %c0_341, %c0_342] : memref<8x64x128xf32, #tpu.memory_space<vmem>>, vector<1x32x128xf32>
    %499 = vector.shape_cast %498 : vector<1x32x128xf32> to vector<32x128xf32>
    %500 = arith.mulf %469, %499 : vector<32x128xf32>
    %cst_343 = arith.constant dense<0.000000e+00> : vector<8x128xf32>
    %501 = tpu.matmul %6, %500, %cst_343 {dimension_numbers = #tpu.dot_dimension_numbers<[1], [0], [0], [1], [0, 0, 1, 1], [], []>} : vector<8x32xf32>, vector<32x128xf32>, vector<8x128xf32> -> vector<8x128xf32>
    %502 = arith.maximumf %473, %477 : vector<8x128xf32>
    %503 = arith.maximumf %502, %481 : vector<8x128xf32>
    %504 = arith.maximumf %503, %485 : vector<8x128xf32>
    %505 = arith.maximumf %504, %489 : vector<8x128xf32>
    %506 = arith.maximumf %505, %493 : vector<8x128xf32>
    %507 = arith.maximumf %506, %497 : vector<8x128xf32>
    %508 = arith.maximumf %507, %501 : vector<8x128xf32>
    %509 = arith.subf %473, %508 : vector<8x128xf32>
    %510 = math.exp %509 : vector<8x128xf32>
    %511 = arith.subf %477, %508 : vector<8x128xf32>
    %512 = math.exp %511 : vector<8x128xf32>
    %513 = arith.subf %481, %508 : vector<8x128xf32>
    %514 = math.exp %513 : vector<8x128xf32>
    %515 = arith.subf %485, %508 : vector<8x128xf32>
    %516 = math.exp %515 : vector<8x128xf32>
    %517 = arith.subf %489, %508 : vector<8x128xf32>
    %518 = math.exp %517 : vector<8x128xf32>
    %519 = arith.subf %493, %508 : vector<8x128xf32>
    %520 = math.exp %519 : vector<8x128xf32>
    %521 = arith.subf %497, %508 : vector<8x128xf32>
    %522 = math.exp %521 : vector<8x128xf32>
    %523 = arith.subf %501, %508 : vector<8x128xf32>
    %524 = math.exp %523 : vector<8x128xf32>
    %525 = arith.addf %510, %512 : vector<8x128xf32>
    %526 = arith.addf %525, %514 : vector<8x128xf32>
    %527 = arith.addf %526, %516 : vector<8x128xf32>
    %528 = arith.addf %527, %518 : vector<8x128xf32>
    %529 = arith.addf %528, %520 : vector<8x128xf32>
    %530 = arith.addf %529, %522 : vector<8x128xf32>
    %531 = arith.addf %530, %524 : vector<8x128xf32>
    %532 = tpu.reciprocal %531 {approx = true} : vector<8x128xf32> -> vector<8x128xf32>
    %533 = arith.mulf %510, %532 : vector<8x128xf32>
    %cst_344 = arith.constant dense<0.000000e+00> : vector<32x128xf32>
    %534 = tpu.matmul %7, %533, %cst_344 {dimension_numbers = #tpu.dot_dimension_numbers<[1], [0], [0], [1], [0, 0, 1, 1], [], []>} : vector<32x8xf32>, vector<8x128xf32>, vector<32x128xf32> -> vector<32x128xf32>
    %c0_345 = arith.constant 0 : index
    %c32_346 = arith.constant 32 : index
    %c0_347 = arith.constant 0 : index
    %535 = vector.load %arg13[%c0_345, %c32_346, %c0_347] : memref<8x64x128xf32, #tpu.memory_space<vmem>>, vector<1x32x128xf32>
    %536 = vector.shape_cast %535 : vector<1x32x128xf32> to vector<32x128xf32>
    %537 = arith.mulf %534, %536 : vector<32x128xf32>
    %538 = arith.mulf %512, %532 : vector<8x128xf32>
    %cst_348 = arith.constant dense<0.000000e+00> : vector<32x128xf32>
    %539 = tpu.matmul %7, %538, %cst_348 {dimension_numbers = #tpu.dot_dimension_numbers<[1], [0], [0], [1], [0, 0, 1, 1], [], []>} : vector<32x8xf32>, vector<8x128xf32>, vector<32x128xf32> -> vector<32x128xf32>
    %c1_349 = arith.constant 1 : index
    %c32_350 = arith.constant 32 : index
    %c0_351 = arith.constant 0 : index
    %540 = vector.load %arg13[%c1_349, %c32_350, %c0_351] : memref<8x64x128xf32, #tpu.memory_space<vmem>>, vector<1x32x128xf32>
    %541 = vector.shape_cast %540 : vector<1x32x128xf32> to vector<32x128xf32>
    %542 = arith.mulf %539, %541 : vector<32x128xf32>
    %543 = arith.addf %537, %542 : vector<32x128xf32>
    %544 = arith.mulf %514, %532 : vector<8x128xf32>
    %cst_352 = arith.constant dense<0.000000e+00> : vector<32x128xf32>
    %545 = tpu.matmul %7, %544, %cst_352 {dimension_numbers = #tpu.dot_dimension_numbers<[1], [0], [0], [1], [0, 0, 1, 1], [], []>} : vector<32x8xf32>, vector<8x128xf32>, vector<32x128xf32> -> vector<32x128xf32>
    %c2_353 = arith.constant 2 : index
    %c32_354 = arith.constant 32 : index
    %c0_355 = arith.constant 0 : index
    %546 = vector.load %arg13[%c2_353, %c32_354, %c0_355] : memref<8x64x128xf32, #tpu.memory_space<vmem>>, vector<1x32x128xf32>
    %547 = vector.shape_cast %546 : vector<1x32x128xf32> to vector<32x128xf32>
    %548 = arith.mulf %545, %547 : vector<32x128xf32>
    %549 = arith.addf %543, %548 : vector<32x128xf32>
    %550 = arith.mulf %516, %532 : vector<8x128xf32>
    %cst_356 = arith.constant dense<0.000000e+00> : vector<32x128xf32>
    %551 = tpu.matmul %7, %550, %cst_356 {dimension_numbers = #tpu.dot_dimension_numbers<[1], [0], [0], [1], [0, 0, 1, 1], [], []>} : vector<32x8xf32>, vector<8x128xf32>, vector<32x128xf32> -> vector<32x128xf32>
    %c3_357 = arith.constant 3 : index
    %c32_358 = arith.constant 32 : index
    %c0_359 = arith.constant 0 : index
    %552 = vector.load %arg13[%c3_357, %c32_358, %c0_359] : memref<8x64x128xf32, #tpu.memory_space<vmem>>, vector<1x32x128xf32>
    %553 = vector.shape_cast %552 : vector<1x32x128xf32> to vector<32x128xf32>
    %554 = arith.mulf %551, %553 : vector<32x128xf32>
    %555 = arith.addf %549, %554 : vector<32x128xf32>
    %556 = arith.mulf %518, %532 : vector<8x128xf32>
    %cst_360 = arith.constant dense<0.000000e+00> : vector<32x128xf32>
    %557 = tpu.matmul %7, %556, %cst_360 {dimension_numbers = #tpu.dot_dimension_numbers<[1], [0], [0], [1], [0, 0, 1, 1], [], []>} : vector<32x8xf32>, vector<8x128xf32>, vector<32x128xf32> -> vector<32x128xf32>
    %c4_361 = arith.constant 4 : index
    %c32_362 = arith.constant 32 : index
    %c0_363 = arith.constant 0 : index
    %558 = vector.load %arg13[%c4_361, %c32_362, %c0_363] : memref<8x64x128xf32, #tpu.memory_space<vmem>>, vector<1x32x128xf32>
    %559 = vector.shape_cast %558 : vector<1x32x128xf32> to vector<32x128xf32>
    %560 = arith.mulf %557, %559 : vector<32x128xf32>
    %561 = arith.addf %555, %560 : vector<32x128xf32>
    %562 = arith.mulf %520, %532 : vector<8x128xf32>
    %cst_364 = arith.constant dense<0.000000e+00> : vector<32x128xf32>
    %563 = tpu.matmul %7, %562, %cst_364 {dimension_numbers = #tpu.dot_dimension_numbers<[1], [0], [0], [1], [0, 0, 1, 1], [], []>} : vector<32x8xf32>, vector<8x128xf32>, vector<32x128xf32> -> vector<32x128xf32>
    %c5_365 = arith.constant 5 : index
    %c32_366 = arith.constant 32 : index
    %c0_367 = arith.constant 0 : index
    %564 = vector.load %arg13[%c5_365, %c32_366, %c0_367] : memref<8x64x128xf32, #tpu.memory_space<vmem>>, vector<1x32x128xf32>
    %565 = vector.shape_cast %564 : vector<1x32x128xf32> to vector<32x128xf32>
    %566 = arith.mulf %563, %565 : vector<32x128xf32>
    %567 = arith.addf %561, %566 : vector<32x128xf32>
    %568 = arith.mulf %522, %532 : vector<8x128xf32>
    %cst_368 = arith.constant dense<0.000000e+00> : vector<32x128xf32>
    %569 = tpu.matmul %7, %568, %cst_368 {dimension_numbers = #tpu.dot_dimension_numbers<[1], [0], [0], [1], [0, 0, 1, 1], [], []>} : vector<32x8xf32>, vector<8x128xf32>, vector<32x128xf32> -> vector<32x128xf32>
    %c6_369 = arith.constant 6 : index
    %c32_370 = arith.constant 32 : index
    %c0_371 = arith.constant 0 : index
    %570 = vector.load %arg13[%c6_369, %c32_370, %c0_371] : memref<8x64x128xf32, #tpu.memory_space<vmem>>, vector<1x32x128xf32>
    %571 = vector.shape_cast %570 : vector<1x32x128xf32> to vector<32x128xf32>
    %572 = arith.mulf %569, %571 : vector<32x128xf32>
    %573 = arith.addf %567, %572 : vector<32x128xf32>
    %574 = arith.mulf %524, %532 : vector<8x128xf32>
    %cst_372 = arith.constant dense<0.000000e+00> : vector<32x128xf32>
    %575 = tpu.matmul %7, %574, %cst_372 {dimension_numbers = #tpu.dot_dimension_numbers<[1], [0], [0], [1], [0, 0, 1, 1], [], []>} : vector<32x8xf32>, vector<8x128xf32>, vector<32x128xf32> -> vector<32x128xf32>
    %c7_373 = arith.constant 7 : index
    %c32_374 = arith.constant 32 : index
    %c0_375 = arith.constant 0 : index
    %576 = vector.load %arg13[%c7_373, %c32_374, %c0_375] : memref<8x64x128xf32, #tpu.memory_space<vmem>>, vector<1x32x128xf32>
    %577 = vector.shape_cast %576 : vector<1x32x128xf32> to vector<32x128xf32>
    %578 = arith.mulf %575, %577 : vector<32x128xf32>
    %579 = arith.addf %573, %578 : vector<32x128xf32>
    %cst_376 = arith.constant dense<0.000000e+00> : vector<64x128xf32>
    %580 = tpu.matmul %4, %579, %cst_376 {dimension_numbers = #tpu.dot_dimension_numbers<[1], [0], [0], [1], [0, 0, 1, 1], [], []>} : vector<64x32xf32>, vector<32x128xf32>, vector<64x128xf32> -> vector<64x128xf32>
    %581 = vector.broadcast %5 : vector<64x1xf32> to vector<64x128xf32>
    %582 = arith.addf %580, %581 : vector<64x128xf32>
    %cst_377 = arith.constant 0.000000e+00 : f32
    %583 = vector.broadcast %cst_377 : f32 to vector<64x128xf32>
    %584 = arith.maximumf %582, %583 : vector<64x128xf32>
    %c0_378 = arith.constant 0 : index
    %c3_379 = arith.constant 3 : index
    %c0_380 = arith.constant 0 : index
    %c0_381 = arith.constant 0 : index
    %585 = vector.load %arg12[%c0_378, %c3_379, %c0_380, %c0_381] : memref<1x4x64x128xf32, #tpu.memory_space<vmem>>, vector<1x1x64x128xf32>
    %586 = vector.shape_cast %585 : vector<1x1x64x128xf32> to vector<64x128xf32>
    %587 = vector.shape_cast %584 : vector<64x128xf32> to vector<1x1x64x128xf32>
    tpu.vector_store %arg12[%c0_378, %c3_379, %c0_380, %c0_381], %587 {strides = array<i32>} : memref<1x4x64x128xf32, #tpu.memory_space<vmem>>, vector<1x1x64x128xf32>,
    return
  }
  func.func @transform_0(%arg0: i32, %arg1: i32) -> (i32, i32, i32, i32) {
    %c0_i32 = arith.constant 0 : i32
    %c0_i32_0 = arith.constant 0 : i32
    %c0_i32_1 = arith.constant 0 : i32
    %c0_i32_2 = arith.constant 0 : i32
    return %c0_i32, %c0_i32_0, %c0_i32_1, %arg1 : i32, i32, i32, i32
  }
  func.func @transform_1(%arg0: i32, %arg1: i32) -> (i32, i32, i32, i32) {
    %c0_i32 = arith.constant 0 : i32
    %c0_i32_0 = arith.constant 0 : i32
    %c0_i32_1 = arith.constant 0 : i32
    return %arg0, %c0_i32, %c0_i32_0, %arg1 : i32, i32, i32, i32
  }
  func.func @transform_2(%arg0: i32, %arg1: i32) -> (i32, i32) {
    %c0_i32 = arith.constant 0 : i32
    %c0_i32_0 = arith.constant 0 : i32
    %c0_i32_1 = arith.constant 0 : i32
    return %c0_i32, %c0_i32_0 : i32, i32
  }
  func.func @transform_3(%arg0: i32, %arg1: i32) -> (i32, i32) {
    %c0_i32 = arith.constant 0 : i32
    %c0_i32_0 = arith.constant 0 : i32
    %c0_i32_1 = arith.constant 0 : i32
    return %c0_i32, %c0_i32_0 : i32, i32
  }
  func.func @transform_4(%arg0: i32, %arg1: i32) -> (i32, i32) {
    %c0_i32 = arith.constant 0 : i32
    %c0_i32_0 = arith.constant 0 : i32
    %c0_i32_1 = arith.constant 0 : i32
    return %c0_i32, %c0_i32_0 : i32, i32
  }
  func.func @transform_5(%arg0: i32, %arg1: i32) -> (i32, i32) {
    %c0_i32 = arith.constant 0 : i32
    %c0_i32_0 = arith.constant 0 : i32
    %c0_i32_1 = arith.constant 0 : i32
    return %c0_i32, %c0_i32_0 : i32, i32
  }
  func.func @transform_6(%arg0: i32, %arg1: i32) -> (i32, i32) {
    %c0_i32 = arith.constant 0 : i32
    %c0_i32_0 = arith.constant 0 : i32
    %c0_i32_1 = arith.constant 0 : i32
    return %c0_i32, %c0_i32_0 : i32, i32
  }
  func.func @transform_7(%arg0: i32, %arg1: i32) -> (i32, i32) {
    %c0_i32 = arith.constant 0 : i32
    %c0_i32_0 = arith.constant 0 : i32
    %c0_i32_1 = arith.constant 0 : i32
    return %c0_i32, %c0_i32_0 : i32, i32
  }
  func.func @transform_8(%arg0: i32, %arg1: i32) -> (i32, i32) {
    %c0_i32 = arith.constant 0 : i32
    %c0_i32_0 = arith.constant 0 : i32
    %c0_i32_1 = arith.constant 0 : i32
    return %c0_i32, %c0_i32_0 : i32, i32
  }
  func.func @transform_9(%arg0: i32, %arg1: i32) -> (i32, i32) {
    %c0_i32 = arith.constant 0 : i32
    %c0_i32_0 = arith.constant 0 : i32
    %c0_i32_1 = arith.constant 0 : i32
    return %c0_i32, %c0_i32_0 : i32, i32
  }
  func.func @transform_10(%arg0: i32, %arg1: i32) -> (i32, i32, i32, i32) {
    %c0_i32 = arith.constant 0 : i32
    %c0_i32_0 = arith.constant 0 : i32
    %c0_i32_1 = arith.constant 0 : i32
    return %arg0, %c0_i32, %c0_i32_0, %arg1 : i32, i32, i32, i32
  }
}

</mosaic_0001>

<bundles_post_ra>
// kernel: tpu_custom_call.1
= control target key start
LH: loop header
LB: loop body
LE: loop exit
PB: predicated region body
PF: predicated region fallthrough
CT: control target
= control target key end

     0   :  { %s13271_s0 = inlined_call_operand.vmem [shape: f32[1,4,64,128], index: 0, kind: input, shape index: {}]   ;;  %s13272_s1 = inlined_call_operand.hbm [shape: f32[2,8,64,128], index: 1, kind: input, shape index: {}]   ;;  %s13273_s2 = inlined_call_operand.vmem [shape: f32[32,64], index: 2, kind: input, shape index: {}]   ;;  %s13274_s3 = inlined_call_operand.vmem [shape: f32[32,1], index: 3, kind: input, shape index: {}]   ;;  %s13275_s4 = inlined_call_operand.hbm [shape: f32[64,64], index: 4, kind: input, shape index: {}]   ;;  %s13276_s5 = inlined_call_operand.vmem [shape: f32[64,1], index: 5, kind: input, shape index: {}]   ;;  %s13277_s6 = inlined_call_operand.vmem [shape: f32[64,32], index: 6, kind: input, shape index: {}]   ;;  %s13278_s7 = inlined_call_operand.vmem [shape: f32[64,1], index: 7, kind: input, shape index: {}]   ;;  %s13279_s8 = inlined_call_operand.vmem [shape: f32[8,32], index: 8, kind: input, shape index: {}]   ;;  %s13280_s9 = inlined_call_operand.vmem [shape: f32[32,8], index: 9, kind: input, shape index: {}]   ;;  %s13281_s10 = inlined_call_operand.hbm [shape: f32[2,4,64,128], index: 10, kind: output, shape index: {}]  }
   0x1   :  { %13422 = sst [smem:[#allocation79_spill]] %s13275_s4 }
   0x2   :  { %13423 = sst [smem:[#allocation80_spill]] %s13281_s10 }
   0x3   :  { %15 = vsyncpa [#allocation4], 0 }
   0x4   :  { %17 = vsyncpa [#allocation4 + $0x1], 0 }
   0x5   :  { %18 = vsyncpa [#allocation7], 0 }
   0x6   :  { %19 = vsyncpa [#allocation5], 0 }
   0x7   :  { %21 = vsyncpa [#allocation5 + $0x1], 0  ;;  %s11217_s13 = smov 0   ;;  %s11219_s14 = smov 0  }
   0x8   :  { %s11221_s15 = smov 0   ;;  %s11223_s16 = smov 0  }
   0x9   :  { %s11225_s17 = smov 0   ;;  %s11227_s18 = smov 0  }
   0xa LB: > { %13424 = sst [smem:[#allocation12_spill]] %s11129_s13  ;;  %s8471_s19 = sadd.s32 4294967295, %s11149_s18   ;;  %s11149_s18 = sphi %s11227_s18, %s27_s18   ;;  %s11145_s17 = sphi %s11225_s17, %s13699_s17   ;;  %s11141_s16 = sphi %s11223_s16, %s13698_s16   ;;  %s11137_s15 = sphi %s11221_s15, %s13697_s15   ;;  %s11133_s14 = sphi %s11219_s14, %s13696_s14   ;;  %s11129_s13 = sphi %s11217_s13, %s13695_s13  }
   0xb   : > { %s8472_s20 = sadd.s32 4294967294, %s11149_s18   ;;  %p87_p0 = scmp.ne.s32.totalorder %s11133_s14, %s11129_s13 }
   0xc   : > { %p11251_p1 = scmp.eq.s32.totalorder %s8471_s19, 0  ;;  %p11255_p2 = scmp.eq.s32.totalorder %s8471_s19, 1 }
   0xd   : > { %p287_p3 = scmp.eq.s32.totalorder %s8472_s20, 1  ;;  %p8473_p5 = scmp.ge.s32.totalorder %s11149_s18, 1 }
   0xe   : > { %s13425_s21 = scalar_select %p11251_p1, 1, 0 }
   0xf   : > { %s13426_s22 = scalar_select %p11255_p2, 1, 0 }
  0x10   : > { %p11261_p4 = por %p11251_p1, %p87_p0  ;;  %p11266_p6 = por %p287_p3, %p87_p0 }
  0x11   : > { %p294_p7 = scmp.lt.s32.totalorder %s11149_s18, 3  ;;  %s11151_s26 = smov [#allocation6]  }
  0x12   : > { %s13427_s23 = scalar_select %p11261_p4, 1, 0 }
  0x13   : > { %s13428_s24 = scalar_select %p11266_p6, 1, 0 }
  0x14   : > { %p11271_p8 = pnand %p8473_p5, %p294_p7  ;;  %s319_s27 = sshll.u32 %s11151_s26, 4  ;;  %s320_s27 = int_to_ptr.vmem [resolvable:$true] %s319_s27 }
  0x15   : > { %13429 = sst [smem:[#allocation13_spill]] %s13428_s24  ;;  %s39_s29 = sadd.s32 1, %s11145_s17 }
  0x16   : > { %s13430_s25 = scalar_select %p11271_p8, 1, 0 }
  0x17   : > { %p10837_p9 = pneg %p11271_p8  ;;  %s13432_s4 = sld [smem:[#allocation79_spill]] }
  0x19   : > { %p11280_p11 = pnand %p10837_p9, %p11251_p1 }
  0x1b   : > { %p11007_p13 = pneg %p11280_p11 }
  0x1d   : > { %s11005_s12 = scalar_lea.hbm %s13432_s4, 1024 }
  0x1e   : > { %p11006_p12 = scmp.ne.s32.totalorder %s13432_s4, %s11005_s12  ;;  %p11012_p5 = scmp.lt.u32.totalorder %s11005_s12, %s13432_s4 }
  0x20   : > { %p11008_p0 = pnand %p11007_p13, %p11006_p12 }
  0x22   : > { %p11009_p3 = pneg %p11008_p0 }
  0x24   : > { %p11014_p7 = pnand %p11012_p5, %p11009_p3 }
  0x26   : > { %11017 = shalt.err (!%p11014_p7)
}
  0x27   : > { %s11018_s13 = scalar_lea.vmem %s320_s27, 1024  ;;  %p11026_p1 = scmp.lt.s32.totalorder %s320_s27, %s320_s27 }
  0x28   : > { %p11019_p9 = scmp.ne.s32.totalorder %s320_s27, %s11018_s13  ;;  %p11027_p4 = scmp.lt.s32.totalorder %s11018_s13, %s11018_s13 }
  0x2a   : > { %p11021_p10 = pnand %p11019_p9, %p11007_p13  ;;  %p11028_p8 = por %p11027_p4, %p11026_p1 }
  0x2c   : > { %p11022_p6 = pneg %p11021_p10 }
  0x2e   : > { %p11029_p2 = pnand %p11028_p8, %p11022_p6 }
  0x30   : > { %11032 = shalt.err (!%p11029_p2)
}
  0x31   : > { %s13288_s30 = smov 128   ;;  %s13289_s24 = smov 8  }
  0x32   : > { %10840 = dma.hbm_to_vmem [thread:$0]  (!%p11280_p11), %s13432_s4, 1024, %s320_s27, [#allocation7], %s13288_s30, %s13288_s30, %s13289_s24  }
  0x33   : > { %p41_p1 = scmp.ge.s32.totalorder %s39_s29, 2  ;;  %s74_s12 = sadd.s32 1, %s11137_s15 }
  0x34   : > { %p81_p2 = scmp.ne.s32.totalorder %s11137_s15, %s11133_s14  ;;  %p82_p4 = scmp.eq.s32.totalorder %s11149_s18, 0 }
  0x35   : > { %s13701_s29 = smov (%p41_p1, %s39_s29), 0  ;;  %p13434_p8 = scmp.ne.s32.totalorder %s13426_s22, 0 }
  0x36   : > { %p11310_p6 = por %p82_p4, %p81_p2  ;;  %s69_s20 = ssub.s32 %s11145_s17, %s13701_s29 }
  0x37   : > { %p11316_p10 = por %p13434_p8, %p81_p2  ;;  %p10850_p12 = scmp.lt.s32.totalorder %s11149_s18, 2 }
  0x38   : > { %p72_p11 = scmp.eq.s32.totalorder %s69_s20, 0  ;;  %s348_s27 = sand.u32 1, %s11137_s15  }
  0x39   : > { %s8477_s26 = sshll.u32 %s348_s27, 9  ;;  %s8865_s11 = sshll.u32 %s11145_s17, 13 }
  0x3a   : > { %s11325_s13 = scalar_select %p72_p11, %s11137_s15, %s74_s12  }
  0x3b   : > { %s11331_s4 = scalar_lea.hbm %s13272_s1, %s8865_s11  ;;  %s352_s22 = scalar_lea.vmem [#allocation3], %s8477_s26 }
  0x3c   : > { %s360_s10 = sshll.u32 %s352_s22, 4  ;;  %p11337_p13 = pnand %p10850_p12, %p11310_p6  ;;  %s11333_s10 = int_to_ptr.vmem [resolvable:$true] %s360_s10 }
  0x3d   : > { %s11341_s12 = scalar_lea.sflag [#allocation4], %s348_s27  ;;  %s11033_s30 = scalar_lea.hbm %s11331_s4, 8192 }
  0x3e   : > { %p11034_p0 = scmp.ne.s32.totalorder %s11331_s4, %s11033_s30  ;;  %p11035_p3 = pneg %p11337_p13 }
  0x3f   : > { %s11038_s19 = scalar_lea.hbm %s13272_s1, 16384  ;;  %p11039_p9 = scmp.lt.u32.totalorder %s11331_s4, %s13272_s1 }
  0x40   : > { %p11036_p5 = pnand %p11035_p3, %p11034_p0  ;;  %p11040_p1 = scmp.lt.u32.totalorder %s11038_s19, %s11033_s30 }
  0x41   : > { %p11042_p4 = scmp.lt.u32.totalorder %s11033_s30, %s11331_s4 }
  0x42   : > { %p11037_p7 = pneg %p11036_p5  ;;  %p11041_p2 = por %p11040_p1, %p11039_p9 }
  0x44   : > { %p11043_p6 = por %p11042_p4, %p11041_p2 }
  0x46   : > { %p11044_p8 = pnand %p11043_p6, %p11037_p7 }
  0x48   : > { %11047 = shalt.err (!%p11044_p8)
}
  0x49   : > { %s11048_s27 = scalar_lea.vmem %s11333_s10, 8192  ;;  %s11154_s24 = smov [#allocation3]  }
  0x4a   : > { %p11049_p12 = scmp.ne.s32.totalorder %s11333_s10, %s11048_s27  ;;  %s11053_s26 = sshll.u32 %s11154_s24, 4  ;;  %s11054_s26 = int_to_ptr.vmem [resolvable:$false] %s11053_s26 }
  0x4b   : > { %s11055_s11 = scalar_lea.vmem %s11054_s26, 16384  ;;  %p11056_p5 = scmp.lt.s32.totalorder %s11333_s10, %s11054_s26 }
  0x4c   : > { %p11051_p11 = pnand %p11049_p12, %p11035_p3  ;;  %p11057_p9 = scmp.lt.s32.totalorder %s11055_s11, %s11048_s27 }
  0x4e   : > { %p11052_p0 = pneg %p11051_p11  ;;  %p11058_p1 = por %p11057_p9, %p11056_p5 }
  0x50   : > { %p11059_p2 = pnand %p11058_p1, %p11052_p0 }
  0x52   : > { %11062 = shalt.err (!%p11059_p2)
}
  0x53   : > { %s13437_s30 = smov 8   ;;  %s13438_s19 = smov 128  }
  0x54   : > { %10844 = dma.hbm_to_vmem [thread:$0]  (!%p11337_p13), %s11331_s4, 8192, %s11333_s10, %s11341_s12, %s13438_s19, %s13438_s19, %s13437_s30  }
  0x55   : > { %p13439_p3 = scmp.ne.s32.totalorder %s13430_s25, 0 }
  0x57   : > { %372 = sbr.rel (%p13439_p3) target bundleno = 2865 (0xb31), region = 60 }
  0x5e   : > { %s11375_s22 = sand.u32 1, %s11133_s14   ;;  %p13440_p7 = scmp.ne.s32.totalorder %s13427_s23, 0 }
  0x5f   : > { %s8481_s27 = sshll.u32 %s11375_s22, 9  ;;  %s375_s24 = scalar_lea.sflag [#allocation4], %s11375_s22 }
  0x60   : > { %s11379_s26 = scalar_lea.vmem [#allocation3], %s8481_s27 }
  0x61   : > { %11116 = dma.done.wait (%p13440_p7), %s375_s24, 8192  }
  0x62   : > { %11118 = vsyncadd (%p13440_p7), %s375_s24, 4294959104  ;;  %p13441_p13 = scmp.ne.s32.totalorder %s13425_s21, 0 }
  0x64   : > { %11120 = dma.done.wait (%p13441_p13), [#allocation7], 1024  }
  0x65   : > { %11122 = vsyncadd (%p13441_p13), [#allocation7], 4294966272  ;;  %v11155_v0 = vmov 0   ;;  %v472_v1 = vld [vmem:[%s11379_s26] sm:$0xff]  ;;  %v473_v2 = vld [vmem:[%s11379_s26 + $0x8] sm:$0xff]  ;;  %vm520_vm0 = vcmask 523264  }
  0x66   : > { %10911 = vset.pattern.permute.xlu1 %v11155_v0  ;;  %10910 = vset.pattern.permute.xlu0 %v11155_v0  ;;  %v8492_v3 = vld [vmem:[%s11379_s26 + $0x40] sm:$0xff]  ;;  %v10411_v4 = vpack.c.bf16 %v473_v2, %v472_v1  ;;  %v8493_v5 = vld [vmem:[%s11379_s26 + $0x48] sm:$0xff]  ;;  %v474_v6 = vld [vmem:[%s11379_s26 + $0x10] sm:$0xff]  ;;  %vm11157_vm1 = vmmov 0   ;;  %vm1720_vm2 = vcmask 261120   ;;  %vm2380_vm3 = vcmask 64512  }
  0x67   : > { %v475_v7 = vld [vmem:[%s11379_s26 + $0x18] sm:$0xff]  ;;  %v10427_v8 = vpack.c.bf16 %v8493_v5, %v8492_v3  ;;  %v8494_v10 = vld [vmem:[%s11379_s26 + $0x50] sm:$0xff]  ;;  %v476_v12 = vld [vmem:[%s11379_s26 + $0x20] sm:$0xff]  ;;  %s8483_s21 = sshll.u32 %s11375_s22, 8  ;;  %s8866_s12 = sshll.u32 %s11141_s16, 12 }
  0x68   : > { %v10415_v9 = vpack.c.bf16 %v475_v7, %v474_v6  ;;  %v8495_v11 = vld [vmem:[%s11379_s26 + $0x58] sm:$0xff]  ;;  %10412 = vmatprep.subr.bf16.mxu0 %v10411_v4  ;;  %v477_v14 = vld [vmem:[%s11379_s26 + $0x28] sm:$0xff]  ;;  %v8496_v15 = vld [vmem:[%s11379_s26 + $0x60] sm:$0xff]  ;;  %s12465_s23 = scalar_lea.vmem [#allocation8], %s8483_s21  ;;  %s13689_s27 = sld [smem:[#allocation80_spill]] }
  0x69   : > { %v10431_v13 = vpack.c.bf16 %v8495_v11, %v8494_v10  ;;  %v8497_v16 = vld [vmem:[%s11379_s26 + $0x68] sm:$0xff]  ;;  %10428 = vmatprep.subr.bf16.mxu1 %v10427_v8  ;;  %10414 = vmatpush3.bf16.msra.mxu0 %v10411_v4  ;;  %v10419_v17 = vpack.c.bf16 %v477_v14, %v476_v12  ;;  %v11401_v18 = vld [vmem:[#allocation6] sm:$0xff]  ;;  %v478_v20 = vld [vmem:[%s11379_s26 + $0x30] sm:$0xff]  ;;  %s8361_s11 = sshll.u32 %s12465_s23, 4  ;;  %s8347_s16 = scalar_lea.sflag [#allocation5], %s11375_s22  ;;  %s13220_s11 = int_to_ptr.vmem [resolvable:$true] %s8361_s11 }
  0x6a   : > { %10430 = vmatpush3.bf16.msra.mxu1 %v10427_v8  ;;  %10416 = vmatprep.subr.bf16.mxu0 %v10415_v9  ;;  %v10435_v19 = vpack.c.bf16 %v8497_v16, %v8496_v15  ;;  %v479_v21 = vld [vmem:[%s11379_s26 + $0x38] sm:$0xff]  ;;  %v8498_v22 = vld [vmem:[%s11379_s26 + $0x70] sm:$0xff]  ;;  %v8508_v26 = vld [vmem:[%s11379_s26 + $0x80] sm:$0xff]  ;;  %s11159_s4 = smov [#allocation8]  }
  0x6b   : > { %10432 = vmatprep.subr.bf16.mxu1 %v10431_v13  ;;  %9427 = vmatprep.mubr.msk.f32.mxu0 %vm520_vm0, %v11401_v18  ;;  %v8499_v23 = vld [vmem:[%s11379_s26 + $0x78] sm:$0xff]  ;;  %v10423_v24 = vpack.c.bf16 %v479_v21, %v478_v20  ;;  %v8509_v27 = vld [vmem:[%s11379_s26 + $0x88] sm:$0xff]  ;;  %v8524_v28 = vld [vmem:[%s11379_s26 + $0xc0] sm:$0xff]  ;;  %s11067_s10 = sshll.u32 %s11159_s4, 4  ;;  %s11068_s10 = int_to_ptr.vmem [resolvable:$false] %s11067_s10 }
  0x6c   : > { %9455 = vmatprep.mubr.msk.f32.mxu1 %vm520_vm0, %v11401_v18  ;;  %v10439_v25 = vpack.c.bf16 %v8499_v23, %v8498_v22  ;;  %v8525_v29 = vld [vmem:[%s11379_s26 + $0xc8] sm:$0xff]  ;;  %v10443_v30 = vpack.c.bf16 %v8509_v27, %v8508_v26  ;;  %v8510_v32 = vld [vmem:[%s11379_s26 + $0x90] sm:$0xff]  ;;  %v8511_v33 = vld [vmem:[%s11379_s26 + $0x98] sm:$0xff]  ;;  %s11069_s21 = scalar_lea.vmem %s11068_s10, 8192  ;;  %p11070_p12 = scmp.lt.s32.totalorder %s13220_s11, %s11068_s10 }
  0x6d   : > { %10418 = vmatpush3.bf16.msra.mxu0 %v10415_v9  ;;  %v10459_v31 = vpack.c.bf16 %v8525_v29, %v8524_v28  ;;  %v11417_v34 = vld [vmem:[#allocation6 + $0x8] sm:$0xff]  ;;  %v8526_v35 = vld [vmem:[%s11379_s26 + $0xd0] sm:$0xff]  ;;  %v8527_v36 = vld [vmem:[%s11379_s26 + $0xd8] sm:$0xff]  ;;  %v10447_v38 = vpack.c.bf16 %v8511_v33, %v8510_v32 }
  0x6e   : > { %10434 = vmatpush3.bf16.msra.mxu1 %v10431_v13  ;;  %10420 = vmatprep.subr.bf16.mxu0 %v10419_v17  ;;  %v11421_v37 = vld [vmem:[#allocation6 + $0x10] sm:$0xff]  ;;  %v10463_v39 = vpack.c.bf16 %v8527_v36, %v8526_v35  ;;  %v8512_v40 = vld [vmem:[%s11379_s26 + $0xa0] sm:$0xff]  ;;  %v8513_v41 = vld [vmem:[%s11379_s26 + $0xa8] sm:$0xff]  ;;  %s13218_s24 = scalar_lea.hbm %s13689_s27, %s8866_s12 }
  0x6f   : > { %10436 = vmatprep.subr.bf16.mxu1 %v10435_v19  ;;  %v11429_v42 = vld [vmem:[#allocation6 + $0x18] sm:$0xff]  ;;  %v8528_v43 = vld [vmem:[%s11379_s26 + $0xe0] sm:$0xff]  ;;  %v8529_v44 = vld [vmem:[%s11379_s26 + $0xe8] sm:$0xff]  ;;  %v10451_v46 = vpack.c.bf16 %v8513_v41, %v8512_v40 }
  0x70   : > { %v11437_v45 = vld [vmem:[#allocation6 + $0x20] sm:$0xff]  ;;  %v10467_v47 = vpack.c.bf16 %v8529_v44, %v8528_v43  ;;  %v8514_v48 = vld [vmem:[%s11379_s26 + $0xb0] sm:$0xff]  ;;  %v8515_v49 = vld [vmem:[%s11379_s26 + $0xb8] sm:$0xff] }
  0x71   : > { %10422 = vmatpush3.bf16.msra.mxu0 %v10419_v17  ;;  %v11445_v50 = vld [vmem:[#allocation6 + $0x28] sm:$0xff]  ;;  %v8530_v51 = vld [vmem:[%s11379_s26 + $0xf0] sm:$0xff]  ;;  %v8531_v52 = vld [vmem:[%s11379_s26 + $0xf8] sm:$0xff]  ;;  %v10455_v54 = vpack.c.bf16 %v8515_v49, %v8514_v48 }
  0x72   : > { %10438 = vmatpush3.bf16.msra.mxu1 %v10435_v19  ;;  %10424 = vmatprep.subr.bf16.mxu0 %v10423_v24  ;;  %v11453_v53 = vld [vmem:[#allocation6 + $0x30] sm:$0xff]  ;;  %v10471_v55 = vpack.c.bf16 %v8531_v52, %v8530_v51  ;;  %v8540_v56 = vld [vmem:[%s11379_s26 + $0x100] sm:$0xff]  ;;  %v8541_v57 = vld [vmem:[%s11379_s26 + $0x108] sm:$0xff] }
  0x73   : > { %10440 = vmatprep.subr.bf16.mxu1 %v10439_v25  ;;  %v11461_v58 = vld [vmem:[#allocation6 + $0x38] sm:$0xff]  ;;  %v8556_v59 = vld [vmem:[%s11379_s26 + $0x140] sm:$0xff]  ;;  %v8557_v60 = vld [vmem:[%s11379_s26 + $0x148] sm:$0xff]  ;;  %v10475_v61 = vpack.c.bf16 %v8541_v57, %v8540_v56 }
  0x74   : > { %v10491_v62 = vpack.c.bf16 %v8557_v60, %v8556_v59  ;;  %v8542_v63 = vld [vmem:[%s11379_s26 + $0x110] sm:$0xff]  ;;  %v8543_v0 = vld [vmem:[%s11379_s26 + $0x118] sm:$0xff]  ;;  %v8544_v5 = vld [vmem:[%s11379_s26 + $0x120] sm:$0xff] }
  0x75   : > { %10426 = vmatpush3.bf16.msra.mxu0 %v10423_v24  ;;  %v8558_v1 = vld [vmem:[%s11379_s26 + $0x150] sm:$0xff]  ;;  %v8559_v2 = vld [vmem:[%s11379_s26 + $0x158] sm:$0xff]  ;;  %v10479_v3 = vpack.c.bf16 %v8543_v0, %v8542_v63  ;;  %v8545_v6 = vld [vmem:[%s11379_s26 + $0x128] sm:$0xff] }
  0x76   : > { %10442 = vmatpush3.bf16.msra.mxu1 %v10439_v25  ;;  %10444 = vmatprep.subr.bf16.mxu0 %v10443_v30  ;;  %v10495_v4 = vpack.c.bf16 %v8559_v2, %v8558_v1  ;;  %v8560_v7 = vld [vmem:[%s11379_s26 + $0x160] sm:$0xff]  ;;  %v8561_v8 = vld [vmem:[%s11379_s26 + $0x168] sm:$0xff]  ;;  %v10483_v9 = vpack.c.bf16 %v8545_v6, %v8544_v5  ;;  %v8546_v11 = vld [vmem:[%s11379_s26 + $0x130] sm:$0xff] }
  0x77   : > { %10460 = vmatprep.subr.bf16.mxu1 %v10459_v31  ;;  %v10499_v10 = vpack.c.bf16 %v8561_v8, %v8560_v7  ;;  %v8547_v12 = vld [vmem:[%s11379_s26 + $0x138] sm:$0xff]  ;;  %v8562_v13 = vld [vmem:[%s11379_s26 + $0x170] sm:$0xff]  ;;  %v8572_v17 = vld [vmem:[%s11379_s26 + $0x180] sm:$0xff] }
  0x78   : > { %9428 = vmatmul.mubr.msk.f32.vlgmr.msra.gmra.mrb[0].mxu0 %vm520_vm0, %v11417_v34  ;;  %v8563_v14 = vld [vmem:[%s11379_s26 + $0x178] sm:$0xff]  ;;  %v10487_v15 = vpack.c.bf16 %v8547_v12, %v8546_v11  ;;  %v8573_v19 = vld [vmem:[%s11379_s26 + $0x188] sm:$0xff]  ;;  %v8588_v20 = vld [vmem:[%s11379_s26 + $0x1c0] sm:$0xff] }
  0x79   : > { %9456 = vmatmul.mubr.msk.f32.vlgmr.msra.gmra.mrb[0].mxu1 %vm520_vm0, %v11417_v34  ;;  %10446 = vmatpush3.bf16.msra.mxu0 %v10443_v30  ;;  %v10503_v16 = vpack.c.bf16 %v8563_v14, %v8562_v13  ;;  %v8589_v21 = vld [vmem:[%s11379_s26 + $0x1c8] sm:$0xff]  ;;  %v10507_v22 = vpack.c.bf16 %v8573_v19, %v8572_v17  ;;  %v8574_v24 = vld [vmem:[%s11379_s26 + $0x190] sm:$0xff]  ;;  %v8575_v25 = vld [vmem:[%s11379_s26 + $0x198] sm:$0xff]  ;;  %v13293_v13 = vmov 0.0|0.0   ;;  %v13291_v14 = vmov 0.0  }
  0x7a   : > { %10462 = vmatpush3.bf16.msra.mxu1 %v10459_v31  ;;  %9430 = vmatprep.mubr.msk.f32.mxu0 %vm520_vm0, %v11421_v37  ;;  %v10523_v23 = vpack.c.bf16 %v8589_v21, %v8588_v20  ;;  %v8590_v26 = vld [vmem:[%s11379_s26 + $0x1d0] sm:$0xff]  ;;  %v8591_v27 = vld [vmem:[%s11379_s26 + $0x1d8] sm:$0xff]  ;;  %v10511_v28 = vpack.c.bf16 %v8575_v25, %v8574_v24  ;;  %v8576_v30 = vld [vmem:[%s11379_s26 + $0x1a0] sm:$0xff] }
  0x7b   : > { %9458 = vmatprep.mubr.msk.f32.mxu1 %vm520_vm0, %v11421_v37  ;;  %10448 = vmatprep.subr.bf16.mxu0 %v10447_v38  ;;  %v10527_v29 = vpack.c.bf16 %v8591_v27, %v8590_v26  ;;  %v8577_v31 = vld [vmem:[%s11379_s26 + $0x1a8] sm:$0xff]  ;;  %v8592_v32 = vld [vmem:[%s11379_s26 + $0x1e0] sm:$0xff]  ;;  %v8594_v40 = vld [vmem:[%s11379_s26 + $0x1f0] sm:$0xff] }
  0x7c   : > { %9431 = vmatmul.mubr.msk.f32.gmra.mrb[2].mxu0 %vm520_vm0, %v11429_v42  ;;  %10464 = vmatprep.subr.bf16.mxu1 %v10463_v39  ;;  %v8593_v33 = vld [vmem:[%s11379_s26 + $0x1e8] sm:$0xff]  ;;  %v10515_v35 = vpack.c.bf16 %v8577_v31, %v8576_v30  ;;  %v8595_v41 = vld [vmem:[%s11379_s26 + $0x1f8] sm:$0xff]  ;;  %v1585_v49 = vld [vmem:[%s13271_s0 + $0x10] sm:$0xff] }
  0x7d   : > { %9459 = vmatmul.mubr.msk.f32.gmra.mrb[2].mxu1 %vm520_vm0, %v11429_v42  ;;  %10450 = vmatpush3.bf16.msra.mxu0 %v10447_v38  ;;  %v10531_v36 = vpack.c.bf16 %v8593_v33, %v8592_v32  ;;  %v8578_v38 = vld [vmem:[%s11379_s26 + $0x1b0] sm:$0xff]  ;;  %v10535_v44 = vpack.c.bf16 %v8595_v41, %v8594_v40  ;;  %v1586_v51 = vld [vmem:[%s13271_s0 + $0x18] sm:$0xff]  ;;  %v431_v52 = vld [vmem:[%s13274_s3] sm:$0xff] }
  0x7e   : > { %10466 = vmatpush3.bf16.msra.mxu1 %v10463_v39  ;;  %9433 = vmatprep.mubr.msk.f32.mxu0 %vm520_vm0, %v11437_v45  ;;  %v8579_v39 = vld [vmem:[%s11379_s26 + $0x1b8] sm:$0xff]  ;;  %v1588_v56 = vld [vmem:[%s13271_s0 + $0x28] sm:$0xff]  ;;  %v443_v57 = vld [vmem:[%s13276_s5] sm:$0xff]  ;;  %s11063_s26 = scalar_lea.vmem %s13220_s11, 4096 }
  0x7f   : > { %9461 = vmatprep.mubr.msk.f32.mxu1 %vm520_vm0, %v11437_v45  ;;  %10452 = vmatprep.subr.bf16.mxu0 %v10451_v46  ;;  %v10519_v43 = vpack.c.bf16 %v8579_v39, %v8578_v38  ;;  %v1590_v60 = vld [vmem:[%s13271_s0 + $0x38] sm:$0xff]  ;;  %v448_v0 = vld [vmem:[%s13276_s5 + $0x28] sm:$0xff]  ;;  %v11663_v1 = vld [vmem:[%s13273_s2 + $0x10] sm:$0xff]  ;;  %p11064_p4 = scmp.ne.s32.totalorder %s13220_s11, %s11063_s26  ;;  %p11071_p11 = scmp.lt.s32.totalorder %s11069_s21, %s11063_s26 }
  0x80   : > { %9434 = vmatmul.mubr.msk.f32.gmra.mrb[4].mxu0 %vm520_vm0, %v11445_v50  ;;  %10468 = vmatprep.subr.bf16.mxu1 %v10467_v47  ;;  %v434_v63 = vld [vmem:[%s13274_s3 + $0x18] sm:$0xff]  ;;  %v460_v5 = vld [vmem:[%s13278_s7 + $0x8] sm:$0xff]  ;;  %v459_v6 = vld [vmem:[%s13278_s7] sm:$0xff] }
  0x81   : > { %9462 = vmatmul.mubr.msk.f32.gmra.mrb[4].mxu1 %vm520_vm0, %v11445_v50  ;;  %10454 = vmatpush3.bf16.msra.mxu0 %v10451_v46  ;;  %v1583_v46 = vld [vmem:[%s13271_s0] sm:$0xff]  ;;  %v11675_v2 = vld [vmem:[%s13273_s2 + $0x18] sm:$0xff]  ;;  %v461_v8 = vld [vmem:[%s13278_s7 + $0x10] sm:$0xff]  ;;  %p11065_p6 = pnand %p11064_p4, %p11316_p10  ;;  %p11072_p0 = por %p11071_p11, %p11070_p12 }
  0x82   : > { %10470 = vmatpush3.bf16.msra.mxu1 %v10467_v47  ;;  %9436 = vmatprep.mubr.msk.f32.mxu0 %vm520_vm0, %v11453_v53  ;;  %v1584_v47 = vld [vmem:[%s13271_s0 + $0x8] sm:$0xff]  ;;  %v462_v7 = vld [vmem:[%s13278_s7 + $0x18] sm:$0xff]  ;;  %v465_v12 = vld [vmem:[%s13278_s7 + $0x30] sm:$0xff] }
  0x83   : > { %9464 = vmatprep.mubr.msk.f32.mxu1 %vm520_vm0, %v11453_v53  ;;  %10456 = vmatprep.subr.bf16.mxu0 %v10455_v54  ;;  %v10539_v48 = vpack.c.bf16 %v1584_v47, %v1583_v46  ;;  %v466_v11 = vld [vmem:[%s13278_s7 + $0x38] sm:$0xff]  ;;  %p11066_p8 = pneg %p11065_p6 }
  0x84   : > { %9437 = vmatmul.mubr.msk.f32.gmra.mrb[6].mxu0 %vm520_vm0, %v11461_v58  ;;  %10472 = vmatprep.subr.bf16.mxu1 %v10471_v55 }
  0x85   : > { %9465 = vmatmul.mubr.msk.f32.gmra.mrb[6].mxu1 %vm520_vm0, %v11461_v58  ;;  %10458 = vmatpush3.bf16.msra.mxu0 %v10455_v54  ;;  %v10543_v54 = vpack.c.bf16 %v1586_v51, %v1585_v49  ;;  %p11073_p5 = pnand %p11072_p0, %p11066_p8 }
  0x86   : > { %10474 = vmatpush3.bf16.msra.mxu1 %v10471_v55  ;;  %9483 = vmatprep.mubr.msk.f32.mxu0 %vm520_vm0, %v11401_v18  ;;  %v1587_v55 = vld [vmem:[%s13271_s0 + $0x20] sm:$0xff] }
  0x87   : > { %9511 = vmatprep.mubr.msk.f32.mxu1 %vm520_vm0, %v11401_v18  ;;  %10476 = vmatprep.subr.bf16.mxu0 %v10475_v61  ;;  %v10547_v59 = vpack.c.bf16 %v1588_v56, %v1587_v55 }
  0x88   : > { %9484 = vmatmul.mubr.msk.f32.vlgmr.msra.gmra.mrb[8].mxu0 %vm520_vm0, %v11417_v34  ;;  %10492 = vmatprep.subr.bf16.mxu1 %v10491_v62 }
  0x89   : > { %9512 = vmatmul.mubr.msk.f32.vlgmr.msra.gmra.mrb[8].mxu1 %vm520_vm0, %v11417_v34  ;;  %10478 = vmatpush3.bf16.msra.mxu0 %v10475_v61  ;;  %v444_v61 = vld [vmem:[%s13276_s5 + $0x8] sm:$0xff] }
  0x8a   : > { %10494 = vmatpush3.bf16.msra.mxu1 %v10491_v62  ;;  %9486 = vmatprep.mubr.msk.f32.mxu0 %vm520_vm0, %v11421_v37 }
  0x8b   : > { %9514 = vmatprep.mubr.msk.f32.mxu1 %vm520_vm0, %v11421_v37  ;;  %10480 = vmatprep.subr.bf16.mxu0 %v10479_v3 }
  0x8c   : > { %9487 = vmatmul.mubr.msk.f32.gmra.mrb[10].mxu0 %vm520_vm0, %v11429_v42  ;;  %10496 = vmatprep.subr.bf16.mxu1 %v10495_v4 }
  0x8d   : > { %9515 = vmatmul.mubr.msk.f32.gmra.mrb[10].mxu1 %vm520_vm0, %v11429_v42  ;;  %10482 = vmatpush3.bf16.msra.mxu0 %v10479_v3  ;;  %v450_v3 = vld [vmem:[%s13276_s5 + $0x38] sm:$0xff] }
  0x8e   : > { %10498 = vmatpush3.bf16.msra.mxu1 %v10495_v4  ;;  %9489 = vmatprep.mubr.msk.f32.mxu0 %vm520_vm0, %v11437_v45  ;;  %v449_v4 = vld [vmem:[%s13276_s5 + $0x30] sm:$0xff] }
  0x8f   : > { %9517 = vmatprep.mubr.msk.f32.mxu1 %vm520_vm0, %v11437_v45  ;;  %10484 = vmatprep.subr.bf16.mxu0 %v10483_v9 }
  0x90   : > { %9490 = vmatmul.mubr.msk.f32.gmra.mrb[12].mxu0 %vm520_vm0, %v11445_v50  ;;  %10500 = vmatprep.subr.bf16.mxu1 %v10499_v10 }
  0x91   : > { %9518 = vmatmul.mubr.msk.f32.gmra.mrb[12].mxu1 %vm520_vm0, %v11445_v50  ;;  %10486 = vmatpush3.bf16.msra.mxu0 %v10483_v9  ;;  %v464_v9 = vld [vmem:[%s13278_s7 + $0x28] sm:$0xff] }
  0x92   : > { %10502 = vmatpush3.bf16.msra.mxu1 %v10499_v10  ;;  %9492 = vmatprep.mubr.msk.f32.mxu0 %vm520_vm0, %v11453_v53  ;;  %v463_v10 = vld [vmem:[%s13278_s7 + $0x20] sm:$0xff] }
  0x93   : > { %9520 = vmatprep.mubr.msk.f32.mxu1 %vm520_vm0, %v11453_v53  ;;  %10488 = vmatprep.subr.bf16.mxu0 %v10487_v15 }
  0x94   : > { %9493 = vmatmul.mubr.msk.f32.gmra.mrb[14].mxu0 %vm520_vm0, %v11461_v58  ;;  %10504 = vmatprep.subr.bf16.mxu1 %v10503_v16 }
  0x95   : > { %9521 = vmatmul.mubr.msk.f32.gmra.mrb[14].mxu1 %vm520_vm0, %v11461_v58  ;;  %10490 = vmatpush3.bf16.msra.mxu0 %v10487_v15 }
  0x96   : > { %10506 = vmatpush3.bf16.msra.mxu1 %v10503_v16  ;;  %9539 = vmatprep.mubr.msk.f32.mxu0 %vm520_vm0, %v11401_v18 }
  0x97   : > { %9567 = vmatprep.mubr.msk.f32.mxu1 %vm520_vm0, %v11401_v18  ;;  %10508 = vmatprep.subr.bf16.mxu0 %v10507_v22 }
  0x98   : > { %9540 = vmatmul.mubr.msk.f32.vlgmr.msra.gmra.mrb[16].mxu0 %vm520_vm0, %v11417_v34  ;;  %10524 = vmatprep.subr.bf16.mxu1 %v10523_v23 }
  0x99   : > { %9568 = vmatmul.mubr.msk.f32.vlgmr.msra.gmra.mrb[16].mxu1 %vm520_vm0, %v11417_v34  ;;  %10510 = vmatpush3.bf16.msra.mxu0 %v10507_v22 }
  0x9a   : > { %10526 = vmatpush3.bf16.msra.mxu1 %v10523_v23  ;;  %9542 = vmatprep.mubr.msk.f32.mxu0 %vm520_vm0, %v11421_v37 }
  0x9b   : > { %9570 = vmatprep.mubr.msk.f32.mxu1 %vm520_vm0, %v11421_v37  ;;  %10512 = vmatprep.subr.bf16.mxu0 %v10511_v28 }
  0x9c   : > { %9543 = vmatmul.mubr.msk.f32.gmra.mrb[18].mxu0 %vm520_vm0, %v11429_v42  ;;  %10528 = vmatprep.subr.bf16.mxu1 %v10527_v29 }
  0x9d   : > { %9571 = vmatmul.mubr.msk.f32.gmra.mrb[18].mxu1 %vm520_vm0, %v11429_v42  ;;  %10514 = vmatpush3.bf16.msra.mxu0 %v10511_v28 }
  0x9e   : > { %10530 = vmatpush3.bf16.msra.mxu1 %v10527_v29  ;;  %9545 = vmatprep.mubr.msk.f32.mxu0 %vm520_vm0, %v11437_v45 }
  0x9f   : > { %9573 = vmatprep.mubr.msk.f32.mxu1 %vm520_vm0, %v11437_v45  ;;  %10516 = vmatprep.subr.bf16.mxu0 %v10515_v35 }
  0xa0   : > { %9546 = vmatmul.mubr.msk.f32.gmra.mrb[20].mxu0 %vm520_vm0, %v11445_v50  ;;  %10532 = vmatprep.subr.bf16.mxu1 %v10531_v36 }
  0xa1   : > { %9574 = vmatmul.mubr.msk.f32.gmra.mrb[20].mxu1 %vm520_vm0, %v11445_v50  ;;  %10518 = vmatpush3.bf16.msra.mxu0 %v10515_v35 }
  0xa2   : > { %10534 = vmatpush3.bf16.msra.mxu1 %v10531_v36  ;;  %9548 = vmatprep.mubr.msk.f32.mxu0 %vm520_vm0, %v11453_v53 }
  0xa3   : > { %9576 = vmatprep.mubr.msk.f32.mxu1 %vm520_vm0, %v11453_v53  ;;  %10520 = vmatprep.subr.bf16.mxu0 %v10519_v43 }
  0xa4   : > { %9549 = vmatmul.mubr.msk.f32.gmra.mrb[22].mxu0 %vm520_vm0, %v11461_v58  ;;  %10536 = vmatprep.subr.bf16.mxu1 %v10535_v44 }
  0xa5   : > { %9577 = vmatmul.mubr.msk.f32.gmra.mrb[22].mxu1 %vm520_vm0, %v11461_v58  ;;  %10522 = vmatpush3.bf16.msra.mxu0 %v10519_v43 }
  0xa6   : > { %10538 = vmatpush3.bf16.msra.mxu1 %v10535_v44  ;;  %9595 = vmatprep.mubr.msk.f32.mxu0 %vm520_vm0, %v11401_v18 }
  0xa7   : > { %9623 = vmatprep.mubr.msk.f32.mxu1 %vm520_vm0, %v11401_v18  ;;  %10540 = vmatprep.subr.bf16.mxu0 %v10539_v48  ;;  %v432_v18 = vld [vmem:[%s13274_s3 + $0x8] sm:$0xff] }
  0xa8   : > { %9596 = vmatmul.mubr.msk.f32.vlgmr.msra.gmra.mrb[24].mxu0 %vm520_vm0, %v11417_v34  ;;  %1593 = vperm.xlu1 %10911, %v431_v52  }
  0xa9   : > { %9624 = vmatmul.mubr.msk.f32.vlgmr.msra.gmra.mrb[24].mxu1 %vm520_vm0, %v11417_v34  ;;  %10542 = vmatpush3.bf16.msra.mxu0 %v10539_v48  ;;  %v1589_v34 = vld [vmem:[%s13271_s0 + $0x30] sm:$0xff] }
  0xaa   : > { %9598 = vmatprep.mubr.msk.f32.mxu0 %vm520_vm0, %v11421_v37  ;;  %9626 = vmatprep.mubr.msk.f32.mxu1 %vm520_vm0, %v11421_v37  ;;  %v446_v37 = vld [vmem:[%s13276_s5 + $0x18] sm:$0xff]  ;;  %v10551_v62 = vpack.c.bf16 %v1590_v60, %v1589_v34 }
  0xab   : > { %10544 = vmatprep.subr.bf16.mxu0 %v10543_v54  ;;  %482 = vperm.xlu0 %10910, %v443_v57  }
  0xac   : > { %9599 = vmatmul.mubr.msk.f32.gmra.mrb[26].mxu0 %vm520_vm0, %v11429_v42  ;;  %1598 = vperm.xlu1 %10911, %v432_v18  }
  0xad   : > { %9627 = vmatmul.mubr.msk.f32.gmra.mrb[26].mxu1 %vm520_vm0, %v11429_v42  ;;  %10546 = vmatpush3.bf16.msra.mxu0 %v10543_v54  ;;  %v445_v42 = vld [vmem:[%s13276_s5 + $0x10] sm:$0xff] }
  0xae   : > { %9601 = vmatprep.mubr.msk.f32.mxu0 %vm520_vm0, %v11437_v45  ;;  %9629 = vmatprep.mubr.msk.f32.mxu1 %vm520_vm0, %v11437_v45  ;;  %v11641_v45 = vld [vmem:[%s13273_s2] sm:$0xff] }
  0xaf   : > { %10548 = vmatprep.subr.bf16.mxu0 %v10547_v59  ;;  %487 = vperm.xlu0 %10910, %v444_v61  }
  0xb0   : > { %9602 = vmatmul.mubr.msk.f32.gmra.mrb[28].mxu0 %vm520_vm0, %v11445_v50  ;;  %497 = vperm.xlu1 %10911, %v446_v37  }
  0xb1   : > { %9630 = vmatmul.mubr.msk.f32.gmra.mrb[28].mxu1 %vm520_vm0, %v11445_v50  ;;  %10550 = vmatpush3.bf16.msra.mxu0 %v10547_v59  ;;  %v433_v50 = vld [vmem:[%s13274_s3 + $0x10] sm:$0xff] }
  0xb2   : > { %9604 = vmatprep.mubr.msk.f32.mxu0 %vm520_vm0, %v11453_v53  ;;  %9632 = vmatprep.mubr.msk.f32.mxu1 %vm520_vm0, %v11453_v53  ;;  %v11653_v53 = vld [vmem:[%s13273_s2 + $0x8] sm:$0xff] }
  0xb3   : > { %10552 = vmatprep.subr.bf16.mxu0 %v10551_v62  ;;  %492 = vperm.xlu0 %10910, %v445_v42  }
  0xb4   : > { %9605 = vmatmul.mubr.msk.f32.gmra.mrb[30].mxu0 %vm520_vm0, %v11461_v58  ;;  %1608 = vperm.xlu1 %10911, %v434_v63  }
  0xb5   : > { %9633 = vmatmul.mubr.msk.f32.gmra.mrb[30].mxu1 %vm520_vm0, %v11461_v58  ;;  %10554 = vmatpush3.bf16.msra.mxu0 %v10551_v62  ;;  %v447_v58 = vld [vmem:[%s13276_s5 + $0x20] sm:$0xff] }
  0xb6   : > { %9651 = vmatprep.mubr.msk.f32.mxu0 %vm520_vm0, %v11641_v45  ;;  %10555 = vmatprep.subr.bf16.mxu1 %v13293_v13 }
  0xb7   : > { %1603 = vperm.xlu0 %10910, %v433_v50   ;;  %10561 = vmatprep.subr.bf16.mxu0 %v13293_v13 }
  0xb8   : > { %9652 = vmatmul.mubr.msk.f32.vlgmr.msra.gmra.mrb[32].mxu0 %vm520_vm0, %v11653_v53  ;;  %507 = vperm.xlu1 %10911, %v448_v0  }
  0xb9   : > { %9654 = vmatprep.mubr.msk.f32.mxu0 %vm520_vm0, %v11663_v1  ;;  %9665 = vmatprep.mubr.msk.f32.mxu1 %vm11157_vm1, %v13291_v14 }
  0xbb   : > { %502 = vperm.xlu0 %10910, %v447_v58  }
  0xbc   : > { %9655 = vmatmul.mubr.msk.f32.gmra.mrb[34].mxu0 %vm520_vm0, %v11675_v2  ;;  %517 = vperm.xlu1 %10911, %v450_v3  }
  0xbd   : > { %9676 = vmatprep.mubr.msk.f32.mxu0 %vm11157_vm1, %v13291_v14 }
  0xbf   : > { %512 = vperm.xlu0 %10910, %v449_v4  }
  0xc0   : > { %3179 = vperm.xlu1 %10911, %v460_v5  }
  0xc3   : > { %3174 = vperm.xlu0 %10910, %v459_v6  }
  0xc4   : > { %3189 = vperm.xlu1 %10911, %v462_v7  }
  0xc7   : > { %3184 = vperm.xlu0 %10910, %v461_v8  }
  0xc8   : > { %3199 = vperm.xlu1 %10911, %v464_v9  }
  0xcb   : > { %3194 = vperm.xlu0 %10910, %v463_v10  }
  0xcc   : > { %3209 = vperm.xlu1 %10911, %v466_v11  }
  0xcf   : > { %3204 = vperm.xlu0 %10910, %v465_v12  }
 0x127   : > { %v11761_v60 = vpop.permute.xlu1 %1593 }
 0x128   : > { %13448 = vst [vmem:[#allocation20_spill] sm:$0xff] %v11761_v60 }
 0x12a   : > { %v11765_v37 = vpop.permute.xlu0 %482 }
 0x12b   : > { %v11775_v0 = vpop.permute.xlu1 %1598 }
 0x12e   : > { %v488_v5 = vpop.permute.xlu0 %487 }
 0x12f   : > { %v11785_v11 = vpop.permute.xlu1 %497 }
 0x132   : > { %v11787_v14 = vpop.permute.xlu0 %492 }
 0x14b   : > { %v9429_v15 = vpop.f32.mrb[0].mxu0 }
 0x14c   : > { %v611_v16 = vpop.f32.mrb[1].mxu0  ;;  %v9457_v17 = vpop.f32.mrb[0].mxu1  ;;  %v617_v12 = vadd.f32 %v9429_v15, %v488_v5 }
 0x14d   : > { %v741_v19 = vpop.f32.mrb[1].mxu1  ;;  %v612_v13 = vadd.f32 %v611_v16, %v11765_v37 }
 0x14f   : > { %v9432_v20 = vpop.f32.mrb[2].mxu0 }
 0x150   : > { %v621_v21 = vpop.f32.mrb[3].mxu0  ;;  %v9460_v22 = vpop.f32.mrb[2].mxu1 }
 0x151   : > { %v11715_v23 = vpop.f32.mrb[3].mxu1 }
 0x152   : > { %v752_v16 = vadd.f32 %v11715_v23, %v11787_v14 }
 0x153   : > { %v11717_v24 = vpop.f32.mrb[4].mxu0 }
 0x154   : > { %v11719_v25 = vpop.f32.mrb[5].mxu0  ;;  %v11721_v26 = vpop.f32.mrb[4].mxu1 }
 0x155   : > { %v11723_v27 = vpop.f32.mrb[5].mxu1 }
 0x157   : > { %v11725_v28 = vpop.f32.mrb[6].mxu0 }
 0x158   : > { %v11727_v29 = vpop.f32.mrb[7].mxu0  ;;  %v11729_v30 = vpop.f32.mrb[6].mxu1 }
 0x159   : > { %v11731_v31 = vpop.f32.mrb[7].mxu1 }
 0x15b   : > { %v9485_v32 = vpop.f32.mrb[8].mxu0 }
 0x15c   : > { %v872_v33 = vpop.f32.mrb[9].mxu0  ;;  %v9513_v35 = vpop.f32.mrb[8].mxu1  ;;  %v878_v15 = vadd.f32 %v9485_v32, %v488_v5 }
 0x15d   : > { %v1003_v36 = vpop.f32.mrb[9].mxu1 }
 0x15f   : > { %v9488_v38 = vpop.f32.mrb[10].mxu0 }
 0x160   : > { %v11733_v39 = vpop.f32.mrb[11].mxu0  ;;  %v11735_v40 = vpop.f32.mrb[10].mxu1  ;;  %v888_v23 = vadd.f32 %v9488_v38, %v11785_v11 }
 0x161   : > { %v11737_v41 = vpop.f32.mrb[11].mxu1 }
 0x163   : > { %v11739_v43 = vpop.f32.mrb[12].mxu0 }
 0x164   : > { %v11741_v44 = vpop.f32.mrb[13].mxu0  ;;  %v11743_v46 = vpop.f32.mrb[12].mxu1 }
 0x165   : > { %13442 = vst [vmem:[#allocation14_spill] sm:$0xff] %v11743_v46  ;;  %v11745_v47 = vpop.f32.mrb[13].mxu1 }
 0x166   : > { %13443 = vst [vmem:[#allocation15_spill] sm:$0xff] %v11745_v47 }
 0x167   : > { %v11747_v48 = vpop.f32.mrb[14].mxu0 }
 0x168   : > { %13444 = vst [vmem:[#allocation16_spill] sm:$0xff] %v11747_v48  ;;  %v11749_v49 = vpop.f32.mrb[15].mxu0  ;;  %v11751_v51 = vpop.f32.mrb[14].mxu1 }
 0x169   : > { %13445 = vst [vmem:[#allocation17_spill] sm:$0xff] %v11749_v49  ;;  %13446 = vst [vmem:[#allocation18_spill] sm:$0xff] %v11751_v51  ;;  %v11753_v52 = vpop.f32.mrb[15].mxu1 }
 0x16a   : > { %13447 = vst [vmem:[#allocation19_spill] sm:$0xff] %v11753_v52 }
 0x16b   : > { %v9541_v54 = vpop.f32.mrb[16].mxu0 }
 0x16c   : > { %v1134_v55 = vpop.f32.mrb[17].mxu0  ;;  %v9569_v56 = vpop.f32.mrb[16].mxu1 }
 0x16d   : > { %v1265_v57 = vpop.f32.mrb[17].mxu1 }
 0x16f   : > { %v11755_v18 = vpop.f32.mrb[18].mxu0 }
 0x170   : > { %v11757_v59 = vpop.f32.mrb[19].mxu0  ;;  %v11759_v34 = vpop.f32.mrb[18].mxu1 }
 0x171   : > { %v11763_v61 = vpop.f32.mrb[19].mxu1 }
 0x173   : > { %v11767_v62 = vpop.f32.mrb[20].mxu0 }
 0x174   : > { %13449 = vst [vmem:[#allocation21_spill] sm:$0xff] %v11767_v62  ;;  %v11769_v42 = vpop.f32.mrb[21].mxu0  ;;  %v11771_v63 = vpop.f32.mrb[20].mxu1  ;;  %v1004_v62 = vadd.f32 %v1003_v36, %v11765_v37 }
 0x175   : > { %13450 = vst [vmem:[#allocation22_spill] sm:$0xff] %v11769_v42  ;;  %13451 = vst [vmem:[#allocation23_spill] sm:$0xff] %v11771_v63  ;;  %v11773_v50 = vpop.f32.mrb[21].mxu1  ;;  %v742_v63 = vadd.f32 %v741_v19, %v11765_v37  ;;  %v873_v42 = vadd.f32 %v872_v33, %v11765_v37  ;;  %v1009_v19 = vadd.f32 %v9513_v35, %v488_v5 }
 0x176   : > { %13452 = vst [vmem:[#allocation24_spill] sm:$0xff] %v11773_v50  ;;  %v747_v50 = vadd.f32 %v9457_v17, %v488_v5  ;;  %v11839_v38 = vmax.f32 %v1004_v62, 0.0  ;;  %v1150_v62 = vadd.f32 %v11755_v18, %v11785_v11 }
 0x177   : > { %v11777_v58 = vpop.f32.mrb[22].mxu0  ;;  %v11812_v47 = vmax.f32 %v742_v63, 0.0  ;;  %v883_v63 = vadd.f32 %v11733_v39, %v11787_v14  ;;  %v1266_v39 = vadd.f32 %v1265_v57, %v11765_v37 }
 0x178   : > { %13453 = vst [vmem:[#allocation25_spill] sm:$0xff] %v11777_v58  ;;  %v11779_v3 = vpop.f32.mrb[23].mxu0  ;;  %v11781_v4 = vpop.f32.mrb[22].mxu1  ;;  %v757_v58 = vadd.f32 %v9460_v22, %v11785_v11  ;;  %v11810_v22 = vmax.f32 %v747_v50, 0.0  ;;  %v11829_v50 = vmax.f32 %v873_v42, 0.0  ;;  %13469 = vst [vmem:[#allocation41_spill] sm:$0xff] %v11839_v38  ;;  %v1135_v42 = vadd.f32 %v1134_v55, %v11765_v37 }
 0x179   : > { %13454 = vst [vmem:[#allocation26_spill] sm:$0xff] %v11779_v3  ;;  %13455 = vst [vmem:[#allocation27_spill] sm:$0xff] %v11781_v4  ;;  %v11783_v6 = vpop.f32.mrb[23].mxu1  ;;  %v627_v4 = vadd.f32 %v9432_v20, %v11785_v11  ;;  %v11806_v20 = vmax.f32 %v617_v12, 0.0  ;;  %v11833_v12 = vmax.f32 %v752_v16, 0.0  ;;  %v11861_v55 = vmax.f32 %v883_v63, 0.0 }
 0x17a   : > { %13456 = vst [vmem:[#allocation28_spill] sm:$0xff] %v11783_v6  ;;  %v622_v6 = vadd.f32 %v621_v21, %v11787_v14  ;;  %v11808_v21 = vmax.f32 %v612_v13, 0.0  ;;  %13459 = vst [vmem:[#allocation31_spill] sm:$0xff] %v11810_v22  ;;  %v11821_v49 = vmax.f32 %v757_v58, 0.0  ;;  %v11827_v13 = vmax.f32 %v878_v15, 0.0 }
 0x17b   : > { %v9597_v7 = vpop.f32.mrb[24].mxu0  ;;  %13457 = vst [vmem:[#allocation29_spill] sm:$0xff] %v11806_v20  ;;  %13460 = vst [vmem:[#allocation32_spill] sm:$0xff] %v11812_v47  ;;  %v11816_v32 = vmax.f32 %v627_v4, 0.0  ;;  %v1019_v58 = vadd.f32 %v11735_v40, %v11785_v11  ;;  %v1014_v15 = vadd.f32 %v11737_v41, %v11787_v14  ;;  %v1281_v40 = vadd.f32 %v11759_v34, %v11785_v11 }
 0x17c   : > { %v1396_v8 = vpop.f32.mrb[25].mxu0  ;;  %v9625_v9 = vpop.f32.mrb[24].mxu1  ;;  %13458 = vst [vmem:[#allocation30_spill] sm:$0xff] %v11808_v21  ;;  %v11818_v33 = vmax.f32 %v622_v6, 0.0  ;;  %13464 = vst [vmem:[#allocation36_spill] sm:$0xff] %v11827_v13  ;;  %v11837_v6 = vmax.f32 %v1009_v19, 0.0  ;;  %v1145_v19 = vadd.f32 %v11757_v59, %v11787_v14  ;;  %v1402_v57 = vadd.f32 %v9597_v7, %v488_v5 }
 0x17d   : > { %v1527_v10 = vpop.f32.mrb[25].mxu1  ;;  %13465 = vst [vmem:[#allocation37_spill] sm:$0xff] %v11829_v50  ;;  %13466 = vst [vmem:[#allocation38_spill] sm:$0xff] %v11833_v12  ;;  %v11868_v18 = vmax.f32 %v1019_v58, 0.0  ;;  %v11870_v59 = vmax.f32 %v1014_v15, 0.0  ;;  %v11879_v48 = vmax.f32 %v1266_v39, 0.0 }
 0x17e   : > { %13468 = vst [vmem:[#allocation40_spill] sm:$0xff] %v11837_v6  ;;  %13474 = vst [vmem:[#allocation46_spill] sm:$0xff] %v11861_v55  ;;  %v1528_v34 = vadd.f32 %v1527_v10, %v11765_v37  ;;  %v11881_v7 = vmax.f32 %v1150_v62, 0.0  ;;  %v11885_v58 = vmax.f32 %v1281_v40, 0.0 }
 0x17f   : > { %v11791_v3 = vpop.f32.mrb[26].mxu0  ;;  %13475 = vst [vmem:[#allocation47_spill] sm:$0xff] %v11870_v59  ;;  %13478 = vst [vmem:[#allocation50_spill] sm:$0xff] %v11879_v48 }
 0x180   : > { %v11796_v52 = vpop.f32.mrb[27].mxu0  ;;  %v11798_v51 = vpop.f32.mrb[26].mxu1  ;;  %13479 = vst [vmem:[#allocation51_spill] sm:$0xff] %v11881_v7  ;;  %v11899_v39 = vmax.f32 %v1528_v34, 0.0 }
 0x181   : > { %v11803_v17 = vpop.f32.mrb[27].mxu1  ;;  %v1407_v40 = vadd.f32 %v11796_v52, %v11787_v14 }
 0x183   : > { %v11814_v46 = vpop.f32.mrb[28].mxu0 }
 0x184   : > { %13461 = vst [vmem:[#allocation33_spill] sm:$0xff] %v11814_v46  ;;  %v11823_v35 = vpop.f32.mrb[28].mxu1  ;;  %v11825_v36 = vpop.f32.mrb[29].mxu0  ;;  %v11849_v46 = vmax.f32 %v888_v23, 0.0  ;;  %v1397_v23 = vadd.f32 %v1396_v8, %v11765_v37  ;;  %v11883_v8 = vmax.f32 %v1145_v19, 0.0  ;;  %v11890_v37 = vmax.f32 %v1402_v57, 0.0 }
 0x185   : > { %13462 = vst [vmem:[#allocation34_spill] sm:$0xff] %v11823_v35  ;;  %13463 = vst [vmem:[#allocation35_spill] sm:$0xff] %v11825_v36  ;;  %v11835_v4 = vpop.f32.mrb[29].mxu1  ;;  %v1140_v35 = vadd.f32 %v9541_v54, %v488_v5  ;;  %v1271_v36 = vadd.f32 %v9569_v56, %v488_v5  ;;  %v1276_v56 = vadd.f32 %v11763_v61, %v11787_v14  ;;  %v11903_v19 = vpop.permute.xlu1 %1608 }
 0x186   : > { %13467 = vst [vmem:[#allocation39_spill] sm:$0xff] %v11835_v4  ;;  %13471 = vst [vmem:[#allocation43_spill] sm:$0xff] %v11849_v46  ;;  %v11892_v10 = vmax.f32 %v1397_v23, 0.0  ;;  %v1538_v57 = vadd.f32 %v11803_v17, %v11787_v14 }
 0x187   : > { %v11847_v16 = vpop.f32.mrb[30].mxu0  ;;  %v11877_v63 = vmax.f32 %v1271_v36, 0.0  ;;  %13480 = vst [vmem:[#allocation52_spill] sm:$0xff] %v11890_v37  ;;  %v1412_v36 = vadd.f32 %v11791_v3, %v11785_v11  ;;  %13483 = vst [vmem:[#allocation55_spill] sm:$0xff] %v11903_v19  ;;  %v11911_v3 = vpop.permute.xlu0 %1603 }
 0x188   : > { %13470 = vst [vmem:[#allocation42_spill] sm:$0xff] %v11847_v16  ;;  %v11857_v41 = vpop.f32.mrb[30].mxu1  ;;  %v11859_v54 = vpop.f32.mrb[31].mxu0  ;;  %v1533_v16 = vadd.f32 %v9625_v9, %v488_v5  ;;  %v11888_v9 = vmax.f32 %v1276_v56, 0.0  ;;  %13481 = vst [vmem:[#allocation53_spill] sm:$0xff] %v11892_v10  ;;  %v1543_v56 = vadd.f32 %v11798_v51, %v11785_v11 }
 0x189   : > { %13472 = vst [vmem:[#allocation44_spill] sm:$0xff] %v11857_v41  ;;  %13473 = vst [vmem:[#allocation45_spill] sm:$0xff] %v11859_v54  ;;  %v11866_v4 = vpop.f32.mrb[31].mxu1  ;;  %v11873_v41 = vmax.f32 %v1140_v35, 0.0  ;;  %v11875_v54 = vmax.f32 %v1135_v42, 0.0 }
 0x18a   : > { %13477 = vst [vmem:[#allocation49_spill] sm:$0xff] %v11877_v63  ;;  %v11897_v42 = vmax.f32 %v1533_v16, 0.0  ;;  %13484 = vst [vmem:[#allocation56_spill] sm:$0xff] %v11911_v3 }
 0x18b   : > { %13476 = vst [vmem:[#allocation48_spill] sm:$0xff] %v11875_v54  ;;  %v9653_v61 = vpop.f32.mrb[32].mxu0 }
 0x18c   : > { %v1695_v15 = vadd.f32 %v9653_v61, %v11775_v0  ;;  %v1689_v5 = vpop.f32.mrb[33].mxu0  ;;  %13482 = vst [vmem:[#allocation54_spill] sm:$0xff] %v11897_v42 }
 0x18d   : > { %v1690_v35 = vadd.f32 %v1689_v5, %v11761_v60 }
 0x18e   : > { %v11901_v62 = vmax.f32 %v1695_v15, 0.0 }
 0x18f   : > { %v1708_v23 = vmax.f32 %v1690_v35, 0.0  ;;  %v9656_v61 = vpop.f32.mrb[34].mxu0 }
 0x190   : > { %v1705_v16 = vadd.f32 %v9656_v61, %v11903_v19  ;;  %v1699_v34 = vpop.f32.mrb[35].mxu0  ;;  %v1717_v15 = vmul.f32 %v11901_v62, %v11806_v20  ;;  %v1799_v5 = vmul.f32 %v11901_v62, %v11810_v22  ;;  %v1877_v52 = vmul.f32 %v11901_v62, %v11827_v13 }
 0x191   : > { %v1700_v51 = vadd.f32 %v1699_v34, %v11911_v3  ;;  %v1716_v14 = vmul.f32 %v1708_v23, %v11808_v21  ;;  %v1798_v11 = vmul.f32 %v1708_v23, %v11812_v47  ;;  %v1876_v17 = vmul.f32 %v1708_v23, %v11829_v50 }
 0x192   : > { %v1711_v35 = vmax.f32 %v1705_v16, 0.0  ;;  %v1954_v61 = vmul.f32 %v1708_v23, %v11839_v38  ;;  %v1955_v20 = vmul.f32 %v11901_v62, %v11837_v6  ;;  %v11928_v22 = vmul.f32 %v1708_v23, %v11875_v54 }
 0x193   : > { %v1710_v19 = vmax.f32 %v1700_v51, 0.0  ;;  %v10556_v13 = vpack.c.bf16 %v1717_v15, %v1716_v14  ;;  %v10562_v60 = vpack.c.bf16 %v1799_v5, %v1798_v11  ;;  %v10568_v34 = vpack.c.bf16 %v1877_v52, %v1876_v17 }
 0x194   : > { %v1719_v21 = vmul.f32 %v1711_v35, %v11816_v32  ;;  %v1801_v47 = vmul.f32 %v1711_v35, %v11821_v49  ;;  %v10574_v3 = vpack.c.bf16 %v1955_v20, %v1954_v61  ;;  %v1879_v50 = vmul.f32 %v1711_v35, %v11849_v46 }
 0x195   : > { %v11933_v16 = vmax.f32 %v1412_v36, 0.0  ;;  %10557 = vmatpush3.bf16.msra.mxu1 %v10556_v13  ;;  %10563 = vmatpush3.bf16.msra.mxu0 %v10562_v60  ;;  %v1718_v6 = vmul.f32 %v1710_v19, %v11818_v33  ;;  %v1800_v54 = vmul.f32 %v1710_v19, %v11833_v12  ;;  %v1878_v51 = vmul.f32 %v1710_v19, %v11861_v55 }
 0x196   : > { %v11938_v15 = vmax.f32 %v1407_v40, 0.0  ;;  %v13487_v5 = vmov 0.0|0.0   ;;  %v1956_v20 = vmul.f32 %v1710_v19, %v11870_v59  ;;  %v1957_v52 = vmul.f32 %v1711_v35, %v11868_v18 }
 0x197   : > { %13485 = vst [vmem:[#allocation57_spill] sm:$0xff] %v11933_v16  ;;  %10558 = vmatprep.subr.bf16.mxu1 %v13487_v5  ;;  %10564 = vmatprep.subr.bf16.mxu0 %v13487_v5  ;;  %v2033_v13 = vmul.f32 %v11901_v62, %v11873_v41  ;;  %v10559_v60 = vpack.c.bf16 %v1719_v21, %v1718_v6  ;;  %v11951_v12 = vmax.f32 %v1543_v56, 0.0  ;;  %v11956_v21 = vld [vmem:[%s13279_s8] sm:$0xff]  ;;  %v11961_v6 = vmax.f32 %v1538_v57, 0.0 }
 0x198   : > { %13486 = vst [vmem:[#allocation58_spill] sm:$0xff] %v11938_v15  ;;  %v10565_v36 = vpack.c.bf16 %v1801_v47, %v1800_v54  ;;  %v10571_v14 = vpack.c.bf16 %v1879_v50, %v1878_v51  ;;  %v2110_v11 = vmul.f32 %v1708_v23, %v11879_v48  ;;  %v10577_v17 = vpack.c.bf16 %v1957_v52, %v1956_v20 }
 0x199   : > { %v10580_v40 = vpack.c.bf16 %v2033_v13, %v11928_v22  ;;  %v2111_v61 = vmul.f32 %v11901_v62, %v11877_v63  ;;  %v2034_v55 = vmul.f32 %v1710_v19, %v11883_v8  ;;  %13488 = vst [vmem:[#allocation59_spill] sm:$0xff] %v11951_v12  ;;  %10560 = vmatpush3.bf16.msra.mxu1 %v10559_v60  ;;  %13489 = vst [vmem:[#allocation60_spill] sm:$0xff] %v11956_v21 }
 0x19a   : > { %10566 = vmatpush3.bf16.msra.mxu0 %v10565_v36  ;;  %v2035_v47 = vmul.f32 %v1711_v35, %v11881_v7  ;;  %v2112_v50 = vmul.f32 %v1710_v19, %v11888_v9  ;;  %v2113_v22 = vmul.f32 %v1711_v35, %v11885_v58  ;;  %13490 = vst [vmem:[#allocation61_spill] sm:$0xff] %v11961_v6 }
 0x19b   : > { %10567 = vmatprep.subr.bf16.mxu1 %v13487_v5  ;;  %10573 = vmatprep.subr.bf16.mxu0 %v13487_v5  ;;  %v10586_v54 = vpack.c.bf16 %v2111_v61, %v2110_v11  ;;  %v2188_v56 = vmul.f32 %v1708_v23, %v11892_v10  ;;  %v2189_v51 = vmul.f32 %v11901_v62, %v11890_v37 }
 0x19c   : > { %v10583_v20 = vpack.c.bf16 %v2035_v47, %v2034_v55  ;;  %v10589_v52 = vpack.c.bf16 %v2113_v22, %v2112_v50  ;;  %v2266_v13 = vmul.f32 %v1708_v23, %v11899_v39  ;;  %v2267_v60 = vmul.f32 %v11901_v62, %v11897_v42  ;;  %9666 = vmatmul.mubr.msk.f32.vlgmr.msra.gmra.mrb[32].mxu1 %vm1720_vm2, %v11956_v21 }
 0x19d   : > { %9677 = vmatmul.mubr.msk.f32.vlgmr.msra.gmra.mrb[36].mxu0 %vm1720_vm2, %v11956_v21  ;;  %v10592_v57 = vpack.c.bf16 %v2189_v51, %v2188_v56  ;;  %v2190_v36 = vmul.f32 %v1710_v19, %v11938_v15  ;;  %v2191_v11 = vmul.f32 %v1711_v35, %v11933_v16  ;;  %10569 = vmatpush3.bf16.msra.mxu1 %v10568_v34  ;;  %v13491_v47 = vmov 0.0  }
 0x19e   : > { %10575 = vmatpush3.bf16.msra.mxu0 %v10574_v3  ;;  %v10598_v55 = vpack.c.bf16 %v2267_v60, %v2266_v13  ;;  %v2268_v61 = vmul.f32 %v1710_v19, %v11961_v6  ;;  %v2269_v23 = vmul.f32 %v1711_v35, %v11951_v12  ;;  %10570 = vmatprep.subr.bf16.mxu1 %v13487_v5  ;;  %v12016_v19 = vld [vmem:[%s13280_s9] sm:$0xff]  ;;  %v12021_v3 = vld [vmem:[%s13280_s9 + $0x10] sm:$0xff] }
 0x19f   : > { %10576 = vmatprep.subr.bf16.mxu0 %v13487_v5  ;;  %v10595_v62 = vpack.c.bf16 %v2191_v11, %v2190_v36  ;;  %9687 = vmatprep.mubr.msk.f32.mxu1 %vm11157_vm1, %v13491_v47 }
 0x1a0   : > { %9698 = vmatprep.mubr.msk.f32.mxu0 %vm11157_vm1, %v13491_v47  ;;  %v10601_v50 = vpack.c.bf16 %v2269_v23, %v2268_v61 }
 0x1a1   : > { %10572 = vmatpush3.bf16.msra.mxu1 %v10571_v14 }
 0x1a2   : > { %10578 = vmatpush3.bf16.msra.mxu0 %v10577_v17  ;;  %10579 = vmatprep.subr.bf16.mxu1 %v13487_v5 }
 0x1a3   : > { %10585 = vmatprep.subr.bf16.mxu0 %v13487_v5 }
 0x1a4   : > { %9688 = vmatmul.mubr.msk.f32.vlgmr.msra.gmra.mrb[34].mxu1 %vm1720_vm2, %v11956_v21 }
 0x1a5   : > { %9699 = vmatmul.mubr.msk.f32.vlgmr.msra.gmra.mrb[38].mxu0 %vm1720_vm2, %v11956_v21  ;;  %10581 = vmatpush3.bf16.msra.mxu1 %v10580_v40 }
 0x1a6   : > { %10587 = vmatpush3.bf16.msra.mxu0 %v10586_v54  ;;  %10582 = vmatprep.subr.bf16.mxu1 %v13487_v5 }
 0x1a7   : > { %10588 = vmatprep.subr.bf16.mxu0 %v13487_v5  ;;  %9709 = vmatprep.mubr.msk.f32.mxu1 %vm11157_vm1, %v13491_v47 }
 0x1a8   : > { %9720 = vmatprep.mubr.msk.f32.mxu0 %vm11157_vm1, %v13491_v47 }
 0x1a9   : > { %10584 = vmatpush3.bf16.msra.mxu1 %v10583_v20 }
 0x1aa   : > { %10590 = vmatpush3.bf16.msra.mxu0 %v10589_v52  ;;  %10591 = vmatprep.subr.bf16.mxu1 %v13487_v5 }
 0x1ab   : > { %10597 = vmatprep.subr.bf16.mxu0 %v13487_v5 }
 0x1ac   : > { %9710 = vmatmul.mubr.msk.f32.vlgmr.msra.gmra.mrb[36].mxu1 %vm1720_vm2, %v11956_v21 }
 0x1ad   : > { %9721 = vmatmul.mubr.msk.f32.vlgmr.msra.gmra.mrb[40].mxu0 %vm1720_vm2, %v11956_v21  ;;  %10593 = vmatpush3.bf16.msra.mxu1 %v10592_v57 }
 0x1ae   : > { %10599 = vmatpush3.bf16.msra.mxu0 %v10598_v55  ;;  %10594 = vmatprep.subr.bf16.mxu1 %v13487_v5 }
 0x1af   : > { %10600 = vmatprep.subr.bf16.mxu0 %v13487_v5  ;;  %9731 = vmatprep.mubr.msk.f32.mxu1 %vm11157_vm1, %v13491_v47 }
 0x1b0   : > { %9742 = vmatprep.mubr.msk.f32.mxu0 %vm11157_vm1, %v13491_v47 }
 0x1b1   : > { %10596 = vmatpush3.bf16.msra.mxu1 %v10595_v62 }
 0x1b2   : > { %10602 = vmatpush3.bf16.msra.mxu0 %v10601_v50 }
 0x1b4   : > { %9732 = vmatmul.mubr.msk.f32.vlgmr.msra.gmra.mrb[38].mxu1 %vm1720_vm2, %v11956_v21 }
 0x1b5   : > { %9743 = vmatmul.mubr.msk.f32.vlgmr.msra.gmra.mrb[42].mxu0 %vm1720_vm2, %v11956_v21  ;;  %9750 = vmatprep.mubr.msk.f32.mxu1 %vm2380_vm3, %v12021_v3 }
 0x1b6   : > { %9747 = vmatprep.mubr.msk.f32.mxu0 %vm2380_vm3, %v12016_v19 }
 0x26f   : > { %v1790_v35 = vpop.f32.mrb[32].mxu1 }
 0x270   : > { %v1868_v34 = vpop.f32.mrb[36].mxu0  ;;  %v9667_v14 = vpop.f32.mrb[33].mxu1 }
 0x271   : > { %v2340_v17 = vmax.f32 %v1790_v35, %v1868_v34  ;;  %v9678_v40 = vpop.f32.mrb[37].mxu0 }
 0x277   : > { %v1946_v22 = vpop.f32.mrb[34].mxu1 }
 0x278   : > { %v2024_v54 = vpop.f32.mrb[38].mxu0  ;;  %v2341_v56 = vmax.f32 %v2340_v17, %v1946_v22  ;;  %v9689_v51 = vpop.f32.mrb[35].mxu1 }
 0x279   : > { %v9700_v20 = vpop.f32.mrb[39].mxu0 }
 0x27a   : > { %v2342_v52 = vmax.f32 %v2341_v56, %v2024_v54 }
 0x27f   : > { %v2102_v13 = vpop.f32.mrb[36].mxu1 }
 0x280   : > { %v2180_v60 = vpop.f32.mrb[40].mxu0  ;;  %v2343_v57 = vmax.f32 %v2342_v52, %v2102_v13  ;;  %v9711_v36 = vpop.f32.mrb[37].mxu1 }
 0x281   : > { %v9722_v11 = vpop.f32.mrb[41].mxu0 }
 0x282   : > { %v2344_v55 = vmax.f32 %v2343_v57, %v2180_v60 }
 0x287   : > { %v2258_v61 = vpop.f32.mrb[38].mxu1 }
 0x288   : > { %v2336_v23 = vpop.f32.mrb[42].mxu0  ;;  %v2345_v62 = vmax.f32 %v2344_v55, %v2258_v61  ;;  %v9733_v50 = vpop.f32.mrb[39].mxu1 }
 0x289   : > { %v9744_v12 = vpop.f32.mrb[43].mxu0 }
 0x28a   : > { %v2346_v14 = vmax.f32 %v2345_v62, %v2336_v23 }
 0x28c   : > { %v2347_v6 = vsub.f32 %v1790_v35, %v2346_v14  ;;  %v2350_v40 = vsub.f32 %v1868_v34, %v2346_v14  ;;  %v2353_v16 = vsub.f32 %v1946_v22, %v2346_v14  ;;  %v2356_v15 = vsub.f32 %v2024_v54, %v2346_v14 }
 0x28d   : > { %v2359_v17 = vsub.f32 %v2102_v13, %v2346_v14  ;;  %v2362_v51 = vsub.f32 %v2180_v60, %v2346_v14  ;;  %v2365_v20 = vsub.f32 %v2258_v61, %v2346_v14  ;;  %v2368_v56 = vsub.f32 %v2336_v23, %v2346_v14 }
 0x28e   : > { %v2348_v21 = vmul.f32 1.442695, %v2347_v6  ;;  %v2351_v42 = vmul.f32 1.442695, %v2350_v40  ;;  %v2354_v52 = vmul.f32 1.442695, %v2353_v16 }
 0x28f   : > { %v2357_v57 = vmul.f32 1.442695, %v2356_v15  ;;  %v2360_v36 = vmul.f32 1.442695, %v2359_v17  ;;  %v2363_v11 = vmul.f32 1.442695, %v2362_v51 }
 0x290   : > { %10912 = vpow2.f32 %v2348_v21  ;;  %v2366_v12 = vmul.f32 1.442695, %v2365_v20  ;;  %v2369_v35 = vmul.f32 1.442695, %v2368_v56  ;;  %v12030_v56 = vld [vmem:[%s13280_s9 + $0x8] sm:$0xff] }
 0x291   : > { %10914 = vpow2.f32 %v2351_v42 }
 0x292   : > { %10916 = vpow2.f32 %v2354_v52  ;;  %v12035_v52 = vld [vmem:[%s13280_s9 + $0x18] sm:$0xff] }
 0x293   : > { %10918 = vpow2.f32 %v2357_v57 }
 0x294   : > { %10920 = vpow2.f32 %v2360_v36 }
 0x295   : > { %10922 = vpow2.f32 %v2363_v11 }
 0x296   : > { %10924 = vpow2.f32 %v2366_v12 }
 0x297   : > { %10926 = vpow2.f32 %v2369_v35  ;;  %v8656_v35 = vld [vmem:[%s13271_s0 + $0x40] sm:$0xff] }
 0x29a   : > { %v10913_v34 = vpop.eup %10912 }
 0x29b   : > { %v10915_v22 = vpop.eup %10914 }
 0x29c   : > { %v2371_v54 = vadd.f32 %v10915_v22, %v10913_v34  ;;  %v10917_v13 = vpop.eup %10916 }
 0x29d   : > { %v10919_v60 = vpop.eup %10918 }
 0x29e   : > { %v2372_v6 = vadd.f32 %v10917_v13, %v2371_v54  ;;  %v10921_v21 = vpop.eup %10920  ;;  %v8658_v54 = vld [vmem:[%s13271_s0 + $0x50] sm:$0xff] }
 0x29f   : > { %v10923_v15 = vpop.eup %10922 }
 0x2a0   : > { %v2373_v16 = vadd.f32 %v10919_v60, %v2372_v6  ;;  %v10925_v61 = vpop.eup %10924 }
 0x2a1   : > { %v10927_v62 = vpop.eup %10926 }
 0x2a2   : > { %v2374_v42 = vadd.f32 %v10921_v21, %v2373_v16  ;;  %v8661_v16 = vld [vmem:[%s13271_s0 + $0x68] sm:$0xff] }
 0x2a4   : > { %v2375_v55 = vadd.f32 %v10923_v15, %v2374_v42  ;;  %v8662_v42 = vld [vmem:[%s13271_s0 + $0x70] sm:$0xff] }
 0x2a6   : > { %v2376_v23 = vadd.f32 %v10925_v61, %v2375_v55 }
 0x2a8   : > { %v2377_v50 = vadd.f32 %v10927_v62, %v2376_v23 }
 0x2aa   : > { %10928 = vrcp.f32 %v2377_v50 }
 0x2b4   : > { %v10929_v14 = vpop.eup %10928 }
 0x2b5   : > { %v2379_v40 = vmul.f32 %v10929_v14, %v10913_v34  ;;  %v2486_v17 = vmul.f32 %v10929_v14, %v10915_v22  ;;  %v2584_v51 = vmul.f32 %v10929_v14, %v10917_v13  ;;  %v2682_v20 = vmul.f32 %v10929_v14, %v10919_v60  ;;  %v8657_v34 = vld [vmem:[%s13271_s0 + $0x48] sm:$0xff]  ;;  %v8659_v13 = vld [vmem:[%s13271_s0 + $0x58] sm:$0xff]  ;;  %v8660_v60 = vld [vmem:[%s13271_s0 + $0x60] sm:$0xff] }
 0x2b6   : > { %v2780_v57 = vmul.f32 %v10929_v14, %v10921_v21  ;;  %v2878_v36 = vmul.f32 %v10929_v14, %v10923_v15  ;;  %v2976_v11 = vmul.f32 %v10929_v14, %v10925_v61  ;;  %v3074_v12 = vmul.f32 %v10929_v14, %v10927_v62  ;;  %v8663_v15 = vld [vmem:[%s13271_s0 + $0x78] sm:$0xff] }
 0x2b7   : > { %9745 = vmatprep.subr.mxu0 %v2379_v40  ;;  %10827 = vmatprep.subr.mxu1 %v2379_v40  ;;  %v10611_v22 = vpack.c.bf16 %v8657_v34, %v8656_v35  ;;  %v10615_v6 = vpack.c.bf16 %v8659_v13, %v8658_v54  ;;  %v10619_v21 = vpack.c.bf16 %v8661_v16, %v8660_v60  ;;  %v13497_v35 = vld [vmem:[#allocation17_spill] sm:$0xff] }
 0x2b8   : > { %9746 = vmatpush3.msra.mxu0 %v2379_v40  ;;  %10828 = vmatpush3.msra.mxu1 %v2379_v40  ;;  %v10623_v55 = vpack.c.bf16 %v8663_v15, %v8662_v42 }
 0x2b9   : > { %9748 = vmatmul.mubr.msk.f32.vlgmr.msra.gmra.mrb[44].mxu0 %vm2380_vm3, %v12030_v56  ;;  %9751 = vmatmul.mubr.msk.f32.vlgmr.msra.gmra.mrb[40].mxu1 %vm2380_vm3, %v12035_v52 }
 0x2ba   : > { %9753 = vmatprep.subr.mxu0 %v2486_v17  ;;  %9761 = vmatprep.subr.mxu1 %v2584_v51 }
 0x2bb   : > { %9754 = vmatpush3.msra.mxu0 %v2486_v17  ;;  %9762 = vmatpush3.msra.mxu1 %v2584_v51 }
 0x2bc   : > { %9769 = vmatprep.subr.mxu0 %v2682_v20  ;;  %9777 = vmatprep.subr.mxu1 %v2780_v57 }
 0x2bd   : > { %9755 = vmatprep.mubr.msk.f32.mxu0 %vm2380_vm3, %v12016_v19  ;;  %9763 = vmatprep.mubr.msk.f32.mxu1 %vm2380_vm3, %v12016_v19 }
 0x2be   : > { %9756 = vmatmul.mubr.msk.f32.vlgmr.msra.gmra.mrb[46].mxu0 %vm2380_vm3, %v12030_v56  ;;  %9764 = vmatmul.mubr.msk.f32.vlgmr.msra.gmra.mrb[42].mxu1 %vm2380_vm3, %v12030_v56 }
 0x2bf   : > { %9770 = vmatpush3.msra.mxu0 %v2682_v20  ;;  %9778 = vmatpush3.msra.mxu1 %v2780_v57 }
 0x2c0   : > { %9785 = vmatprep.subr.mxu0 %v2878_v36  ;;  %9793 = vmatprep.subr.mxu1 %v2976_v11 }
 0x2c1   : > { %9758 = vmatprep.mubr.msk.f32.mxu0 %vm2380_vm3, %v12021_v3  ;;  %9766 = vmatprep.mubr.msk.f32.mxu1 %vm2380_vm3, %v12021_v3 }
 0x2c2   : > { %9759 = vmatmul.mubr.msk.f32.gmra.mrb[48].mxu0 %vm2380_vm3, %v12035_v52  ;;  %9767 = vmatmul.mubr.msk.f32.gmra.mrb[44].mxu1 %vm2380_vm3, %v12035_v52 }
 0x2c3   : > { %9771 = vmatprep.mubr.msk.f32.mxu0 %vm2380_vm3, %v12016_v19  ;;  %9779 = vmatprep.mubr.msk.f32.mxu1 %vm2380_vm3, %v12016_v19 }
 0x2c6   : > { %9772 = vmatmul.mubr.msk.f32.vlgmr.msra.gmra.mrb[50].mxu0 %vm2380_vm3, %v12030_v56  ;;  %9780 = vmatmul.mubr.msk.f32.vlgmr.msra.gmra.mrb[46].mxu1 %vm2380_vm3, %v12030_v56 }
 0x2c7   : > { %9786 = vmatpush3.msra.mxu0 %v2878_v36  ;;  %9794 = vmatpush3.msra.mxu1 %v2976_v11 }
 0x2c8   : > { %9801 = vmatprep.subr.mxu0 %v3074_v12  ;;  %9774 = vmatprep.mubr.msk.f32.mxu0 %vm2380_vm3, %v12021_v3 }
 0x2c9   : > { %9782 = vmatprep.mubr.msk.f32.mxu1 %vm2380_vm3, %v12021_v3 }
 0x2ca   : > { %9775 = vmatmul.mubr.msk.f32.gmra.mrb[52].mxu0 %vm2380_vm3, %v12035_v52  ;;  %9783 = vmatmul.mubr.msk.f32.gmra.mrb[48].mxu1 %vm2380_vm3, %v12035_v52 }
 0x2cb   : > { %9787 = vmatprep.mubr.msk.f32.mxu0 %vm2380_vm3, %v12016_v19  ;;  %9795 = vmatprep.mubr.msk.f32.mxu1 %vm2380_vm3, %v12016_v19 }
 0x2ce   : > { %9788 = vmatmul.mubr.msk.f32.vlgmr.msra.gmra.mrb[54].mxu0 %vm2380_vm3, %v12030_v56  ;;  %9796 = vmatmul.mubr.msk.f32.vlgmr.msra.gmra.mrb[50].mxu1 %vm2380_vm3, %v12030_v56 }
 0x2cf   : > { %9802 = vmatpush3.msra.mxu0 %v3074_v12  ;;  %9790 = vmatprep.mubr.msk.f32.mxu0 %vm2380_vm3, %v12021_v3  ;;  %v13496_v12 = vld [vmem:[#allocation16_spill] sm:$0xff] }
 0x2d0   : > { %9798 = vmatprep.mubr.msk.f32.mxu1 %vm2380_vm3, %v12021_v3  ;;  %10612 = vmatprep.subr.bf16.mxu0 %v10611_v22 }
 0x2d2   : > { %9791 = vmatmul.mubr.msk.f32.gmra.mrb[56].mxu0 %vm2380_vm3, %v12035_v52  ;;  %9799 = vmatmul.mubr.msk.f32.gmra.mrb[52].mxu1 %vm2380_vm3, %v12035_v52 }
 0x2d3   : > { %9803 = vmatprep.mubr.msk.f32.mxu0 %vm2380_vm3, %v12016_v19 }
 0x2d6   : > { %9804 = vmatmul.mubr.msk.f32.vlgmr.msra.gmra.mrb[58].mxu0 %vm2380_vm3, %v12030_v56 }
 0x2d7   : > { %10614 = vmatpush3.bf16.msra.mxu0 %v10611_v22  ;;  %9806 = vmatprep.mubr.msk.f32.mxu0 %vm2380_vm3, %v12021_v3  ;;  %v12139_v3 = vpop.permute.xlu1 %507 }
 0x2d8   : > { %10616 = vmatprep.subr.bf16.mxu0 %v10615_v6  ;;  %v637_v62 = vadd.f32 %v11717_v24, %v12139_v3 }
 0x2da   : > { %9807 = vmatmul.mubr.msk.f32.gmra.mrb[60].mxu0 %vm2380_vm3, %v12035_v52  ;;  %v12171_v11 = vmax.f32 %v637_v62, 0.0 }
 0x2db   : > { %10618 = vmatpush3.bf16.msra.mxu0 %v10615_v6  ;;  %9845 = vmatprep.mubr.msk.f32.mxu0 %vm520_vm0, %v11641_v45  ;;  %v12135_v45 = vld [vmem:[%s13277_s6] sm:$0xff]  ;;  %v12143_v61 = vpop.permute.xlu1 %517 }
 0x2dc   : > { %10620 = vmatprep.subr.bf16.mxu0 %v10619_v21  ;;  %9817 = vmatprep.mubr.msk.f32.mxu1 %vm1720_vm2, %v12135_v45  ;;  %v777_v17 = vadd.f32 %v11729_v30, %v12143_v61  ;;  %v647_v51 = vadd.f32 %v11725_v28, %v12143_v61  ;;  %13494 = vst [vmem:[#allocation64_spill] sm:$0xff] %v12171_v11 }
 0x2de   : > { %v12179_v34 = vmax.f32 %v777_v17, 0.0 }
 0x2df   : > { %10622 = vmatpush3.bf16.msra.mxu0 %v10619_v21 }
 0x2e0   : > { %10624 = vmatprep.subr.bf16.mxu0 %v10623_v55  ;;  %13498 = vst [vmem:[#allocation16_spill] sm:$0xff] %v12179_v34 }
 0x2e3   : > { %10626 = vmatpush3.bf16.msra.mxu0 %v10623_v55 }
 0x2e4   : > { %10633 = vmatprep.subr.bf16.mxu0 %v13487_v5 }
 0x2e6   : > { %9846 = vmatmul.mubr.msk.f32.vlgmr.msra.gmra.mrb[62].mxu0 %vm520_vm0, %v11653_v53  ;;  %v12141_v53 = vpop.permute.xlu0 %502 }
 0x2e7   : > { %9848 = vmatprep.mubr.msk.f32.mxu0 %vm520_vm0, %v11663_v1  ;;  %v762_v23 = vadd.f32 %v11723_v27, %v12141_v53  ;;  %v632_v40 = vadd.f32 %v11719_v25, %v12141_v53  ;;  %v893_v24 = vadd.f32 %v11741_v44, %v12141_v53  ;;  %v12181_v44 = vmax.f32 %v647_v51, 0.0 }
 0x2e9   : > { %v12169_v30 = vmax.f32 %v762_v23, 0.0  ;;  %v12173_v28 = vmax.f32 %v632_v40, 0.0  ;;  %13499 = vst [vmem:[#allocation17_spill] sm:$0xff] %v12181_v44  ;;  %v12189_v42 = vmax.f32 %v893_v24, 0.0  ;;  %v13504_v23 = vld [vmem:[#allocation14_spill] sm:$0xff]  ;;  %v13505_v40 = vld [vmem:[#allocation15_spill] sm:$0xff] }
 0x2ea   : > { %9849 = vmatmul.mubr.msk.f32.gmra.mrb[64].mxu0 %vm520_vm0, %v11675_v2  ;;  %v12145_v1 = vpop.permute.xlu0 %512  ;;  %v767_v2 = vadd.f32 %v11721_v26, %v12139_v3  ;;  %v898_v26 = vadd.f32 %v11739_v43, %v12139_v3  ;;  %v908_v43 = vadd.f32 %v13496_v12, %v12143_v61  ;;  %v1029_v62 = vadd.f32 %v13504_v23, %v12139_v3 }
 0x2eb   : > { %9870 = vmatprep.mubr.msk.f32.mxu0 %vm11157_vm1, %v13491_v47  ;;  %v642_v27 = vadd.f32 %v11727_v29, %v12145_v1  ;;  %v772_v25 = vadd.f32 %v11731_v31, %v12145_v1  ;;  %13493 = vst [vmem:[#allocation63_spill] sm:$0xff] %v12169_v30  ;;  %13495 = vst [vmem:[#allocation65_spill] sm:$0xff] %v12173_v28  ;;  %v903_v29 = vadd.f32 %v13497_v35, %v12145_v1  ;;  %v13508_v35 = vld [vmem:[#allocation21_spill] sm:$0xff] }
 0x2ec   : > { %v12167_v36 = vmax.f32 %v767_v2, 0.0  ;;  %v12183_v54 = vmax.f32 %v898_v26, 0.0  ;;  %13502 = vst [vmem:[#allocation68_spill] sm:$0xff] %v12189_v42  ;;  %v12200_v26 = vmax.f32 %v908_v43, 0.0  ;;  %v13509_v43 = vld [vmem:[#allocation22_spill] sm:$0xff] }
 0x2ed   : > { %v12186_v6 = vmax.f32 %v642_v27, 0.0  ;;  %v12191_v15 = vmax.f32 %v772_v25, 0.0  ;;  %v12202_v27 = vmax.f32 %v903_v29, 0.0 }
 0x2ee   : > { %13492 = vst [vmem:[#allocation62_spill] sm:$0xff] %v12167_v36  ;;  %13500 = vst [vmem:[#allocation66_spill] sm:$0xff] %v12183_v54 }
 0x2ef   : > { %13501 = vst [vmem:[#allocation67_spill] sm:$0xff] %v12186_v6  ;;  %13503 = vst [vmem:[#allocation69_spill] sm:$0xff] %v12191_v15 }
 0x2f0   : > { %13506 = vst [vmem:[#allocation14_spill] sm:$0xff] %v12200_v26  ;;  %13507 = vst [vmem:[#allocation15_spill] sm:$0xff] %v12202_v27 }
 0x38c   : > { %v9749_v50 = vpop.f32.mrb[44].mxu0  ;;  %v9752_v14 = vpop.f32.mrb[40].mxu1 }
 0x38d   : > { %v2459_v20 = vpop.f32.mrb[45].mxu0  ;;  %v2469_v57 = vpop.f32.mrb[41].mxu1  ;;  %v2483_v13 = vmul.f32 %v9749_v50, %v12171_v11  ;;  %v1024_v50 = vadd.f32 %v13505_v40, %v12141_v53 }
 0x38e   : > { %v2482_v55 = vmul.f32 %v2459_v20, %v12173_v28  ;;  %v2484_v29 = vmul.f32 %v2469_v57, %v12186_v6 }
 0x391   : > { %v9757_v22 = vpop.f32.mrb[46].mxu0  ;;  %v9765_v31 = vpop.f32.mrb[42].mxu1 }
 0x392   : > { %v2577_v60 = vmul.f32 %v9757_v22, %v12167_v36  ;;  %v2553_v16 = vpop.f32.mrb[47].mxu0  ;;  %v2651_v21 = vpop.f32.mrb[43].mxu1  ;;  %v2675_v51 = vmul.f32 %v9765_v31, %v12183_v54  ;;  %v1160_v22 = vadd.f32 %v13508_v35, %v12139_v3  ;;  %v1155_v31 = vadd.f32 %v13509_v43, %v12141_v53 }
 0x393   : > { %v2576_v2 = vmul.f32 %v2553_v16, %v12169_v30  ;;  %v2674_v25 = vmul.f32 %v2651_v21, %v12189_v42  ;;  %v2485_v16 = vmul.f32 %v9752_v14, %v12181_v44  ;;  %v13511_v42 = vld [vmem:[#allocation18_spill] sm:$0xff] }
 0x394   : > { %v2581_v17 = vadd.f32 %v2577_v60, %v2483_v13  ;;  %v1039_v35 = vadd.f32 %v13511_v42, %v12143_v61 }
 0x395   : > { %v2580_v24 = vadd.f32 %v2576_v2, %v2482_v55  ;;  %v9760_v12 = vpop.f32.mrb[48].mxu0  ;;  %v9768_v20 = vpop.f32.mrb[44].mxu1  ;;  %v12213_v2 = vmax.f32 %v1029_v62, 0.0  ;;  %v13515_v62 = vld [vmem:[#allocation25_spill] sm:$0xff] }
 0x396   : > { %v2679_v23 = vadd.f32 %v2675_v51, %v2581_v17  ;;  %v2579_v40 = vmul.f32 %v9760_v12, %v12179_v34  ;;  %v2563_v13 = vpop.f32.mrb[49].mxu0  ;;  %v2661_v60 = vpop.f32.mrb[45].mxu1  ;;  %v2677_v14 = vmul.f32 %v9768_v20, %v12200_v26  ;;  %v12218_v17 = vmax.f32 %v1024_v50, 0.0  ;;  %v13513_v51 = vld [vmem:[#allocation19_spill] sm:$0xff] }
 0x397   : > { %v2678_v55 = vadd.f32 %v2674_v25, %v2580_v24  ;;  %v2578_v21 = vmul.f32 %v2563_v13, %v12191_v15  ;;  %13510 = vst [vmem:[#allocation21_spill] sm:$0xff] %v12213_v2  ;;  %v1034_v12 = vadd.f32 %v13513_v51, %v12145_v1  ;;  %v2676_v43 = vmul.f32 %v2661_v60, %v12202_v27 }
 0x398   : > { %v2583_v54 = vadd.f32 %v2579_v40, %v2485_v16  ;;  %13512 = vst [vmem:[#allocation22_spill] sm:$0xff] %v12218_v17  ;;  %v12223_v25 = vmax.f32 %v1160_v22, 0.0  ;;  %v1170_v13 = vadd.f32 %v13515_v62, %v12143_v61  ;;  %v12228_v50 = vmax.f32 %v1155_v31, 0.0  ;;  %v13517_v40 = vld [vmem:[#allocation26_spill] sm:$0xff]  ;;  %v13519_v22 = vld [vmem:[#allocation23_spill] sm:$0xff] }
 0x399   : > { %v2582_v34 = vadd.f32 %v2578_v21, %v2484_v29  ;;  %v9773_v57 = vpop.f32.mrb[50].mxu0  ;;  %v9781_v24 = vpop.f32.mrb[46].mxu1  ;;  %v1165_v51 = vadd.f32 %v13517_v40, %v12145_v1  ;;  %v12233_v21 = vmax.f32 %v1039_v35, 0.0  ;;  %v1291_v27 = vadd.f32 %v13519_v22, %v12139_v3  ;;  %v13523_v35 = vld [vmem:[#allocation33_spill] sm:$0xff]  ;;  %v13525_v22 = vld [vmem:[#allocation35_spill] sm:$0xff] }
 0x39a   : > { %13514 = vst [vmem:[#allocation18_spill] sm:$0xff] %v12223_v25  ;;  %v2681_v15 = vadd.f32 %v2677_v14, %v2583_v54  ;;  %v2773_v42 = vmul.f32 %v9773_v57, %v12213_v2  ;;  %v2749_v16 = vpop.f32.mrb[51].mxu0  ;;  %v2847_v20 = vpop.f32.mrb[47].mxu1  ;;  %13516 = vst [vmem:[#allocation19_spill] sm:$0xff] %v12228_v50  ;;  %v2871_v54 = vmul.f32 %v9781_v24, %v12223_v25  ;;  %v12238_v14 = vmax.f32 %v1034_v12, 0.0  ;;  %v13521_v57 = vld [vmem:[#allocation24_spill] sm:$0xff] }
 0x39b   : > { %v2680_v29 = vadd.f32 %v2676_v43, %v2582_v34  ;;  %v2772_v60 = vmul.f32 %v2749_v16, %v12218_v17  ;;  %13518 = vst [vmem:[#allocation25_spill] sm:$0xff] %v12233_v21  ;;  %v1286_v31 = vadd.f32 %v13521_v57, %v12141_v53  ;;  %v2870_v2 = vmul.f32 %v2847_v20, %v12228_v50 }
 0x39c   : > { %v2777_v26 = vadd.f32 %v2773_v42, %v2679_v23  ;;  %13520 = vst [vmem:[#allocation26_spill] sm:$0xff] %v12238_v14  ;;  %v12243_v43 = vmax.f32 %v1170_v13, 0.0  ;;  %v1422_v16 = vadd.f32 %v13523_v35, %v12139_v3  ;;  %v12248_v12 = vmax.f32 %v1165_v51, 0.0  ;;  %v13527_v13 = vld [vmem:[#allocation27_spill] sm:$0xff] }
 0x39d   : > { %v2776_v62 = vadd.f32 %v2772_v60, %v2678_v55  ;;  %v9776_v40 = vpop.f32.mrb[52].mxu0  ;;  %v9784_v34 = vpop.f32.mrb[48].mxu1  ;;  %v1417_v57 = vadd.f32 %v13525_v22, %v12141_v53  ;;  %v12253_v60 = vmax.f32 %v1291_v27, 0.0  ;;  %v1301_v50 = vadd.f32 %v13527_v13, %v12143_v61  ;;  %v13530_v27 = vld [vmem:[#allocation42_spill] sm:$0xff]  ;;  %v13531_v13 = vld [vmem:[#allocation45_spill] sm:$0xff] }
 0x39e   : > { %13522 = vst [vmem:[#allocation23_spill] sm:$0xff] %v12243_v43  ;;  %v2875_v17 = vadd.f32 %v2871_v54, %v2777_v26  ;;  %v2775_v23 = vmul.f32 %v9776_v40, %v12233_v21  ;;  %v2759_v42 = vpop.f32.mrb[53].mxu0  ;;  %v2857_v24 = vpop.f32.mrb[49].mxu1  ;;  %13524 = vst [vmem:[#allocation24_spill] sm:$0xff] %v12248_v12  ;;  %v2873_v26 = vmul.f32 %v9784_v34, %v12243_v43  ;;  %v12258_v54 = vmax.f32 %v1286_v31, 0.0  ;;  %v13529_v40 = vld [vmem:[#allocation28_spill] sm:$0xff] }
 0x39f   : > { %v2874_v55 = vadd.f32 %v2870_v2, %v2776_v62  ;;  %v2774_v20 = vmul.f32 %v2759_v42, %v12238_v14  ;;  %13526 = vst [vmem:[#allocation33_spill] sm:$0xff] %v12253_v60  ;;  %v1296_v51 = vadd.f32 %v13529_v40, %v12145_v1  ;;  %v2872_v21 = vmul.f32 %v2857_v24, %v12248_v12 }
 0x3a0   : > { %v2779_v25 = vadd.f32 %v2775_v23, %v2681_v15  ;;  %13528 = vst [vmem:[#allocation35_spill] sm:$0xff] %v12258_v54  ;;  %v12263_v62 = vmax.f32 %v1422_v16, 0.0  ;;  %v1432_v42 = vadd.f32 %v13530_v27, %v12143_v61  ;;  %v12268_v31 = vmax.f32 %v1417_v57, 0.0  ;;  %v13532_v16 = vld [vmem:[#allocation34_spill] sm:$0xff] }
 0x3a1   : > { %v2778_v35 = vadd.f32 %v2774_v20, %v2680_v29  ;;  %v9789_v22 = vpop.f32.mrb[54].mxu0  ;;  %v9797_v2 = vpop.f32.mrb[50].mxu1  ;;  %v1427_v40 = vadd.f32 %v13531_v13, %v12145_v1  ;;  %v12273_v20 = vmax.f32 %v1301_v50, 0.0  ;;  %v1553_v12 = vadd.f32 %v13532_v16, %v12139_v3 }
 0x3a2   : > { %v2877_v14 = vadd.f32 %v2873_v26, %v2779_v25  ;;  %v2969_v15 = vmul.f32 %v9789_v22, %v12253_v60  ;;  %v2945_v23 = vpop.f32.mrb[55].mxu0  ;;  %v3043_v34 = vpop.f32.mrb[51].mxu1  ;;  %v3067_v25 = vmul.f32 %v9797_v2, %v12263_v62  ;;  %v12278_v26 = vmax.f32 %v1296_v51, 0.0  ;;  %v13533_v22 = vld [vmem:[#allocation39_spill] sm:$0xff] }
 0x3a3   : > { %v2876_v29 = vadd.f32 %v2872_v21, %v2778_v35  ;;  %v2968_v24 = vmul.f32 %v2945_v23, %v12258_v54  ;;  %v1548_v57 = vadd.f32 %v13533_v22, %v12141_v53  ;;  %v3066_v60 = vmul.f32 %v3043_v34, %v12268_v31  ;;  %v13534_v53 = vld [vmem:[#allocation44_spill] sm:$0xff] }
 0x3a4   : > { %v2973_v43 = vadd.f32 %v2969_v15, %v2875_v17  ;;  %v12283_v35 = vmax.f32 %v1432_v42, 0.0  ;;  %v12286_v17 = vmax.f32 %v1427_v40, 0.0  ;;  %v12289_v15 = vmax.f32 %v1553_v12, 0.0 }
 0x3a5   : > { %v2972_v27 = vadd.f32 %v2968_v24, %v2874_v55  ;;  %v9792_v13 = vpop.f32.mrb[56].mxu0  ;;  %v9800_v21 = vpop.f32.mrb[52].mxu1  ;;  %v1563_v55 = vadd.f32 %v13534_v53, %v12143_v61  ;;  %v12294_v42 = vmax.f32 %v1548_v57, 0.0 }
 0x3a6   : > { %v3071_v50 = vadd.f32 %v3067_v25, %v2973_v43  ;;  %v2971_v23 = vmul.f32 %v9792_v13, %v12273_v20  ;;  %v2955_v54 = vpop.f32.mrb[57].mxu0  ;;  %v3053_v3 = vpop.f32.mrb[53].mxu1  ;;  %v3069_v24 = vmul.f32 %v9800_v21, %v12283_v35  ;;  %v1558_v43 = vadd.f32 %v11866_v4, %v12145_v1 }
 0x3a7   : > { %v3070_v2 = vadd.f32 %v3066_v60, %v2972_v27  ;;  %v2970_v51 = vmul.f32 %v2955_v54, %v12278_v26  ;;  %v3068_v40 = vmul.f32 %v3053_v3, %v12286_v17  ;;  %v12301_v61 = vmax.f32 %v1563_v55, 0.0 }
 0x3a8   : > { %v2975_v34 = vadd.f32 %v2971_v23, %v2877_v14  ;;  %v12303_v13 = vmax.f32 %v1558_v43, 0.0  ;;  %v12326_v43 = vld [vmem:[%s13277_s6 + $0x18] sm:$0xff] }
 0x3a9   : > { %v2974_v16 = vadd.f32 %v2970_v51, %v2876_v29  ;;  %v9805_v25 = vpop.f32.mrb[58].mxu0  ;;  %13538 = vst [vmem:[#allocation45_spill] sm:$0xff] %v12326_v43 }
 0x3aa   : > { %v3073_v60 = vadd.f32 %v3069_v24, %v2975_v34  ;;  %v3165_v54 = vmul.f32 %v9805_v25, %v12289_v15  ;;  %v3141_v12 = vpop.f32.mrb[59].mxu0  ;;  %13535 = vst [vmem:[#allocation27_spill] sm:$0xff] %v12303_v13  ;;  %v12332_v25 = vld [vmem:[%s13277_s6 + $0x20] sm:$0xff] }
 0x3ab   : > { %v3072_v22 = vadd.f32 %v3068_v40, %v2974_v16  ;;  %v3164_v27 = vmul.f32 %v3141_v12, %v12294_v42  ;;  %v13539_v16 = vld [vmem:[#allocation20_spill] sm:$0xff]  ;;  %13540 = vst [vmem:[#allocation34_spill] sm:$0xff] %v12332_v25 }
 0x3ac   : > { %v3169_v14 = vadd.f32 %v3165_v54, %v3071_v50  ;;  %v12310_v50 = vld [vmem:[%s13277_s6 + $0x8] sm:$0xff] }
 0x3ad   : > { %v3168_v57 = vadd.f32 %v3164_v27, %v3070_v2  ;;  %v9808_v21 = vpop.f32.mrb[60].mxu0  ;;  %13536 = vst [vmem:[#allocation28_spill] sm:$0xff] %v12310_v50  ;;  %v12315_v2 = vld [vmem:[%s13277_s6 + $0x10] sm:$0xff] }
 0x3ae   : > { %v3167_v4 = vmul.f32 %v9808_v21, %v12301_v61  ;;  %v3151_v1 = vpop.f32.mrb[61].mxu0  ;;  %13537 = vst [vmem:[#allocation42_spill] sm:$0xff] %v12315_v2  ;;  %v13543_v21 = vld [vmem:[#allocation29_spill] sm:$0xff] }
 0x3af   : > { %v3166_v29 = vmul.f32 %v3151_v1, %v12303_v13  ;;  %v10603_v23 = vpack.c.bf16 %v3169_v14, %v3168_v57  ;;  %v12344_v57 = vld [vmem:[%s13277_s6 + $0x28] sm:$0xff] }
 0x3b0   : > { %v3171_v3 = vadd.f32 %v3167_v4, %v3073_v60  ;;  %13542 = vst [vmem:[#allocation39_spill] sm:$0xff] %v12344_v57  ;;  %v13544_v1 = vld [vmem:[#allocation31_spill] sm:$0xff] }
 0x3b1   : > { %v3170_v51 = vadd.f32 %v3166_v29, %v3072_v22  ;;  %10604 = vmatprep.subr.bf16.mxu1 %v10603_v23  ;;  %v13541_v22 = vld [vmem:[#allocation55_spill] sm:$0xff] }
 0x3b2   : > { %10606 = vmatpush3.bf16.msra.mxu1 %v10603_v23  ;;  %v13545_v23 = vld [vmem:[#allocation36_spill] sm:$0xff] }
 0x3b3   : > { %v10607_v53 = vpack.c.bf16 %v3171_v3, %v3170_v51  ;;  %v13546_v51 = vld [vmem:[#allocation56_spill] sm:$0xff] }
 0x3b5   : > { %10608 = vmatprep.subr.bf16.mxu1 %v10607_v53 }
 0x3b6   : > { %10610 = vmatpush3.bf16.msra.mxu1 %v10607_v53 }
 0x3b7   : > { %10627 = vmatprep.subr.bf16.mxu1 %v13487_v5 }
 0x3b9   : > { %v9847_v55 = vpop.f32.mrb[62].mxu0  ;;  %9818 = vmatmul.mubr.msk.f32.vlgmr.msra.gmra.mrb[54].mxu1 %vm1720_vm2, %v12310_v50 }
 0x3ba   : > { %v3438_v34 = vadd.f32 %v9847_v55, %v11775_v0  ;;  %v3432_v24 = vpop.f32.mrb[63].mxu0  ;;  %9820 = vmatprep.mubr.msk.f32.mxu1 %vm1720_vm2, %v12315_v2  ;;  %v13547_v55 = vld [vmem:[#allocation30_spill] sm:$0xff] }
 0x3bb   : > { %v3433_v40 = vadd.f32 %v3432_v24, %v13539_v16  ;;  %v13548_v24 = vld [vmem:[#allocation32_spill] sm:$0xff] }
 0x3bc   : > { %v12334_v60 = vmax.f32 %v3438_v34, 0.0 }
 0x3bd   : > { %v3451_v54 = vmax.f32 %v3433_v40, 0.0  ;;  %v9850_v12 = vpop.f32.mrb[64].mxu0  ;;  %9821 = vmatmul.mubr.msk.f32.gmra.mrb[56].mxu1 %vm1720_vm2, %v12326_v43 }
 0x3be   : > { %v3448_v27 = vadd.f32 %v9850_v12, %v13541_v22  ;;  %v3442_v14 = vpop.f32.mrb[65].mxu0  ;;  %9823 = vmatprep.mubr.msk.f32.mxu1 %vm1720_vm2, %v12332_v25  ;;  %v3460_v4 = vmul.f32 %v12334_v60, %v13543_v21  ;;  %v3538_v29 = vmul.f32 %v12334_v60, %v13544_v1  ;;  %v3616_v3 = vmul.f32 %v12334_v60, %v13545_v23  ;;  %v12358_v12 = vld [vmem:[%s13277_s6 + $0x30] sm:$0xff]  ;;  %v13550_v25 = vld [vmem:[#allocation37_spill] sm:$0xff] }
 0x3bf   : > { %v3443_v53 = vadd.f32 %v3442_v14, %v13546_v51  ;;  %v3459_v34 = vmul.f32 %v3451_v54, %v13547_v55  ;;  %v3537_v40 = vmul.f32 %v3451_v54, %v13548_v24  ;;  %13549 = vst [vmem:[#allocation44_spill] sm:$0xff] %v12358_v12  ;;  %v3615_v43 = vmul.f32 %v3451_v54, %v13550_v25  ;;  %v13551_v1 = vld [vmem:[#allocation40_spill] sm:$0xff] }
 0x3c0   : > { %v3454_v21 = vmax.f32 %v3448_v27, 0.0  ;;  %v3693_v22 = vmul.f32 %v3451_v54, %v11839_v38  ;;  %v3694_v2 = vmul.f32 %v12334_v60, %v13551_v1  ;;  %v13552_v23 = vld [vmem:[#allocation48_spill] sm:$0xff]  ;;  %v12374_v27 = vld [vmem:[%s13277_s6 + $0x38] sm:$0xff] }
 0x3c1   : > { %v12365_v50 = vmul.f32 %v3451_v54, %v13552_v23  ;;  %v3453_v14 = vmax.f32 %v3443_v53, 0.0  ;;  %9824 = vmatmul.mubr.msk.f32.gmra.mrb[58].mxu1 %vm1720_vm2, %v12344_v57  ;;  %v10628_v24 = vpack.c.bf16 %v3460_v4, %v3459_v34  ;;  %v10634_v55 = vpack.c.bf16 %v3538_v29, %v3537_v40  ;;  %13553 = vst [vmem:[#allocation70_spill] sm:$0xff] %v12374_v27 }
 0x3c2   : > { %v10640_v51 = vpack.c.bf16 %v3616_v3, %v3615_v43  ;;  %9826 = vmatprep.mubr.msk.f32.mxu1 %vm1720_vm2, %v12358_v12  ;;  %v3462_v25 = vmul.f32 %v3454_v21, %v11816_v32  ;;  %v3540_v23 = vmul.f32 %v3454_v21, %v11821_v49  ;;  %v10646_v38 = vpack.c.bf16 %v3694_v2, %v3693_v22  ;;  %v13554_v43 = vld [vmem:[#allocation38_spill] sm:$0xff] }
 0x3c3   : > { %v3618_v53 = vmul.f32 %v3454_v21, %v11849_v46  ;;  %10629 = vmatpush3.bf16.msra.mxu1 %v10628_v24  ;;  %10635 = vmatpush3.bf16.msra.mxu0 %v10634_v55  ;;  %v3461_v4 = vmul.f32 %v3453_v14, %v11818_v33  ;;  %v3539_v29 = vmul.f32 %v3453_v14, %v13554_v43  ;;  %v13555_v3 = vld [vmem:[#allocation46_spill] sm:$0xff] }
 0x3c4   : > { %v3617_v34 = vmul.f32 %v3453_v14, %v13555_v3  ;;  %10630 = vmatprep.subr.bf16.mxu1 %v13487_v5  ;;  %10636 = vmatprep.subr.bf16.mxu0 %v13487_v5  ;;  %v3695_v40 = vmul.f32 %v3453_v14, %v11870_v59  ;;  %v3696_v12 = vmul.f32 %v3454_v21, %v11868_v18 }
 0x3c5   : > { %v3772_v2 = vmul.f32 %v12334_v60, %v11873_v41  ;;  %9827 = vmatmul.mubr.msk.f32.gmra.mrb[60].mxu1 %vm1720_vm2, %v12374_v27  ;;  %v10631_v22 = vpack.c.bf16 %v3462_v25, %v3461_v4  ;;  %v10637_v55 = vpack.c.bf16 %v3540_v23, %v3539_v29  ;;  %v3849_v46 = vmul.f32 %v3451_v54, %v11879_v48 }
 0x3c6   : > { %v10643_v24 = vpack.c.bf16 %v3618_v53, %v3617_v34  ;;  %9859 = vmatprep.mubr.msk.f32.mxu1 %vm11157_vm1, %v13491_v47  ;;  %v10649_v3 = vpack.c.bf16 %v3696_v12, %v3695_v40  ;;  %v3850_v59 = vmul.f32 %v12334_v60, %v11877_v63  ;;  %v3773_v43 = vmul.f32 %v3453_v14, %v11883_v8  ;;  %v13556_v40 = vld [vmem:[#allocation54_spill] sm:$0xff] }
 0x3c7   : > { %v10652_v57 = vpack.c.bf16 %v3772_v2, %v12365_v50  ;;  %10632 = vmatpush3.bf16.msra.mxu1 %v10631_v22  ;;  %10638 = vmatpush3.bf16.msra.mxu0 %v10637_v55  ;;  %v3774_v27 = vmul.f32 %v3454_v21, %v11881_v7  ;;  %v3851_v25 = vmul.f32 %v3453_v14, %v11888_v9  ;;  %v13557_v22 = vld [vmem:[#allocation60_spill] sm:$0xff] }
 0x3c8   : > { %v3852_v23 = vmul.f32 %v3454_v21, %v11885_v58  ;;  %10639 = vmatprep.subr.bf16.mxu1 %v13487_v5  ;;  %10645 = vmatprep.subr.bf16.mxu0 %v13487_v5  ;;  %v10658_v12 = vpack.c.bf16 %v3850_v59, %v3849_v46  ;;  %v3927_v50 = vmul.f32 %v3451_v54, %v11892_v10  ;;  %v13558_v46 = vld [vmem:[#allocation58_spill] sm:$0xff]  ;;  %v13559_v10 = vld [vmem:[#allocation57_spill] sm:$0xff] }
 0x3c9   : > { %v3928_v53 = vmul.f32 %v12334_v60, %v11890_v37  ;;  %v10655_v4 = vpack.c.bf16 %v3774_v27, %v3773_v43  ;;  %v4005_v34 = vmul.f32 %v3451_v54, %v11899_v39  ;;  %v4006_v2 = vmul.f32 %v12334_v60, %v13556_v40  ;;  %v13560_v43 = vld [vmem:[#allocation61_spill] sm:$0xff]  ;;  %v13561_v54 = vld [vmem:[#allocation59_spill] sm:$0xff] }
 0x3ca   : > { %v10661_v29 = vpack.c.bf16 %v3852_v23, %v3851_v25  ;;  %9860 = vmatmul.mubr.msk.f32.vlgmr.msra.gmra.mrb[62].mxu1 %vm1720_vm2, %v13557_v22  ;;  %9871 = vmatmul.mubr.msk.f32.vlgmr.msra.gmra.mrb[66].mxu0 %vm1720_vm2, %v13557_v22  ;;  %v3929_v59 = vmul.f32 %v3453_v14, %v13558_v46  ;;  %v3930_v7 = vmul.f32 %v3454_v21, %v13559_v10 }
 0x3cb   : > { %v10664_v55 = vpack.c.bf16 %v3928_v53, %v3927_v50  ;;  %10641 = vmatpush3.bf16.msra.mxu1 %v10640_v51  ;;  %10647 = vmatpush3.bf16.msra.mxu0 %v10646_v38  ;;  %v10670_v27 = vpack.c.bf16 %v4006_v2, %v4005_v34  ;;  %v4007_v25 = vmul.f32 %v3453_v14, %v13560_v43  ;;  %v12454_v38 = vpop.permute.xlu1 %3179 }
 0x3cc   : > { %v4008_v23 = vmul.f32 %v3454_v21, %v13561_v54  ;;  %10642 = vmatprep.subr.bf16.mxu1 %v13487_v5  ;;  %10648 = vmatprep.subr.bf16.mxu0 %v13487_v5  ;;  %v10667_v60 = vpack.c.bf16 %v3930_v7, %v3929_v59  ;;  %13562 = vst [vmem:[#allocation60_spill] sm:$0xff] %v12454_v38  ;;  %v12456_v7 = vpop.permute.xlu0 %3174 }
 0x3cd   : > { %9881 = vmatprep.mubr.msk.f32.mxu1 %vm11157_vm1, %v13491_v47  ;;  %9892 = vmatprep.mubr.msk.f32.mxu0 %vm11157_vm1, %v13491_v47  ;;  %13563 = vst [vmem:[#allocation71_spill] sm:$0xff] %v12456_v7 }
 0x3ce   : > { %v10673_v50 = vpack.c.bf16 %v4008_v23, %v4007_v25 }
 0x3cf   : > { %10644 = vmatpush3.bf16.msra.mxu1 %v10643_v24  ;;  %10650 = vmatpush3.bf16.msra.mxu0 %v10649_v3 }
 0x3d0   : > { %10651 = vmatprep.subr.bf16.mxu1 %v13487_v5  ;;  %10657 = vmatprep.subr.bf16.mxu0 %v13487_v5  ;;  %v12461_v51 = vpop.permute.xlu0 %3184 }
 0x3d1   : > { %13565 = vst [vmem:[#allocation73_spill] sm:$0xff] %v12461_v51 }
 0x3d2   : > { %9882 = vmatmul.mubr.msk.f32.vlgmr.msra.gmra.mrb[64].mxu1 %vm1720_vm2, %v13557_v22  ;;  %9893 = vmatmul.mubr.msk.f32.vlgmr.msra.gmra.mrb[68].mxu0 %vm1720_vm2, %v13557_v22 }
 0x3d3   : > { %10653 = vmatpush3.bf16.msra.mxu1 %v10652_v57  ;;  %10659 = vmatpush3.bf16.msra.mxu0 %v10658_v12  ;;  %v12459_v57 = vpop.permute.xlu1 %3189 }
 0x3d4   : > { %10654 = vmatprep.subr.bf16.mxu1 %v13487_v5  ;;  %10660 = vmatprep.subr.bf16.mxu0 %v13487_v5  ;;  %13564 = vst [vmem:[#allocation72_spill] sm:$0xff] %v12459_v57 }
 0x3d5   : > { %9903 = vmatprep.mubr.msk.f32.mxu1 %vm11157_vm1, %v13491_v47  ;;  %9914 = vmatprep.mubr.msk.f32.mxu0 %vm11157_vm1, %v13491_v47 }
 0x3d7   : > { %10656 = vmatpush3.bf16.msra.mxu1 %v10655_v4  ;;  %10662 = vmatpush3.bf16.msra.mxu0 %v10661_v29  ;;  %v12469_v34 = vpop.permute.xlu1 %3199 }
 0x3d8   : > { %10663 = vmatprep.subr.bf16.mxu1 %v13487_v5  ;;  %10669 = vmatprep.subr.bf16.mxu0 %v13487_v5  ;;  %13566 = vst [vmem:[#allocation74_spill] sm:$0xff] %v12469_v34 }
 0x3da   : > { %9904 = vmatmul.mubr.msk.f32.vlgmr.msra.gmra.mrb[66].mxu1 %vm1720_vm2, %v13557_v22  ;;  %9915 = vmatmul.mubr.msk.f32.vlgmr.msra.gmra.mrb[70].mxu0 %vm1720_vm2, %v13557_v22 }
 0x3db   : > { %10665 = vmatpush3.bf16.msra.mxu1 %v10664_v55  ;;  %10671 = vmatpush3.bf16.msra.mxu0 %v10670_v27 }
 0x3dc   : > { %10666 = vmatprep.subr.bf16.mxu1 %v13487_v5  ;;  %10672 = vmatprep.subr.bf16.mxu0 %v13487_v5 }
 0x3dd   : > { %9925 = vmatprep.mubr.msk.f32.mxu1 %vm11157_vm1, %v13491_v47  ;;  %9936 = vmatprep.mubr.msk.f32.mxu0 %vm11157_vm1, %v13491_v47 }
 0x3df   : > { %10668 = vmatpush3.bf16.msra.mxu1 %v10667_v60  ;;  %10674 = vmatpush3.bf16.msra.mxu0 %v10673_v50 }
 0x3e2   : > { %9926 = vmatmul.mubr.msk.f32.vlgmr.msra.gmra.mrb[68].mxu1 %vm1720_vm2, %v13557_v22  ;;  %9937 = vmatmul.mubr.msk.f32.vlgmr.msra.gmra.mrb[72].mxu0 %vm1720_vm2, %v13557_v22  ;;  %v12473_v22 = vpop.permute.xlu0 %3194 }
 0x3e3   : > { %9941 = vmatprep.mubr.msk.f32.mxu1 %vm2380_vm3, %v12016_v19  ;;  %9949 = vmatprep.mubr.msk.f32.mxu0 %vm2380_vm3, %v12016_v19  ;;  %13567 = vst [vmem:[#allocation75_spill] sm:$0xff] %v12473_v22 }
 0x48c   : > { %v9819_v21 = vpop.f32.mrb[54].mxu1 }
 0x48d   : > { %v3308_v14 = vadd.f32 %v9819_v21, %v12454_v38  ;;  %v3302_v3 = vpop.f32.mrb[55].mxu1  ;;  %v12479_v21 = vpop.permute.xlu1 %3209 }
 0x48e   : > { %v3303_v24 = vadd.f32 %v3302_v3, %v12456_v7  ;;  %13568 = vst [vmem:[#allocation76_spill] sm:$0xff] %v12479_v21 }
 0x48f   : > { %v3342_v12 = vmax.f32 %v3308_v14, 0.0 }
 0x490   : > { %v3341_v53 = vmax.f32 %v3303_v24, 0.0  ;;  %v9822_v4 = vpop.f32.mrb[56].mxu1  ;;  %v12481_v24 = vpop.permute.xlu0 %3204 }
 0x491   : > { %3350 = vst [vmem:[%s12465_s23 + $0x8] sm:$0xff] %v3342_v12  ;;  %v3318_v19 = vadd.f32 %v9822_v4, %v12459_v57  ;;  %v3312_v29 = vpop.f32.mrb[57].mxu1  ;;  %13569 = vst [vmem:[#allocation77_spill] sm:$0xff] %v12481_v24 }
 0x492   : > { %3349 = vst [vmem:[%s12465_s23] sm:$0xff] %v3341_v53  ;;  %v3313_v2 = vadd.f32 %v3312_v29, %v12461_v51 }
 0x493   : > { %v3344_v55 = vmax.f32 %v3318_v19, 0.0 }
 0x494   : > { %v3343_v59 = vmax.f32 %v3313_v2, 0.0  ;;  %v9825_v27 = vpop.f32.mrb[58].mxu1 }
 0x495   : > { %3352 = vst [vmem:[%s12465_s23 + $0x18] sm:$0xff] %v3344_v55  ;;  %v3328_v25 = vadd.f32 %v9825_v27, %v12469_v34  ;;  %v3322_v23 = vpop.f32.mrb[59].mxu1 }
 0x496   : > { %3351 = vst [vmem:[%s12465_s23 + $0x10] sm:$0xff] %v3343_v59  ;;  %v3323_v60 = vadd.f32 %v3322_v23, %v12473_v22 }
 0x497   : > { %v3346_v50 = vmax.f32 %v3328_v25, 0.0 }
 0x498   : > { %v3345_v14 = vmax.f32 %v3323_v60, 0.0  ;;  %v9828_v3 = vpop.f32.mrb[60].mxu1 }
 0x499   : > { %3354 = vst [vmem:[%s12465_s23 + $0x28] sm:$0xff] %v3346_v50  ;;  %v3338_v12 = vadd.f32 %v9828_v3, %v12479_v21  ;;  %v3332_v53 = vpop.f32.mrb[61].mxu1 }
 0x49a   : > { %3353 = vst [vmem:[%s12465_s23 + $0x20] sm:$0xff] %v3345_v14  ;;  %v3333_v4 = vadd.f32 %v3332_v53, %v12481_v24 }
 0x49b   : > { %v3348_v19 = vmax.f32 %v3338_v12, 0.0 }
 0x49c   : > { %v3347_v29 = vmax.f32 %v3333_v4, 0.0 }
 0x49d   : > { %3356 = vst [vmem:[%s12465_s23 + $0x38] sm:$0xff] %v3348_v19  ;;  %v3529_v2 = vpop.f32.mrb[62].mxu1  ;;  %v3607_v55 = vpop.f32.mrb[66].mxu0 }
 0x49e   : > { %3355 = vst [vmem:[%s12465_s23 + $0x30] sm:$0xff] %v3347_v29  ;;  %v9861_v59 = vpop.f32.mrb[63].mxu1  ;;  %v4079_v27 = vmax.f32 %v3529_v2, %v3607_v55  ;;  %v9872_v25 = vpop.f32.mrb[67].mxu0 }
 0x4a5   : > { %v3685_v23 = vpop.f32.mrb[64].mxu1  ;;  %v3763_v60 = vpop.f32.mrb[68].mxu0 }
 0x4a6   : > { %v4080_v22 = vmax.f32 %v4079_v27, %v3685_v23  ;;  %v9883_v34 = vpop.f32.mrb[65].mxu1  ;;  %v9894_v50 = vpop.f32.mrb[69].mxu0 }
 0x4a8   : > { %v4081_v51 = vmax.f32 %v4080_v22, %v3763_v60 }
 0x4ad   : > { %v3841_v3 = vpop.f32.mrb[66].mxu1  ;;  %v3919_v21 = vpop.f32.mrb[70].mxu0 }
 0x4ae   : > { %v4082_v14 = vmax.f32 %v4081_v51, %v3841_v3  ;;  %v9905_v57 = vpop.f32.mrb[67].mxu1  ;;  %v9916_v53 = vpop.f32.mrb[71].mxu0 }
 0x4b0   : > { %v4083_v12 = vmax.f32 %v4082_v14, %v3919_v21 }
 0x4b5   : > { %v3997_v4 = vpop.f32.mrb[68].mxu1  ;;  %v4075_v19 = vpop.f32.mrb[72].mxu0 }
 0x4b6   : > { %v4084_v24 = vmax.f32 %v4083_v12, %v3997_v4  ;;  %v9927_v7 = vpop.f32.mrb[69].mxu1  ;;  %v9938_v29 = vpop.f32.mrb[73].mxu0 }
 0x4b8   : > { %v4085_v59 = vmax.f32 %v4084_v24, %v4075_v19 }
 0x4ba   : > { %v4086_v38 = vsub.f32 %v3529_v2, %v4085_v59  ;;  %v4089_v25 = vsub.f32 %v3607_v55, %v4085_v59  ;;  %v4092_v10 = vsub.f32 %v3685_v23, %v4085_v59  ;;  %v4095_v46 = vsub.f32 %v3763_v60, %v4085_v59 }
 0x4bb   : > { %v4098_v27 = vsub.f32 %v3841_v3, %v4085_v59  ;;  %v4101_v34 = vsub.f32 %v3919_v21, %v4085_v59  ;;  %v4104_v50 = vsub.f32 %v3997_v4, %v4085_v59  ;;  %v4107_v22 = vsub.f32 %v4075_v19, %v4085_v59 }
 0x4bc   : > { %v4087_v54 = vmul.f32 1.442695, %v4086_v38  ;;  %v4090_v43 = vmul.f32 1.442695, %v4089_v25  ;;  %v4093_v51 = vmul.f32 1.442695, %v4092_v10 }
 0x4bd   : > { %v4096_v57 = vmul.f32 1.442695, %v4095_v46  ;;  %v4099_v14 = vmul.f32 1.442695, %v4098_v27  ;;  %v4102_v7 = vmul.f32 1.442695, %v4101_v34 }
 0x4be   : > { %10930 = vpow2.f32 %v4087_v54  ;;  %v4105_v24 = vmul.f32 1.442695, %v4104_v50  ;;  %v4108_v2 = vmul.f32 1.442695, %v4107_v22 }
 0x4bf   : > { %10932 = vpow2.f32 %v4090_v43 }
 0x4c0   : > { %10934 = vpow2.f32 %v4093_v51 }
 0x4c1   : > { %10936 = vpow2.f32 %v4096_v57 }
 0x4c2   : > { %10938 = vpow2.f32 %v4099_v14 }
 0x4c3   : > { %10940 = vpow2.f32 %v4102_v7  ;;  %v12496_v7 = vld [vmem:[%s13280_s9 + $0x10] sm:$0xff] }
 0x4c4   : > { %10942 = vpow2.f32 %v4105_v24  ;;  %v12509_v24 = vld [vmem:[%s13280_s9] sm:$0xff] }
 0x4c5   : > { %10944 = vpow2.f32 %v4108_v2  ;;  %v8725_v2 = vld [vmem:[%s13271_s0 + $0x88] sm:$0xff] }
 0x4c8   : > { %v10931_v55 = vpop.eup %10930 }
 0x4c9   : > { %v10933_v23 = vpop.eup %10932 }
 0x4ca   : > { %v4110_v21 = vadd.f32 %v10933_v23, %v10931_v55  ;;  %v10935_v60 = vpop.eup %10934 }
 0x4cb   : > { %v10937_v3 = vpop.eup %10936 }
 0x4cc   : > { %v4111_v38 = vadd.f32 %v10935_v60, %v4110_v21  ;;  %v10939_v54 = vpop.eup %10938  ;;  %v8727_v21 = vld [vmem:[%s13271_s0 + $0x98] sm:$0xff] }
 0x4cd   : > { %v10941_v46 = vpop.eup %10940 }
 0x4ce   : > { %v4112_v10 = vadd.f32 %v10937_v3, %v4111_v38  ;;  %v10943_v12 = vpop.eup %10942 }
 0x4cf   : > { %v10945_v19 = vpop.eup %10944 }
 0x4d0   : > { %v4113_v43 = vadd.f32 %v10939_v54, %v4112_v10  ;;  %v8729_v10 = vld [vmem:[%s13271_s0 + $0xa8] sm:$0xff] }
 0x4d2   : > { %v4114_v53 = vadd.f32 %v10941_v46, %v4113_v43  ;;  %v8730_v43 = vld [vmem:[%s13271_s0 + $0xb0] sm:$0xff] }
 0x4d4   : > { %v4115_v4 = vadd.f32 %v10943_v12, %v4114_v53  ;;  %v12596_v53 = vld [vmem:[%s13273_s2] sm:$0xff] }
 0x4d6   : > { %v4116_v29 = vadd.f32 %v10945_v19, %v4115_v4  ;;  %v12606_v4 = vld [vmem:[%s13273_s2 + $0x8] sm:$0xff] }
 0x4d8   : > { %10946 = vrcp.f32 %v4116_v29 }
 0x4e2   : > { %v10947_v59 = vpop.eup %10946 }
 0x4e3   : > { %v4118_v25 = vmul.f32 %v10947_v59, %v10931_v55  ;;  %v4212_v27 = vmul.f32 %v10947_v59, %v10933_v23  ;;  %v4310_v34 = vmul.f32 %v10947_v59, %v10935_v60  ;;  %v4408_v50 = vmul.f32 %v10947_v59, %v10937_v3  ;;  %v12540_v23 = vld [vmem:[%s13280_s9 + $0x8] sm:$0xff]  ;;  %v12559_v60 = vld [vmem:[%s13280_s9 + $0x18] sm:$0xff]  ;;  %v8728_v3 = vld [vmem:[%s13271_s0 + $0xa0] sm:$0xff] }
 0x4e4   : > { %v4506_v22 = vmul.f32 %v10947_v59, %v10939_v54  ;;  %v4604_v51 = vmul.f32 %v10947_v59, %v10941_v46  ;;  %v4702_v57 = vmul.f32 %v10947_v59, %v10943_v12  ;;  %v4800_v14 = vmul.f32 %v10947_v59, %v10945_v19  ;;  %v8731_v46 = vld [vmem:[%s13271_s0 + $0xb8] sm:$0xff]  ;;  %v12613_v19 = vld [vmem:[%s13273_s2 + $0x10] sm:$0xff] }
 0x4e5   : > { %9939 = vmatprep.subr.mxu1 %v4118_v25  ;;  %9947 = vmatprep.subr.mxu0 %v4212_v27  ;;  %v10691_v54 = vpack.c.bf16 %v8729_v10, %v8728_v3  ;;  %v10695_v12 = vpack.c.bf16 %v8731_v46, %v8730_v43 }
 0x4e6   : > { %9940 = vmatpush3.msra.mxu1 %v4118_v25  ;;  %9948 = vmatpush3.msra.mxu0 %v4212_v27 }
 0x4e7   : > { %9942 = vmatmul.mubr.msk.f32.vlgmr.msra.gmra.mrb[70].mxu1 %vm2380_vm3, %v12030_v56  ;;  %9950 = vmatmul.mubr.msk.f32.vlgmr.msra.gmra.mrb[74].mxu0 %vm2380_vm3, %v12030_v56 }
 0x4e8   : > { %9955 = vmatprep.subr.mxu1 %v4310_v34  ;;  %9963 = vmatprep.subr.mxu0 %v4408_v50 }
 0x4e9   : > { %9956 = vmatpush3.msra.mxu1 %v4310_v34  ;;  %9964 = vmatpush3.msra.mxu0 %v4408_v50 }
 0x4ea   : > { %9971 = vmatprep.subr.mxu1 %v4506_v22  ;;  %9979 = vmatprep.subr.mxu0 %v4604_v51 }
 0x4eb   : > { %9944 = vmatprep.mubr.msk.f32.mxu1 %vm2380_vm3, %v12496_v7  ;;  %9952 = vmatprep.mubr.msk.f32.mxu0 %vm2380_vm3, %v12496_v7 }
 0x4ec   : > { %9945 = vmatmul.mubr.msk.f32.gmra.mrb[72].mxu1 %vm2380_vm3, %v12035_v52  ;;  %9953 = vmatmul.mubr.msk.f32.gmra.mrb[76].mxu0 %vm2380_vm3, %v12035_v52 }
 0x4ed   : > { %9957 = vmatprep.mubr.msk.f32.mxu1 %vm2380_vm3, %v12509_v24  ;;  %9965 = vmatprep.mubr.msk.f32.mxu0 %vm2380_vm3, %v12509_v24 }
 0x4f0   : > { %9958 = vmatmul.mubr.msk.f32.vlgmr.msra.gmra.mrb[74].mxu1 %vm2380_vm3, %v12030_v56  ;;  %9966 = vmatmul.mubr.msk.f32.vlgmr.msra.gmra.mrb[78].mxu0 %vm2380_vm3, %v12030_v56  ;;  %v8724_v56 = vld [vmem:[%s13271_s0 + $0x80] sm:$0xff] }
 0x4f1   : > { %9972 = vmatpush3.msra.mxu1 %v4506_v22  ;;  %9980 = vmatpush3.msra.mxu0 %v4604_v51  ;;  %v10683_v55 = vpack.c.bf16 %v8725_v2, %v8724_v56 }
 0x4f2   : > { %9987 = vmatprep.subr.mxu1 %v4702_v57  ;;  %9995 = vmatprep.subr.mxu0 %v4800_v14 }
 0x4f3   : > { %9960 = vmatprep.mubr.msk.f32.mxu1 %vm2380_vm3, %v12496_v7  ;;  %9968 = vmatprep.mubr.msk.f32.mxu0 %vm2380_vm3, %v12496_v7 }
 0x4f4   : > { %9961 = vmatmul.mubr.msk.f32.gmra.mrb[76].mxu1 %vm2380_vm3, %v12035_v52  ;;  %9969 = vmatmul.mubr.msk.f32.gmra.mrb[80].mxu0 %vm2380_vm3, %v12035_v52  ;;  %v8726_v52 = vld [vmem:[%s13271_s0 + $0x90] sm:$0xff] }
 0x4f5   : > { %9973 = vmatprep.mubr.msk.f32.mxu1 %vm2380_vm3, %v12509_v24  ;;  %9981 = vmatprep.mubr.msk.f32.mxu0 %vm2380_vm3, %v12509_v24  ;;  %v10687_v38 = vpack.c.bf16 %v8727_v21, %v8726_v52  ;;  %v13571_v52 = vld [vmem:[#allocation16_spill] sm:$0xff] }
 0x4f8   : > { %9974 = vmatmul.mubr.msk.f32.vlgmr.msra.gmra.mrb[78].mxu1 %vm2380_vm3, %v12540_v23  ;;  %9982 = vmatmul.mubr.msk.f32.vlgmr.msra.gmra.mrb[82].mxu0 %vm2380_vm3, %v12540_v23 }
 0x4f9   : > { %9988 = vmatpush3.msra.mxu1 %v4702_v57  ;;  %9996 = vmatpush3.msra.mxu0 %v4800_v14 }
 0x4fa   : > { %9976 = vmatprep.mubr.msk.f32.mxu1 %vm2380_vm3, %v12496_v7  ;;  %9984 = vmatprep.mubr.msk.f32.mxu0 %vm2380_vm3, %v12496_v7 }
 0x4fb   : > { %10684 = vmatprep.subr.bf16.mxu0 %v10683_v55 }
 0x4fc   : > { %9977 = vmatmul.mubr.msk.f32.gmra.mrb[80].mxu1 %vm2380_vm3, %v12559_v60  ;;  %9985 = vmatmul.mubr.msk.f32.gmra.mrb[84].mxu0 %vm2380_vm3, %v12559_v60 }
 0x4fd   : > { %9989 = vmatprep.mubr.msk.f32.mxu1 %vm2380_vm3, %v12509_v24  ;;  %9997 = vmatprep.mubr.msk.f32.mxu0 %vm2380_vm3, %v12509_v24 }
 0x500   : > { %9990 = vmatmul.mubr.msk.f32.vlgmr.msra.gmra.mrb[82].mxu1 %vm2380_vm3, %v12540_v23  ;;  %9998 = vmatmul.mubr.msk.f32.vlgmr.msra.gmra.mrb[86].mxu0 %vm2380_vm3, %v12540_v23 }
 0x501   : > { %10686 = vmatpush3.bf16.msra.mxu0 %v10683_v55  ;;  %9992 = vmatprep.mubr.msk.f32.mxu1 %vm2380_vm3, %v12496_v7 }
 0x502   : > { %10000 = vmatprep.mubr.msk.f32.mxu0 %vm2380_vm3, %v12496_v7  ;;  %10688 = vmatprep.subr.bf16.mxu0 %v10687_v38 }
 0x504   : > { %9993 = vmatmul.mubr.msk.f32.gmra.mrb[84].mxu1 %vm2380_vm3, %v12559_v60  ;;  %10001 = vmatmul.mubr.msk.f32.gmra.mrb[88].mxu0 %vm2380_vm3, %v12559_v60 }
 0x505   : > { %10690 = vmatpush3.bf16.msra.mxu0 %v10687_v38  ;;  %10039 = vmatprep.mubr.msk.f32.mxu0 %vm520_vm0, %v12596_v53 }
 0x506   : > { %10692 = vmatprep.subr.bf16.mxu0 %v10691_v54  ;;  %10011 = vmatprep.mubr.msk.f32.mxu1 %vm1720_vm2, %v12135_v45  ;;  %v12620_v45 = vld [vmem:[%s13273_s2 + $0x18] sm:$0xff] }
 0x507   : > { %13570 = vst [vmem:[#allocation78_spill] sm:$0xff] %v12620_v45 }
 0x509   : > { %10694 = vmatpush3.bf16.msra.mxu0 %v10691_v54  ;;  %v13572_v54 = vld [vmem:[#allocation69_spill] sm:$0xff] }
 0x50a   : > { %10696 = vmatprep.subr.bf16.mxu0 %v10695_v12 }
 0x50d   : > { %10698 = vmatpush3.bf16.msra.mxu0 %v10695_v12 }
 0x50e   : > { %10705 = vmatprep.subr.bf16.mxu0 %v13487_v5 }
 0x510   : > { %10040 = vmatmul.mubr.msk.f32.vlgmr.msra.gmra.mrb[90].mxu0 %vm520_vm0, %v12606_v4 }
 0x511   : > { %10042 = vmatprep.mubr.msk.f32.mxu0 %vm520_vm0, %v12613_v19 }
 0x514   : > { %10043 = vmatmul.mubr.msk.f32.gmra.mrb[92].mxu0 %vm520_vm0, %v12620_v45 }
 0x515   : > { %10064 = vmatprep.mubr.msk.f32.mxu0 %vm11157_vm1, %v13491_v47 }
 0x5ba   : > { %v9943_v29 = vpop.f32.mrb[70].mxu1  ;;  %v9951_v59 = vpop.f32.mrb[74].mxu0 }
 0x5bb   : > { %v4209_v25 = vmul.f32 %v9943_v29, %v12171_v11  ;;  %v4303_v27 = vmul.f32 %v9951_v59, %v12167_v36  ;;  %v4185_v34 = vpop.f32.mrb[71].mxu1  ;;  %v4279_v50 = vpop.f32.mrb[75].mxu0  ;;  %v13579_v11 = vld [vmem:[#allocation25_spill] sm:$0xff] }
 0x5bc   : > { %v4208_v22 = vmul.f32 %v4185_v34, %v12173_v28  ;;  %v4302_v51 = vmul.f32 %v4279_v50, %v12169_v30  ;;  %v13573_v34 = vld [vmem:[#allocation66_spill] sm:$0xff] }
 0x5bd   : > { %v4307_v57 = vadd.f32 %v4303_v27, %v4209_v25 }
 0x5be   : > { %v4306_v14 = vadd.f32 %v4302_v51, %v4208_v22  ;;  %v13574_v22 = vld [vmem:[#allocation68_spill] sm:$0xff] }
 0x5bf   : > { %v9946_v56 = vpop.f32.mrb[72].mxu1  ;;  %v9954_v2 = vpop.f32.mrb[76].mxu0 }
 0x5c0   : > { %v4211_v55 = vmul.f32 %v9946_v56, %v12181_v44  ;;  %v4305_v21 = vmul.f32 %v9954_v2, %v13571_v52  ;;  %v4195_v38 = vpop.f32.mrb[73].mxu1  ;;  %v4289_v3 = vpop.f32.mrb[77].mxu0  ;;  %v13575_v56 = vld [vmem:[#allocation21_spill] sm:$0xff]  ;;  %v13576_v52 = vld [vmem:[#allocation22_spill] sm:$0xff] }
 0x5c1   : > { %v4210_v10 = vmul.f32 %v4195_v38, %v12186_v6  ;;  %v4304_v43 = vmul.f32 %v4289_v3, %v13572_v54  ;;  %v13577_v3 = vld [vmem:[#allocation14_spill] sm:$0xff]  ;;  %v13578_v54 = vld [vmem:[#allocation15_spill] sm:$0xff] }
 0x5c2   : > { %v4309_v46 = vadd.f32 %v4305_v21, %v4211_v55 }
 0x5c3   : > { %v4308_v12 = vadd.f32 %v4304_v43, %v4210_v10  ;;  %v9959_v29 = vpop.f32.mrb[74].mxu1  ;;  %v9967_v59 = vpop.f32.mrb[78].mxu0 }
 0x5c4   : > { %v4401_v50 = vmul.f32 %v9959_v29, %v13573_v34  ;;  %v4377_v25 = vpop.f32.mrb[75].mxu1  ;;  %v4475_v27 = vpop.f32.mrb[79].mxu0  ;;  %v4499_v44 = vmul.f32 %v9967_v59, %v13575_v56 }
 0x5c5   : > { %v4400_v51 = vmul.f32 %v4377_v25, %v13574_v22  ;;  %v4498_v28 = vmul.f32 %v4475_v27, %v13576_v52  ;;  %v13581_v27 = vld [vmem:[#allocation18_spill] sm:$0xff] }
 0x5c6   : > { %v4405_v30 = vadd.f32 %v4401_v50, %v4307_v57  ;;  %v13580_v57 = vld [vmem:[#allocation26_spill] sm:$0xff] }
 0x5c7   : > { %v4404_v2 = vadd.f32 %v4400_v51, %v4306_v14  ;;  %v9962_v36 = vpop.f32.mrb[76].mxu1  ;;  %v9970_v38 = vpop.f32.mrb[80].mxu0 }
 0x5c8   : > { %v4503_v6 = vadd.f32 %v4499_v44, %v4405_v30  ;;  %v4403_v55 = vmul.f32 %v9962_v36, %v13577_v3  ;;  %v4387_v21 = vpop.f32.mrb[77].mxu1  ;;  %v4485_v10 = vpop.f32.mrb[81].mxu0  ;;  %v4501_v45 = vmul.f32 %v9970_v38, %v13579_v11  ;;  %v13582_v36 = vld [vmem:[#allocation19_spill] sm:$0xff] }
 0x5c9   : > { %v4502_v43 = vadd.f32 %v4498_v28, %v4404_v2  ;;  %v4402_v29 = vmul.f32 %v4387_v21, %v13578_v54  ;;  %v4500_v50 = vmul.f32 %v4485_v10, %v13580_v57  ;;  %v13583_v28 = vld [vmem:[#allocation33_spill] sm:$0xff]  ;;  %v13585_v10 = vld [vmem:[#allocation23_spill] sm:$0xff] }
 0x5ca   : > { %v4407_v34 = vadd.f32 %v4403_v55, %v4309_v46  ;;  %v13584_v46 = vld [vmem:[#allocation35_spill] sm:$0xff] }
 0x5cb   : > { %v4406_v25 = vadd.f32 %v4402_v29, %v4308_v12  ;;  %v9975_v59 = vpop.f32.mrb[78].mxu1  ;;  %v9983_v14 = vpop.f32.mrb[82].mxu0 }
 0x5cc   : > { %v4505_v51 = vadd.f32 %v4501_v45, %v4407_v34  ;;  %v4597_v52 = vmul.f32 %v9975_v59, %v13581_v27  ;;  %v4573_v56 = vpop.f32.mrb[79].mxu1  ;;  %v4671_v30 = vpop.f32.mrb[83].mxu0  ;;  %v4695_v2 = vmul.f32 %v9983_v14, %v13583_v28  ;;  %v13586_v59 = vld [vmem:[#allocation24_spill] sm:$0xff] }
 0x5cd   : > { %v4504_v44 = vadd.f32 %v4500_v50, %v4406_v25  ;;  %v4596_v3 = vmul.f32 %v4573_v56, %v13582_v36  ;;  %v4694_v55 = vmul.f32 %v4671_v30, %v13584_v46 }
 0x5ce   : > { %v4601_v22 = vadd.f32 %v4597_v52, %v4503_v6 }
 0x5cf   : > { %v4600_v21 = vadd.f32 %v4596_v3, %v4502_v43  ;;  %v9978_v38 = vpop.f32.mrb[80].mxu1  ;;  %v9986_v12 = vpop.f32.mrb[84].mxu0 }
 0x5d0   : > { %v4699_v29 = vadd.f32 %v4695_v2, %v4601_v22  ;;  %v4599_v57 = vmul.f32 %v9978_v38, %v13585_v10  ;;  %v4583_v11 = vpop.f32.mrb[81].mxu1  ;;  %v4681_v45 = vpop.f32.mrb[85].mxu0  ;;  %v4697_v25 = vmul.f32 %v9986_v12, %v12273_v20 }
 0x5d1   : > { %v4698_v34 = vadd.f32 %v4694_v55, %v4600_v21  ;;  %v4598_v27 = vmul.f32 %v4583_v11, %v13586_v59  ;;  %v4696_v6 = vmul.f32 %v4681_v45, %v12278_v26 }
 0x5d2   : > { %v4603_v54 = vadd.f32 %v4599_v57, %v4505_v51 }
 0x5d3   : > { %v4602_v56 = vadd.f32 %v4598_v27, %v4504_v44  ;;  %v9991_v52 = vpop.f32.mrb[82].mxu1  ;;  %v9999_v3 = vpop.f32.mrb[86].mxu0 }
 0x5d4   : > { %v4701_v43 = vadd.f32 %v4697_v25, %v4603_v54  ;;  %v4793_v50 = vmul.f32 %v9991_v52, %v12263_v62  ;;  %v4769_v14 = vpop.f32.mrb[83].mxu1  ;;  %v4867_v22 = vpop.f32.mrb[87].mxu0  ;;  %v4891_v21 = vmul.f32 %v9999_v3, %v12289_v15 }
 0x5d5   : > { %v4700_v30 = vadd.f32 %v4696_v6, %v4602_v56  ;;  %v4792_v2 = vmul.f32 %v4769_v14, %v12268_v31  ;;  %v4890_v57 = vmul.f32 %v4867_v22, %v12294_v42 }
 0x5d6   : > { %v4797_v38 = vadd.f32 %v4793_v50, %v4699_v29 }
 0x5d7   : > { %v4796_v11 = vadd.f32 %v4792_v2, %v4698_v34  ;;  %v9994_v51 = vpop.f32.mrb[84].mxu1  ;;  %v10002_v27 = vpop.f32.mrb[88].mxu0 }
 0x5d8   : > { %v4895_v44 = vadd.f32 %v4891_v21, %v4797_v38  ;;  %v4795_v55 = vmul.f32 %v9994_v51, %v12283_v35  ;;  %v4779_v12 = vpop.f32.mrb[85].mxu1  ;;  %v4877_v54 = vpop.f32.mrb[89].mxu0  ;;  %v4893_v56 = vmul.f32 %v10002_v27, %v12301_v61  ;;  %v13587_v21 = vld [vmem:[#allocation28_spill] sm:$0xff]  ;;  %v13589_v27 = vld [vmem:[#allocation55_spill] sm:$0xff] }
 0x5d9   : > { %v4894_v45 = vadd.f32 %v4890_v57, %v4796_v11  ;;  %v4794_v25 = vmul.f32 %v4779_v12, %v12286_v17  ;;  %v4892_v29 = vmul.f32 %v4877_v54, %v12303_v13  ;;  %v13588_v11 = vld [vmem:[#allocation42_spill] sm:$0xff]  ;;  %v13590_v12 = vld [vmem:[#allocation29_spill] sm:$0xff] }
 0x5da   : > { %v4799_v52 = vadd.f32 %v4795_v55, %v4701_v43 }
 0x5db   : > { %v4798_v6 = vadd.f32 %v4794_v25, %v4700_v30  ;;  %v10675_v3 = vpack.c.bf16 %v4895_v44, %v4894_v45  ;;  %v13591_v45 = vld [vmem:[#allocation31_spill] sm:$0xff] }
 0x5dc   : > { %v4897_v34 = vadd.f32 %v4893_v56, %v4799_v52  ;;  %v13592_v56 = vld [vmem:[#allocation56_spill] sm:$0xff] }
 0x5dd   : > { %v4896_v50 = vadd.f32 %v4892_v29, %v4798_v6  ;;  %10676 = vmatprep.subr.bf16.mxu1 %v10675_v3  ;;  %v13593_v29 = vld [vmem:[#allocation45_spill] sm:$0xff] }
 0x5de   : > { %10678 = vmatpush3.bf16.msra.mxu1 %v10675_v3  ;;  %v13594_v3 = vld [vmem:[#allocation30_spill] sm:$0xff] }
 0x5df   : > { %v10679_v14 = vpack.c.bf16 %v4897_v34, %v4896_v50  ;;  %v13595_v50 = vld [vmem:[#allocation32_spill] sm:$0xff] }
 0x5e1   : > { %10680 = vmatprep.subr.bf16.mxu1 %v10679_v14 }
 0x5e2   : > { %10682 = vmatpush3.bf16.msra.mxu1 %v10679_v14 }
 0x5e3   : > { %v10041_v22 = vpop.f32.mrb[90].mxu0  ;;  %10699 = vmatprep.subr.bf16.mxu1 %v13487_v5 }
 0x5e4   : > { %v5101_v2 = vadd.f32 %v10041_v22, %v11775_v0  ;;  %v5095_v38 = vpop.f32.mrb[91].mxu0  ;;  %v13596_v22 = vld [vmem:[#allocation41_spill] sm:$0xff] }
 0x5e5   : > { %v5096_v43 = vadd.f32 %v5095_v38, %v13539_v16  ;;  %10012 = vmatmul.mubr.msk.f32.vlgmr.msra.gmra.mrb[86].mxu1 %vm1720_vm2, %v13587_v21  ;;  %v13598_v21 = vld [vmem:[#allocation37_spill] sm:$0xff]  ;;  %v13602_v16 = vld [vmem:[#allocation39_spill] sm:$0xff] }
 0x5e6   : > { %v12663_v30 = vmax.f32 %v5101_v2, 0.0  ;;  %10014 = vmatprep.mubr.msk.f32.mxu1 %vm1720_vm2, %v13588_v11 }
 0x5e7   : > { %v5114_v57 = vmax.f32 %v5096_v43, 0.0  ;;  %v10044_v51 = vpop.f32.mrb[92].mxu0  ;;  %v13597_v43 = vld [vmem:[#allocation34_spill] sm:$0xff] }
 0x5e8   : > { %v5111_v44 = vadd.f32 %v10044_v51, %v13589_v27  ;;  %v5105_v55 = vpop.f32.mrb[93].mxu0  ;;  %v5123_v54 = vmul.f32 %v12663_v30, %v13590_v12  ;;  %v5201_v25 = vmul.f32 %v12663_v30, %v13591_v45  ;;  %v5357_v52 = vmul.f32 %v12663_v30, %v13551_v1  ;;  %v13599_v51 = vld [vmem:[#allocation36_spill] sm:$0xff]  ;;  %v13601_v27 = vld [vmem:[#allocation47_spill] sm:$0xff] }
 0x5e9   : > { %v5106_v6 = vadd.f32 %v5105_v55, %v13592_v56  ;;  %10015 = vmatmul.mubr.msk.f32.gmra.mrb[88].mxu1 %vm1720_vm2, %v13593_v29  ;;  %v5122_v34 = vmul.f32 %v5114_v57, %v13594_v3  ;;  %v5200_v14 = vmul.f32 %v5114_v57, %v13595_v50  ;;  %v5356_v2 = vmul.f32 %v5114_v57, %v13596_v22 }
 0x5ea   : > { %v5117_v38 = vmax.f32 %v5111_v44, 0.0  ;;  %10017 = vmatprep.mubr.msk.f32.mxu1 %vm1720_vm2, %v13597_v43  ;;  %v5278_v11 = vmul.f32 %v5114_v57, %v13598_v21  ;;  %v5279_v1 = vmul.f32 %v12663_v30, %v13599_v51  ;;  %v12686_v55 = vmul.f32 %v5114_v57, %v11879_v48  ;;  %v13600_v21 = vld [vmem:[#allocation38_spill] sm:$0xff] }
 0x5eb   : > { %v5116_v56 = vmax.f32 %v5106_v6, 0.0  ;;  %v10700_v29 = vpack.c.bf16 %v5123_v54, %v5122_v34  ;;  %v10706_v45 = vpack.c.bf16 %v5201_v25, %v5200_v14  ;;  %v10718_v3 = vpack.c.bf16 %v5357_v52, %v5356_v2  ;;  %v13603_v54 = vld [vmem:[#allocation46_spill] sm:$0xff]  ;;  %v13604_v52 = vld [vmem:[#allocation43_spill] sm:$0xff] }
 0x5ec   : > { %v5125_v50 = vmul.f32 %v5117_v38, %v11816_v32  ;;  %v5203_v22 = vmul.f32 %v5117_v38, %v11821_v49  ;;  %v10712_v44 = vpack.c.bf16 %v5279_v1, %v5278_v11  ;;  %v5359_v12 = vmul.f32 %v5117_v38, %v11868_v18 }
 0x5ed   : > { %10701 = vmatpush3.bf16.msra.mxu1 %v10700_v29  ;;  %10707 = vmatpush3.bf16.msra.mxu0 %v10706_v45  ;;  %v5124_v43 = vmul.f32 %v5116_v56, %v11818_v33  ;;  %v5202_v51 = vmul.f32 %v5116_v56, %v13600_v21  ;;  %v5358_v48 = vmul.f32 %v5116_v56, %v13601_v27  ;;  %v13605_v45 = vld [vmem:[#allocation44_spill] sm:$0xff] }
 0x5ee   : > { %10018 = vmatmul.mubr.msk.f32.gmra.mrb[90].mxu1 %vm1720_vm2, %v13602_v16  ;;  %10702 = vmatprep.subr.bf16.mxu1 %v13487_v5  ;;  %v5280_v25 = vmul.f32 %v5116_v56, %v13603_v54  ;;  %v5281_v6 = vmul.f32 %v5117_v38, %v13604_v52  ;;  %v5513_v1 = vmul.f32 %v12663_v30, %v11877_v63  ;;  %v13606_v29 = vld [vmem:[#allocation48_spill] sm:$0xff] }
 0x5ef   : > { %10708 = vmatprep.subr.bf16.mxu0 %v13487_v5  ;;  %10020 = vmatprep.mubr.msk.f32.mxu1 %vm1720_vm2, %v13605_v45  ;;  %v10703_v34 = vpack.c.bf16 %v5125_v50, %v5124_v43  ;;  %v10709_v14 = vpack.c.bf16 %v5203_v22, %v5202_v51  ;;  %v10721_v2 = vpack.c.bf16 %v5359_v12, %v5358_v48  ;;  %v13607_v45 = vld [vmem:[#allocation70_spill] sm:$0xff]  ;;  %v13608_v12 = vld [vmem:[#allocation51_spill] sm:$0xff]  ;;  %v13609_v43 = vld [vmem:[#allocation53_spill] sm:$0xff] }
 0x5f0   : > { %v10715_v11 = vpack.c.bf16 %v5281_v6, %v5280_v25  ;;  %v10730_v16 = vpack.c.bf16 %v5513_v1, %v12686_v55  ;;  %v5434_v27 = vmul.f32 %v5114_v57, %v13606_v29  ;;  %v5435_v54 = vmul.f32 %v12663_v30, %v11873_v41  ;;  %v12725_v6 = vld [vmem:[%s13279_s8] sm:$0xff]  ;;  %v13610_v1 = vld [vmem:[#allocation61_spill] sm:$0xff] }
 0x5f1   : > { %10704 = vmatpush3.bf16.msra.mxu1 %v10703_v34  ;;  %10710 = vmatpush3.bf16.msra.mxu0 %v10709_v14  ;;  %v5514_v63 = vmul.f32 %v5116_v56, %v11888_v9  ;;  %v5515_v52 = vmul.f32 %v5117_v38, %v11885_v58  ;;  %v5436_v21 = vmul.f32 %v5116_v56, %v11883_v8  ;;  %v13612_v14 = vld [vmem:[#allocation58_spill] sm:$0xff] }
 0x5f2   : > { %10021 = vmatmul.mubr.msk.f32.gmra.mrb[92].mxu1 %vm1720_vm2, %v13607_v45  ;;  %10717 = vmatprep.subr.bf16.mxu0 %v13487_v5  ;;  %v10724_v48 = vpack.c.bf16 %v5435_v54, %v5434_v27  ;;  %v5437_v50 = vmul.f32 %v5117_v38, %v13608_v12  ;;  %v5668_v22 = vmul.f32 %v5114_v57, %v11899_v39 }
 0x5f3   : > { %10053 = vmatprep.mubr.msk.f32.mxu1 %vm11157_vm1, %v13491_v47  ;;  %10711 = vmatprep.subr.bf16.mxu1 %v13487_v5  ;;  %v10733_v51 = vpack.c.bf16 %v5515_v52, %v5514_v63  ;;  %v5669_v55 = vmul.f32 %v12663_v30, %v13556_v40  ;;  %v5590_v25 = vmul.f32 %v5114_v57, %v13609_v43  ;;  %v13611_v63 = vld [vmem:[#allocation59_spill] sm:$0xff]  ;;  %v13613_v43 = vld [vmem:[#allocation57_spill] sm:$0xff] }
 0x5f4   : > { %10065 = vmatmul.mubr.msk.f32.vlgmr.msra.gmra.mrb[94].mxu0 %vm1720_vm2, %v12725_v6  ;;  %v10727_v27 = vpack.c.bf16 %v5437_v50, %v5436_v21  ;;  %v5591_v54 = vmul.f32 %v12663_v30, %v11890_v37  ;;  %v5670_v34 = vmul.f32 %v5116_v56, %v13610_v1  ;;  %v5671_v52 = vmul.f32 %v5117_v38, %v13611_v63 }
 0x5f5   : > { %10719 = vmatpush3.bf16.msra.mxu0 %v10718_v3  ;;  %10086 = vmatprep.mubr.msk.f32.mxu0 %vm11157_vm1, %v13491_v47  ;;  %v10742_v57 = vpack.c.bf16 %v5669_v55, %v5668_v22  ;;  %v5592_v45 = vmul.f32 %v5116_v56, %v13612_v14  ;;  %v5593_v40 = vmul.f32 %v5117_v38, %v13613_v43  ;;  %v13614_v56 = vld [vmem:[#allocation60_spill] sm:$0xff] }
 0x5f6   : > { %10054 = vmatmul.mubr.msk.f32.vlgmr.msra.gmra.mrb[94].mxu1 %vm1720_vm2, %v12725_v6  ;;  %10720 = vmatprep.subr.bf16.mxu0 %v13487_v5  ;;  %v10736_v21 = vpack.c.bf16 %v5591_v54, %v5590_v25  ;;  %v10745_v30 = vpack.c.bf16 %v5671_v52, %v5670_v34  ;;  %v13616_v22 = vld [vmem:[#allocation72_spill] sm:$0xff]  ;;  %v13617_v25 = vld [vmem:[#allocation73_spill] sm:$0xff] }
 0x5f7   : > { %10713 = vmatpush3.bf16.msra.mxu1 %v10712_v44  ;;  %10075 = vmatprep.mubr.msk.f32.mxu1 %vm11157_vm1, %v13491_v47  ;;  %v10739_v3 = vpack.c.bf16 %v5593_v40, %v5592_v45 }
 0x5f8   : > { %10714 = vmatprep.subr.bf16.mxu1 %v13487_v5 }
 0x5f9   : > { %10722 = vmatpush3.bf16.msra.mxu0 %v10721_v2  ;;  %v13615_v2 = vld [vmem:[#allocation71_spill] sm:$0xff] }
 0x5fa   : > { %10729 = vmatprep.subr.bf16.mxu0 %v13487_v5 }
 0x5fb   : > { %10716 = vmatpush3.bf16.msra.mxu1 %v10715_v11 }
 0x5fc   : > { %10087 = vmatmul.mubr.msk.f32.vlgmr.msra.gmra.mrb[96].mxu0 %vm1720_vm2, %v12725_v6  ;;  %10723 = vmatprep.subr.bf16.mxu1 %v13487_v5 }
 0x5fd   : > { %10731 = vmatpush3.bf16.msra.mxu0 %v10730_v16  ;;  %10108 = vmatprep.mubr.msk.f32.mxu0 %vm11157_vm1, %v13491_v47 }
 0x5fe   : > { %10076 = vmatmul.mubr.msk.f32.vlgmr.msra.gmra.mrb[96].mxu1 %vm1720_vm2, %v12725_v6  ;;  %10732 = vmatprep.subr.bf16.mxu0 %v13487_v5 }
 0x5ff   : > { %10725 = vmatpush3.bf16.msra.mxu1 %v10724_v48  ;;  %10097 = vmatprep.mubr.msk.f32.mxu1 %vm11157_vm1, %v13491_v47 }
 0x600   : > { %10726 = vmatprep.subr.bf16.mxu1 %v13487_v5 }
 0x601   : > { %10734 = vmatpush3.bf16.msra.mxu0 %v10733_v51 }
 0x602   : > { %10741 = vmatprep.subr.bf16.mxu0 %v13487_v5 }
 0x603   : > { %10728 = vmatpush3.bf16.msra.mxu1 %v10727_v27 }
 0x604   : > { %10109 = vmatmul.mubr.msk.f32.vlgmr.msra.gmra.mrb[98].mxu0 %vm1720_vm2, %v12725_v6  ;;  %10735 = vmatprep.subr.bf16.mxu1 %v13487_v5 }
 0x605   : > { %10743 = vmatpush3.bf16.msra.mxu0 %v10742_v57  ;;  %10130 = vmatprep.mubr.msk.f32.mxu0 %vm11157_vm1, %v13491_v47  ;;  %v13618_v57 = vld [vmem:[#allocation74_spill] sm:$0xff] }
 0x606   : > { %10098 = vmatmul.mubr.msk.f32.vlgmr.msra.gmra.mrb[98].mxu1 %vm1720_vm2, %v12725_v6  ;;  %10744 = vmatprep.subr.bf16.mxu0 %v13487_v5 }
 0x607   : > { %10737 = vmatpush3.bf16.msra.mxu1 %v10736_v21  ;;  %10119 = vmatprep.mubr.msk.f32.mxu1 %vm11157_vm1, %v13491_v47 }
 0x608   : > { %10738 = vmatprep.subr.bf16.mxu1 %v13487_v5 }
 0x609   : > { %10746 = vmatpush3.bf16.msra.mxu0 %v10745_v30  ;;  %v13619_v30 = vld [vmem:[#allocation75_spill] sm:$0xff] }
 0x60b   : > { %10740 = vmatpush3.bf16.msra.mxu1 %v10739_v3 }
 0x60c   : > { %10131 = vmatmul.mubr.msk.f32.vlgmr.msra.gmra.mrb[100].mxu0 %vm1720_vm2, %v12725_v6 }
 0x60d   : > { %10143 = vmatprep.mubr.msk.f32.mxu0 %vm2380_vm3, %v12509_v24 }
 0x60e   : > { %10120 = vmatmul.mubr.msk.f32.vlgmr.msra.gmra.mrb[100].mxu1 %vm1720_vm2, %v12725_v6 }
 0x60f   : > { %10135 = vmatprep.mubr.msk.f32.mxu1 %vm2380_vm3, %v12509_v24 }
 0x6b8   : > { %v10013_v40 = vpop.f32.mrb[86].mxu1 }
 0x6b9   : > { %v4970_v38 = vadd.f32 %v10013_v40, %v13614_v56  ;;  %v4964_v44 = vpop.f32.mrb[87].mxu1 }
 0x6ba   : > { %v4965_v11 = vadd.f32 %v4964_v44, %v13615_v2 }
 0x6bb   : > { %v5004_v16 = vmax.f32 %v4970_v38, 0.0 }
 0x6bc   : > { %v5003_v48 = vmax.f32 %v4965_v11, 0.0  ;;  %v10016_v50 = vpop.f32.mrb[88].mxu1  ;;  %v13620_v11 = vld [vmem:[#allocation76_spill] sm:$0xff] }
 0x6bd   : > { %8717 = vst [vmem:[%s12465_s23 + $0x48] sm:$0xff] %v5004_v16  ;;  %v4980_v51 = vadd.f32 %v10016_v50, %v13616_v22  ;;  %v4974_v55 = vpop.f32.mrb[89].mxu1  ;;  %v13621_v50 = vld [vmem:[#allocation77_spill] sm:$0xff] }
 0x6be   : > { %8716 = vst [vmem:[%s12465_s23 + $0x40] sm:$0xff] %v5003_v48  ;;  %v4975_v27 = vadd.f32 %v4974_v55, %v13617_v25 }
 0x6bf   : > { %v5006_v54 = vmax.f32 %v4980_v51, 0.0 }
 0x6c0   : > { %v5005_v34 = vmax.f32 %v4975_v27, 0.0 }
 0x6c1   : > { %8719 = vst [vmem:[%s12465_s23 + $0x58] sm:$0xff] %v5006_v54  ;;  %v10019_v52 = vpop.f32.mrb[90].mxu1 }
 0x6c2   : > { %8718 = vst [vmem:[%s12465_s23 + $0x50] sm:$0xff] %v5005_v34  ;;  %v4990_v45 = vadd.f32 %v10019_v52, %v13618_v57  ;;  %v4984_v21 = vpop.f32.mrb[91].mxu1 }
 0x6c3   : > { %v4985_v3 = vadd.f32 %v4984_v21, %v13619_v30 }
 0x6c4   : > { %v5008_v40 = vmax.f32 %v4990_v45, 0.0 }
 0x6c5   : > { %v5007_v38 = vmax.f32 %v4985_v3, 0.0  ;;  %v10022_v44 = vpop.f32.mrb[92].mxu1 }
 0x6c6   : > { %8721 = vst [vmem:[%s12465_s23 + $0x68] sm:$0xff] %v5008_v40  ;;  %v5000_v16 = vadd.f32 %v10022_v44, %v13620_v11  ;;  %v4994_v48 = vpop.f32.mrb[93].mxu1 }
 0x6c7   : > { %8720 = vst [vmem:[%s12465_s23 + $0x60] sm:$0xff] %v5007_v38  ;;  %v4995_v51 = vadd.f32 %v4994_v48, %v13621_v50  ;;  %v5270_v55 = vpop.f32.mrb[94].mxu0 }
 0x6c8   : > { %v5010_v27 = vmax.f32 %v5000_v16, 0.0  ;;  %v10066_v54 = vpop.f32.mrb[95].mxu0 }
 0x6c9   : > { %v5009_v34 = vmax.f32 %v4995_v51, 0.0  ;;  %v5192_v52 = vpop.f32.mrb[94].mxu1 }
 0x6ca   : > { %8723 = vst [vmem:[%s12465_s23 + $0x78] sm:$0xff] %v5010_v27  ;;  %v10055_v57 = vpop.f32.mrb[95].mxu1  ;;  %v5742_v25 = vmax.f32 %v5192_v52, %v5270_v55 }
 0x6cb   : > { %8722 = vst [vmem:[%s12465_s23 + $0x70] sm:$0xff] %v5009_v34 }
 0x6cf   : > { %v5426_v45 = vpop.f32.mrb[96].mxu0 }
 0x6d0   : > { %v10088_v21 = vpop.f32.mrb[97].mxu0 }
 0x6d1   : > { %v5348_v3 = vpop.f32.mrb[96].mxu1 }
 0x6d2   : > { %v5743_v30 = vmax.f32 %v5742_v25, %v5348_v3  ;;  %v10077_v40 = vpop.f32.mrb[97].mxu1 }
 0x6d4   : > { %v5744_v22 = vmax.f32 %v5743_v30, %v5426_v45 }
 0x6d7   : > { %v5582_v44 = vpop.f32.mrb[98].mxu0 }
 0x6d8   : > { %v10110_v11 = vpop.f32.mrb[99].mxu0 }
 0x6d9   : > { %v5504_v38 = vpop.f32.mrb[98].mxu1 }
 0x6da   : > { %v5745_v2 = vmax.f32 %v5744_v22, %v5504_v38  ;;  %v10099_v48 = vpop.f32.mrb[99].mxu1 }
 0x6dc   : > { %v5746_v50 = vmax.f32 %v5745_v2, %v5582_v44 }
 0x6df   : > { %v5738_v16 = vpop.f32.mrb[100].mxu0 }
 0x6e0   : > { %v10132_v54 = vpop.f32.mrb[101].mxu0 }
 0x6e1   : > { %v5660_v51 = vpop.f32.mrb[100].mxu1 }
 0x6e2   : > { %v5747_v56 = vmax.f32 %v5746_v50, %v5660_v51  ;;  %v10121_v27 = vpop.f32.mrb[101].mxu1 }
 0x6e4   : > { %v5748_v57 = vmax.f32 %v5747_v56, %v5738_v16 }
 0x6e6   : > { %v5749_v43 = vsub.f32 %v5192_v52, %v5748_v57  ;;  %v5752_v34 = vsub.f32 %v5270_v55, %v5748_v57  ;;  %v5755_v14 = vsub.f32 %v5348_v3, %v5748_v57  ;;  %v5758_v21 = vsub.f32 %v5426_v45, %v5748_v57 }
 0x6e7   : > { %v5761_v63 = vsub.f32 %v5504_v38, %v5748_v57  ;;  %v5764_v25 = vsub.f32 %v5582_v44, %v5748_v57  ;;  %v5767_v40 = vsub.f32 %v5660_v51, %v5748_v57  ;;  %v5770_v30 = vsub.f32 %v5738_v16, %v5748_v57 }
 0x6e8   : > { %v5750_v1 = vmul.f32 1.442695, %v5749_v43  ;;  %v5753_v11 = vmul.f32 1.442695, %v5752_v34  ;;  %v5756_v37 = vmul.f32 1.442695, %v5755_v14 }
 0x6e9   : > { %v5759_v2 = vmul.f32 1.442695, %v5758_v21  ;;  %v5762_v22 = vmul.f32 1.442695, %v5761_v63  ;;  %v5765_v50 = vmul.f32 1.442695, %v5764_v25 }
 0x6ea   : > { %10948 = vpow2.f32 %v5750_v1  ;;  %v5768_v56 = vmul.f32 1.442695, %v5767_v40  ;;  %v5771_v55 = vmul.f32 1.442695, %v5770_v30 }
 0x6eb   : > { %10950 = vpow2.f32 %v5753_v11 }
 0x6ec   : > { %10952 = vpow2.f32 %v5756_v37 }
 0x6ed   : > { %10954 = vpow2.f32 %v5759_v2 }
 0x6ee   : > { %10956 = vpow2.f32 %v5762_v22 }
 0x6ef   : > { %10958 = vpow2.f32 %v5765_v50  ;;  %v8792_v50 = vld [vmem:[%s13271_s0 + $0xc0] sm:$0xff] }
 0x6f0   : > { %10960 = vpow2.f32 %v5768_v56  ;;  %v8793_v56 = vld [vmem:[%s13271_s0 + $0xc8] sm:$0xff] }
 0x6f1   : > { %10962 = vpow2.f32 %v5771_v55  ;;  %v10755_v55 = vpack.c.bf16 %v8793_v56, %v8792_v50 }
 0x6f4   : > { %v10949_v52 = vpop.eup %10948 }
 0x6f5   : > { %v10951_v45 = vpop.eup %10950 }
 0x6f6   : > { %v5773_v3 = vadd.f32 %v10951_v45, %v10949_v52  ;;  %v10953_v44 = vpop.eup %10952 }
 0x6f7   : > { %v10955_v38 = vpop.eup %10954 }
 0x6f8   : > { %v5774_v43 = vadd.f32 %v10953_v44, %v5773_v3  ;;  %v10957_v1 = vpop.eup %10956 }
 0x6f9   : > { %v10959_v16 = vpop.eup %10958 }
 0x6fa   : > { %v5775_v14 = vadd.f32 %v10955_v38, %v5774_v43  ;;  %v10961_v63 = vpop.eup %10960  ;;  %v8797_v43 = vld [vmem:[%s13271_s0 + $0xe8] sm:$0xff] }
 0x6fb   : > { %v10963_v51 = vpop.eup %10962 }
 0x6fc   : > { %v5776_v48 = vadd.f32 %v10957_v1, %v5775_v14  ;;  %v8799_v14 = vld [vmem:[%s13271_s0 + $0xf8] sm:$0xff] }
 0x6fe   : > { %v5777_v37 = vadd.f32 %v10959_v16, %v5776_v48  ;;  %v13623_v48 = vld [vmem:[#allocation64_spill] sm:$0xff] }
 0x700   : > { %v5778_v54 = vadd.f32 %v10961_v63, %v5777_v37  ;;  %v13624_v37 = vld [vmem:[#allocation62_spill] sm:$0xff] }
 0x702   : > { %v5779_v27 = vadd.f32 %v10963_v51, %v5778_v54 }
 0x704   : > { %10964 = vrcp.f32 %v5779_v27  ;;  %v13625_v27 = vld [vmem:[#allocation65_spill] sm:$0xff] }
 0x70e   : > { %v10965_v57 = vpop.eup %10964 }
 0x70f   : > { %v5781_v34 = vmul.f32 %v10965_v57, %v10949_v52  ;;  %v5875_v21 = vmul.f32 %v10965_v57, %v10951_v45  ;;  %v5973_v25 = vmul.f32 %v10965_v57, %v10953_v44  ;;  %v6071_v40 = vmul.f32 %v10965_v57, %v10955_v38  ;;  %v8794_v52 = vld [vmem:[%s13271_s0 + $0xd0] sm:$0xff]  ;;  %v8795_v45 = vld [vmem:[%s13271_s0 + $0xd8] sm:$0xff]  ;;  %v8796_v44 = vld [vmem:[%s13271_s0 + $0xe0] sm:$0xff] }
 0x710   : > { %v6169_v30 = vmul.f32 %v10965_v57, %v10957_v1  ;;  %v6267_v11 = vmul.f32 %v10965_v57, %v10959_v16  ;;  %v6365_v2 = vmul.f32 %v10965_v57, %v10961_v63  ;;  %v6463_v22 = vmul.f32 %v10965_v57, %v10963_v51  ;;  %v8798_v38 = vld [vmem:[%s13271_s0 + $0xf0] sm:$0xff] }
 0x711   : > { %10133 = vmatprep.subr.mxu1 %v5781_v34  ;;  %10141 = vmatprep.subr.mxu0 %v5875_v21  ;;  %v10759_v3 = vpack.c.bf16 %v8795_v45, %v8794_v52  ;;  %v13630_v45 = vld [vmem:[#allocation69_spill] sm:$0xff] }
 0x712   : > { %10134 = vmatpush3.msra.mxu1 %v5781_v34  ;;  %10142 = vmatpush3.msra.mxu0 %v5875_v21 }
 0x713   : > { %10136 = vmatmul.mubr.msk.f32.vlgmr.msra.gmra.mrb[102].mxu1 %vm2380_vm3, %v12540_v23  ;;  %10144 = vmatmul.mubr.msk.f32.vlgmr.msra.gmra.mrb[102].mxu0 %vm2380_vm3, %v12540_v23 }
 0x714   : > { %10149 = vmatprep.subr.mxu1 %v5973_v25  ;;  %10157 = vmatprep.subr.mxu0 %v6071_v40 }
 0x715   : > { %10150 = vmatpush3.msra.mxu1 %v5973_v25  ;;  %10158 = vmatpush3.msra.mxu0 %v6071_v40 }
 0x716   : > { %10165 = vmatprep.subr.mxu1 %v6169_v30  ;;  %10173 = vmatprep.subr.mxu0 %v6267_v11 }
 0x717   : > { %10138 = vmatprep.mubr.msk.f32.mxu1 %vm2380_vm3, %v12496_v7  ;;  %10146 = vmatprep.mubr.msk.f32.mxu0 %vm2380_vm3, %v12496_v7 }
 0x718   : > { %10139 = vmatmul.mubr.msk.f32.gmra.mrb[104].mxu1 %vm2380_vm3, %v12559_v60  ;;  %10147 = vmatmul.mubr.msk.f32.gmra.mrb[104].mxu0 %vm2380_vm3, %v12559_v60 }
 0x719   : > { %10151 = vmatprep.mubr.msk.f32.mxu1 %vm2380_vm3, %v12509_v24  ;;  %10159 = vmatprep.mubr.msk.f32.mxu0 %vm2380_vm3, %v12509_v24 }
 0x71c   : > { %10152 = vmatmul.mubr.msk.f32.vlgmr.msra.gmra.mrb[106].mxu1 %vm2380_vm3, %v12540_v23  ;;  %10160 = vmatmul.mubr.msk.f32.vlgmr.msra.gmra.mrb[106].mxu0 %vm2380_vm3, %v12540_v23 }
 0x71d   : > { %10166 = vmatpush3.msra.mxu1 %v6169_v30  ;;  %10174 = vmatpush3.msra.mxu0 %v6267_v11  ;;  %v13627_v30 = vld [vmem:[#allocation17_spill] sm:$0xff] }
 0x71e   : > { %10181 = vmatprep.subr.mxu1 %v6365_v2  ;;  %10189 = vmatprep.subr.mxu0 %v6463_v22 }
 0x71f   : > { %10154 = vmatprep.mubr.msk.f32.mxu1 %vm2380_vm3, %v12496_v7  ;;  %10162 = vmatprep.mubr.msk.f32.mxu0 %vm2380_vm3, %v12496_v7 }
 0x720   : > { %10155 = vmatmul.mubr.msk.f32.gmra.mrb[108].mxu1 %vm2380_vm3, %v12559_v60  ;;  %10163 = vmatmul.mubr.msk.f32.gmra.mrb[108].mxu0 %vm2380_vm3, %v12559_v60 }
 0x721   : > { %10167 = vmatprep.mubr.msk.f32.mxu1 %vm2380_vm3, %v12509_v24  ;;  %10175 = vmatprep.mubr.msk.f32.mxu0 %vm2380_vm3, %v12509_v24 }
 0x724   : > { %10168 = vmatmul.mubr.msk.f32.vlgmr.msra.gmra.mrb[110].mxu1 %vm2380_vm3, %v12540_v23  ;;  %10176 = vmatmul.mubr.msk.f32.vlgmr.msra.gmra.mrb[110].mxu0 %vm2380_vm3, %v12540_v23 }
 0x725   : > { %10182 = vmatpush3.msra.mxu1 %v6365_v2  ;;  %10190 = vmatpush3.msra.mxu0 %v6463_v22  ;;  %v13628_v2 = vld [vmem:[#allocation16_spill] sm:$0xff] }
 0x726   : > { %10170 = vmatprep.mubr.msk.f32.mxu1 %vm2380_vm3, %v12496_v7  ;;  %10178 = vmatprep.mubr.msk.f32.mxu0 %vm2380_vm3, %v12496_v7 }
 0x727   : > { %10756 = vmatprep.subr.bf16.mxu0 %v10755_v55 }
 0x728   : > { %10171 = vmatmul.mubr.msk.f32.gmra.mrb[112].mxu1 %vm2380_vm3, %v12559_v60  ;;  %10179 = vmatmul.mubr.msk.f32.gmra.mrb[112].mxu0 %vm2380_vm3, %v12559_v60 }
 0x729   : > { %10183 = vmatprep.mubr.msk.f32.mxu1 %vm2380_vm3, %v12509_v24  ;;  %10191 = vmatprep.mubr.msk.f32.mxu0 %vm2380_vm3, %v12509_v24  ;;  %v10763_v24 = vpack.c.bf16 %v8797_v43, %v8796_v44 }
 0x72c   : > { %10184 = vmatmul.mubr.msk.f32.vlgmr.msra.gmra.mrb[114].mxu1 %vm2380_vm3, %v12540_v23  ;;  %10192 = vmatmul.mubr.msk.f32.vlgmr.msra.gmra.mrb[114].mxu0 %vm2380_vm3, %v12540_v23  ;;  %v12880_v23 = vld [vmem:[%s13277_s6] sm:$0xff] }
 0x72d   : > { %10758 = vmatpush3.bf16.msra.mxu0 %v10755_v55  ;;  %10186 = vmatprep.mubr.msk.f32.mxu1 %vm2380_vm3, %v12496_v7  ;;  %v13629_v55 = vld [vmem:[#allocation67_spill] sm:$0xff] }
 0x72e   : > { %10194 = vmatprep.mubr.msk.f32.mxu0 %vm2380_vm3, %v12496_v7  ;;  %10760 = vmatprep.subr.bf16.mxu0 %v10759_v3  ;;  %v10767_v7 = vpack.c.bf16 %v8799_v14, %v8798_v38  ;;  %v13631_v14 = vld [vmem:[#allocation66_spill] sm:$0xff] }
 0x730   : > { %10187 = vmatmul.mubr.msk.f32.gmra.mrb[116].mxu1 %vm2380_vm3, %v12559_v60  ;;  %10195 = vmatmul.mubr.msk.f32.gmra.mrb[116].mxu0 %vm2380_vm3, %v12559_v60  ;;  %v13622_v60 = vld [vmem:[#allocation78_spill] sm:$0xff] }
 0x731   : > { %10762 = vmatpush3.bf16.msra.mxu0 %v10759_v3  ;;  %10233 = vmatprep.mubr.msk.f32.mxu0 %vm520_vm0, %v12596_v53 }
 0x732   : > { %10764 = vmatprep.subr.bf16.mxu0 %v10763_v24  ;;  %10205 = vmatprep.mubr.msk.f32.mxu1 %vm1720_vm2, %v12880_v23 }
 0x735   : > { %10766 = vmatpush3.bf16.msra.mxu0 %v10763_v24 }
 0x736   : > { %10768 = vmatprep.subr.bf16.mxu0 %v10767_v7 }
 0x739   : > { %10770 = vmatpush3.bf16.msra.mxu0 %v10767_v7 }
 0x73a   : > { %10777 = vmatprep.subr.bf16.mxu0 %v13487_v5 }
 0x73c   : > { %10234 = vmatmul.mubr.msk.f32.vlgmr.msra.gmra.mrb[118].mxu0 %vm520_vm0, %v12606_v4  ;;  %v13626_v4 = vld [vmem:[#allocation63_spill] sm:$0xff] }
 0x73d   : > { %10236 = vmatprep.mubr.msk.f32.mxu0 %vm520_vm0, %v12613_v19 }
 0x740   : > { %10237 = vmatmul.mubr.msk.f32.gmra.mrb[120].mxu0 %vm520_vm0, %v13622_v60 }
 0x741   : > { %10258 = vmatprep.mubr.msk.f32.mxu0 %vm11157_vm1, %v13491_v47 }
 0x7e6   : > { %v10137_v53 = vpop.f32.mrb[102].mxu1  ;;  %v10145_v1 = vpop.f32.mrb[102].mxu0 }
 0x7e7   : > { %v5872_v16 = vmul.f32 %v10137_v53, %v13623_v48  ;;  %v5966_v63 = vmul.f32 %v10145_v1, %v13624_v37  ;;  %v5848_v54 = vpop.f32.mrb[103].mxu1  ;;  %v5942_v51 = vpop.f32.mrb[103].mxu0  ;;  %v13632_v1 = vld [vmem:[#allocation68_spill] sm:$0xff] }
 0x7e8   : > { %v5871_v57 = vmul.f32 %v5848_v54, %v13625_v27  ;;  %v5965_v34 = vmul.f32 %v5942_v51, %v13626_v4  ;;  %v13633_v54 = vld [vmem:[#allocation21_spill] sm:$0xff] }
 0x7e9   : > { %v5970_v21 = vadd.f32 %v5966_v63, %v5872_v16 }
 0x7ea   : > { %v5969_v19 = vadd.f32 %v5965_v34, %v5871_v57  ;;  %v13634_v34 = vld [vmem:[#allocation22_spill] sm:$0xff] }
 0x7eb   : > { %v10140_v25 = vpop.f32.mrb[104].mxu1  ;;  %v10148_v40 = vpop.f32.mrb[104].mxu0 }
 0x7ec   : > { %v5874_v11 = vmul.f32 %v10140_v25, %v13627_v30  ;;  %v5968_v22 = vmul.f32 %v10148_v40, %v13628_v2  ;;  %v5858_v50 = vpop.f32.mrb[105].mxu1  ;;  %v5952_v56 = vpop.f32.mrb[105].mxu0  ;;  %v13637_v2 = vld [vmem:[#allocation25_spill] sm:$0xff] }
 0x7ed   : > { %v5873_v52 = vmul.f32 %v5858_v50, %v13629_v55  ;;  %v5967_v3 = vmul.f32 %v5952_v56, %v13630_v45  ;;  %v13635_v56 = vld [vmem:[#allocation14_spill] sm:$0xff]  ;;  %v13636_v45 = vld [vmem:[#allocation15_spill] sm:$0xff] }
 0x7ee   : > { %v5972_v44 = vadd.f32 %v5968_v22, %v5874_v11 }
 0x7ef   : > { %v5971_v43 = vadd.f32 %v5967_v3, %v5873_v52  ;;  %v10153_v24 = vpop.f32.mrb[106].mxu1  ;;  %v10161_v38 = vpop.f32.mrb[106].mxu0 }
 0x7f0   : > { %v6064_v7 = vmul.f32 %v10153_v24, %v13631_v14  ;;  %v6040_v60 = vpop.f32.mrb[107].mxu1  ;;  %v6138_v53 = vpop.f32.mrb[107].mxu0  ;;  %v6162_v51 = vmul.f32 %v10161_v38, %v13633_v54 }
 0x7f1   : > { %v6063_v16 = vmul.f32 %v6040_v60, %v13632_v1  ;;  %v6161_v25 = vmul.f32 %v6138_v53, %v13634_v34  ;;  %v13639_v53 = vld [vmem:[#allocation18_spill] sm:$0xff] }
 0x7f2   : > { %v6068_v63 = vadd.f32 %v6064_v7, %v5970_v21  ;;  %v13638_v21 = vld [vmem:[#allocation26_spill] sm:$0xff] }
 0x7f3   : > { %v6067_v57 = vadd.f32 %v6063_v16, %v5969_v19  ;;  %v10156_v40 = vpop.f32.mrb[108].mxu1  ;;  %v10164_v50 = vpop.f32.mrb[108].mxu0 }
 0x7f4   : > { %v6166_v55 = vadd.f32 %v6162_v51, %v6068_v63  ;;  %v6066_v11 = vmul.f32 %v10156_v40, %v13635_v56  ;;  %v6050_v22 = vpop.f32.mrb[109].mxu1  ;;  %v6148_v52 = vpop.f32.mrb[109].mxu0  ;;  %v6164_v30 = vmul.f32 %v10164_v50, %v13637_v2 }
 0x7f5   : > { %v6165_v3 = vadd.f32 %v6161_v25, %v6067_v57  ;;  %v6065_v24 = vmul.f32 %v6050_v22, %v13636_v45  ;;  %v6163_v7 = vmul.f32 %v6148_v52, %v13638_v21 }
 0x7f6   : > { %v6070_v14 = vadd.f32 %v6066_v11, %v5972_v44 }
 0x7f7   : > { %v6069_v60 = vadd.f32 %v6065_v24, %v5971_v43  ;;  %v10169_v38 = vpop.f32.mrb[110].mxu1  ;;  %v10177_v19 = vpop.f32.mrb[110].mxu0 }
 0x7f8   : > { %v6168_v16 = vadd.f32 %v6164_v30, %v6070_v14  ;;  %v6260_v34 = vmul.f32 %v10169_v38, %v13639_v53  ;;  %v6236_v54 = vpop.f32.mrb[111].mxu1  ;;  %v6334_v63 = vpop.f32.mrb[111].mxu0  ;;  %v6358_v57 = vmul.f32 %v10177_v19, %v13583_v28 }
 0x7f9   : > { %v6167_v51 = vadd.f32 %v6163_v7, %v6069_v60  ;;  %v6259_v40 = vmul.f32 %v6236_v54, %v13582_v36  ;;  %v6357_v44 = vmul.f32 %v6334_v63, %v13584_v46 }
 0x7fa   : > { %v6264_v56 = vadd.f32 %v6260_v34, %v6166_v55 }
 0x7fb   : > { %v6263_v25 = vadd.f32 %v6259_v40, %v6165_v3  ;;  %v10172_v50 = vpop.f32.mrb[112].mxu1  ;;  %v10180_v43 = vpop.f32.mrb[112].mxu0 }
 0x7fc   : > { %v6362_v11 = vadd.f32 %v6358_v57, %v6264_v56  ;;  %v6262_v22 = vmul.f32 %v10172_v50, %v13585_v10  ;;  %v6246_v52 = vpop.f32.mrb[113].mxu1  ;;  %v6344_v30 = vpop.f32.mrb[113].mxu0  ;;  %v6360_v60 = vmul.f32 %v10180_v43, %v12273_v20 }
 0x7fd   : > { %v6361_v14 = vadd.f32 %v6357_v44, %v6263_v25  ;;  %v6261_v24 = vmul.f32 %v6246_v52, %v13586_v59  ;;  %v6359_v55 = vmul.f32 %v6344_v30, %v12278_v26 }
 0x7fe   : > { %v6266_v38 = vadd.f32 %v6262_v22, %v6168_v16 }
 0x7ff   : > { %v6265_v54 = vadd.f32 %v6261_v24, %v6167_v51  ;;  %v10185_v34 = vpop.f32.mrb[114].mxu1  ;;  %v10193_v3 = vpop.f32.mrb[114].mxu0 }
 0x800   : > { %v6364_v7 = vadd.f32 %v6360_v60, %v6266_v38  ;;  %v6456_v19 = vmul.f32 %v10185_v34, %v12263_v62  ;;  %v6432_v63 = vpop.f32.mrb[115].mxu1  ;;  %v6530_v56 = vpop.f32.mrb[115].mxu0  ;;  %v6554_v25 = vmul.f32 %v10193_v3, %v12289_v15 }
 0x801   : > { %v6363_v40 = vadd.f32 %v6359_v55, %v6265_v54  ;;  %v6455_v57 = vmul.f32 %v6432_v63, %v12268_v31  ;;  %v6553_v16 = vmul.f32 %v6530_v56, %v12294_v42 }
 0x802   : > { %v6460_v50 = vadd.f32 %v6456_v19, %v6362_v11 }
 0x803   : > { %v6459_v44 = vadd.f32 %v6455_v57, %v6361_v14  ;;  %v10188_v43 = vpop.f32.mrb[116].mxu1  ;;  %v10196_v51 = vpop.f32.mrb[116].mxu0 }
 0x804   : > { %v6558_v22 = vadd.f32 %v6554_v25, %v6460_v50  ;;  %v6458_v52 = vmul.f32 %v10188_v43, %v12283_v35  ;;  %v6442_v30 = vpop.f32.mrb[117].mxu1  ;;  %v6540_v24 = vpop.f32.mrb[117].mxu0  ;;  %v6556_v54 = vmul.f32 %v10196_v51, %v12301_v61  ;;  %v13643_v51 = vld [vmem:[#allocation55_spill] sm:$0xff] }
 0x805   : > { %v6557_v38 = vadd.f32 %v6553_v16, %v6459_v44  ;;  %v6457_v60 = vmul.f32 %v6442_v30, %v12286_v17  ;;  %v6555_v11 = vmul.f32 %v6540_v24, %v12303_v13  ;;  %v12940_v16 = vld [vmem:[%s13277_s6 + $0x10] sm:$0xff]  ;;  %v13644_v30 = vld [vmem:[#allocation29_spill] sm:$0xff] }
 0x806   : > { %v6462_v34 = vadd.f32 %v6458_v52, %v6364_v7  ;;  %v13640_v7 = vld [vmem:[#allocation20_spill] sm:$0xff]  ;;  %13642 = vst [vmem:[#allocation33_spill] sm:$0xff] %v12940_v16 }
 0x807   : > { %v6461_v55 = vadd.f32 %v6457_v60, %v6363_v40  ;;  %v10747_v3 = vpack.c.bf16 %v6558_v22, %v6557_v38  ;;  %v12931_v40 = vld [vmem:[%s13277_s6 + $0x8] sm:$0xff] }
 0x808   : > { %v6560_v14 = vadd.f32 %v6556_v54, %v6462_v34  ;;  %13641 = vst [vmem:[#allocation19_spill] sm:$0xff] %v12931_v40  ;;  %v13645_v38 = vld [vmem:[#allocation31_spill] sm:$0xff]  ;;  %v13646_v34 = vld [vmem:[#allocation40_spill] sm:$0xff] }
 0x809   : > { %v6559_v19 = vadd.f32 %v6555_v11, %v6461_v55  ;;  %10748 = vmatprep.subr.bf16.mxu1 %v10747_v3  ;;  %v13647_v55 = vld [vmem:[#allocation56_spill] sm:$0xff] }
 0x80a   : > { %10750 = vmatpush3.bf16.msra.mxu1 %v10747_v3  ;;  %v12959_v3 = vld [vmem:[%s13277_s6 + $0x18] sm:$0xff] }
 0x80b   : > { %v10751_v63 = vpack.c.bf16 %v6560_v14, %v6559_v19  ;;  %13648 = vst [vmem:[#allocation35_spill] sm:$0xff] %v12959_v3  ;;  %v13649_v14 = vld [vmem:[#allocation30_spill] sm:$0xff] }
 0x80d   : > { %10752 = vmatprep.subr.bf16.mxu1 %v10751_v63 }
 0x80e   : > { %10754 = vmatpush3.bf16.msra.mxu1 %v10751_v63  ;;  %v13650_v63 = vld [vmem:[#allocation32_spill] sm:$0xff] }
 0x80f   : > { %v10235_v56 = vpop.f32.mrb[118].mxu0  ;;  %10771 = vmatprep.subr.bf16.mxu1 %v13487_v5 }
 0x810   : > { %v6764_v57 = vadd.f32 %v10235_v56, %v11775_v0  ;;  %v6758_v50 = vpop.f32.mrb[119].mxu0 }
 0x811   : > { %v6759_v25 = vadd.f32 %v6758_v50, %v13640_v7  ;;  %10206 = vmatmul.mubr.msk.f32.vlgmr.msra.gmra.mrb[118].mxu1 %vm1720_vm2, %v12931_v40 }
 0x812   : > { %v12935_v44 = vmax.f32 %v6764_v57, 0.0  ;;  %10208 = vmatprep.mubr.msk.f32.mxu1 %vm1720_vm2, %v12940_v16  ;;  %v13651_v57 = vld [vmem:[#allocation41_spill] sm:$0xff] }
 0x813   : > { %v12944_v0 = vmax.f32 %v6759_v25, 0.0  ;;  %v10238_v43 = vpop.f32.mrb[120].mxu0  ;;  %v12972_v25 = vld [vmem:[%s13277_s6 + $0x20] sm:$0xff] }
 0x814   : > { %v6774_v22 = vadd.f32 %v10238_v43, %v13643_v51  ;;  %v6768_v52 = vpop.f32.mrb[121].mxu0  ;;  %v6786_v24 = vmul.f32 %v12935_v44, %v13644_v30  ;;  %v6864_v60 = vmul.f32 %v12935_v44, %v13645_v38  ;;  %v12953_v54 = vmul.f32 %v12935_v44, %v13646_v34  ;;  %13652 = vst [vmem:[#allocation23_spill] sm:$0xff] %v12972_v25  ;;  %v13653_v43 = vld [vmem:[#allocation37_spill] sm:$0xff]  ;;  %v13655_v38 = vld [vmem:[#allocation50_spill] sm:$0xff] }
 0x815   : > { %v6769_v11 = vadd.f32 %v6768_v52, %v13647_v55  ;;  %10209 = vmatmul.mubr.msk.f32.gmra.mrb[120].mxu1 %vm1720_vm2, %v12959_v3  ;;  %v6785_v19 = vmul.f32 %v12944_v0, %v13649_v14  ;;  %v6863_v56 = vmul.f32 %v12944_v0, %v13650_v63  ;;  %v7019_v50 = vmul.f32 %v12944_v0, %v13651_v57  ;;  %v13654_v52 = vld [vmem:[#allocation36_spill] sm:$0xff] }
 0x816   : > { %v6780_v7 = vmax.f32 %v6774_v22, 0.0  ;;  %10211 = vmatprep.mubr.msk.f32.mxu1 %vm1720_vm2, %v12972_v25  ;;  %v6941_v51 = vmul.f32 %v12944_v0, %v13653_v43  ;;  %v6942_v30 = vmul.f32 %v12935_v44, %v13654_v52  ;;  %v12982_v34 = vmul.f32 %v12944_v0, %v13655_v38  ;;  %v13656_v52 = vld [vmem:[#allocation38_spill] sm:$0xff]  ;;  %v13657_v38 = vld [vmem:[#allocation47_spill] sm:$0xff] }
 0x817   : > { %v6779_v55 = vmax.f32 %v6769_v11, 0.0  ;;  %v10772_v22 = vpack.c.bf16 %v6786_v24, %v6785_v19  ;;  %v10778_v14 = vpack.c.bf16 %v6864_v60, %v6863_v56  ;;  %v10790_v63 = vpack.c.bf16 %v12953_v54, %v7019_v50  ;;  %v12994_v24 = vld [vmem:[%s13277_s6 + $0x28] sm:$0xff]  ;;  %v13660_v54 = vld [vmem:[#allocation49_spill] sm:$0xff]  ;;  %v13007_v11 = vld [vmem:[%s13277_s6 + $0x30] sm:$0xff] }
 0x818   : > { %v6788_v57 = vmul.f32 %v6780_v7, %v11816_v32  ;;  %v6866_v3 = vmul.f32 %v6780_v7, %v11821_v49  ;;  %v10784_v25 = vpack.c.bf16 %v6942_v30, %v6941_v51  ;;  %v7022_v16 = vmul.f32 %v6780_v7, %v11868_v18  ;;  %v13658_v49 = vld [vmem:[#allocation46_spill] sm:$0xff]  ;;  %v13659_v18 = vld [vmem:[#allocation43_spill] sm:$0xff] }
 0x819   : > { %10773 = vmatpush3.bf16.msra.mxu1 %v10772_v22  ;;  %10779 = vmatpush3.bf16.msra.mxu0 %v10778_v14  ;;  %v6787_v43 = vmul.f32 %v6779_v55, %v11818_v33  ;;  %v6865_v40 = vmul.f32 %v6779_v55, %v13656_v52  ;;  %v7021_v13 = vmul.f32 %v6779_v55, %v13657_v38 }
 0x81a   : > { %10212 = vmatmul.mubr.msk.f32.gmra.mrb[122].mxu1 %vm1720_vm2, %v12994_v24  ;;  %10774 = vmatprep.subr.bf16.mxu1 %v13487_v5  ;;  %v6943_v32 = vmul.f32 %v6779_v55, %v13658_v49  ;;  %v6944_v60 = vmul.f32 %v6780_v7, %v13659_v18  ;;  %v7176_v33 = vmul.f32 %v12935_v44, %v13660_v54  ;;  %v13666_v54 = vld [vmem:[#allocation58_spill] sm:$0xff] }
 0x81b   : > { %10780 = vmatprep.subr.bf16.mxu0 %v13487_v5  ;;  %10214 = vmatprep.mubr.msk.f32.mxu1 %vm1720_vm2, %v13007_v11  ;;  %v10775_v19 = vpack.c.bf16 %v6788_v57, %v6787_v43  ;;  %v10781_v56 = vpack.c.bf16 %v6866_v3, %v6865_v40  ;;  %v10793_v50 = vpack.c.bf16 %v7022_v16, %v7021_v13  ;;  %v13022_v13 = vld [vmem:[%s13277_s6 + $0x38] sm:$0xff] }
 0x81c   : > { %v10787_v51 = vpack.c.bf16 %v6944_v60, %v6943_v32  ;;  %v10802_v30 = vpack.c.bf16 %v7176_v33, %v12982_v34  ;;  %v7097_v22 = vmul.f32 %v12944_v0, %v13606_v29  ;;  %v7098_v14 = vmul.f32 %v12935_v44, %v11873_v41  ;;  %v13662_v16 = vld [vmem:[#allocation53_spill] sm:$0xff]  ;;  %v13665_v32 = vld [vmem:[#allocation59_spill] sm:$0xff] }
 0x81d   : > { %10776 = vmatpush3.bf16.msra.mxu1 %v10775_v19  ;;  %10782 = vmatpush3.bf16.msra.mxu0 %v10781_v56  ;;  %v7177_v52 = vmul.f32 %v6779_v55, %v11888_v9  ;;  %v7178_v38 = vmul.f32 %v6780_v7, %v11885_v58  ;;  %v7099_v49 = vmul.f32 %v6779_v55, %v11883_v8  ;;  %v13661_v58 = vld [vmem:[#allocation54_spill] sm:$0xff]  ;;  %v13667_v19 = vld [vmem:[#allocation57_spill] sm:$0xff] }
 0x81e   : > { %10215 = vmatmul.mubr.msk.f32.gmra.mrb[124].mxu1 %vm1720_vm2, %v13022_v13  ;;  %10789 = vmatprep.subr.bf16.mxu0 %v13487_v5  ;;  %v10796_v29 = vpack.c.bf16 %v7098_v14, %v7097_v22  ;;  %v7100_v41 = vmul.f32 %v6780_v7, %v13608_v12  ;;  %v7331_v9 = vmul.f32 %v12944_v0, %v11899_v39  ;;  %v13663_v12 = vld [vmem:[#allocation52_spill] sm:$0xff]  ;;  %v13664_v39 = vld [vmem:[#allocation61_spill] sm:$0xff] }
 0x81f   : > { %10247 = vmatprep.mubr.msk.f32.mxu1 %vm11157_vm1, %v13491_v47  ;;  %10783 = vmatprep.subr.bf16.mxu1 %v13487_v5  ;;  %v10805_v8 = vpack.c.bf16 %v7178_v38, %v7177_v52  ;;  %v7332_v40 = vmul.f32 %v12935_v44, %v13661_v58  ;;  %v7253_v3 = vmul.f32 %v12944_v0, %v13662_v16  ;;  %v13670_v52 = vld [vmem:[#allocation72_spill] sm:$0xff]  ;;  %v13672_v58 = vld [vmem:[#allocation74_spill] sm:$0xff] }
 0x820   : > { %10259 = vmatmul.mubr.msk.f32.vlgmr.msra.gmra.mrb[122].mxu0 %vm1720_vm2, %v12725_v6  ;;  %v10799_v34 = vpack.c.bf16 %v7100_v41, %v7099_v49  ;;  %v7254_v57 = vmul.f32 %v12935_v44, %v13663_v12  ;;  %v7333_v43 = vmul.f32 %v6779_v55, %v13664_v39  ;;  %v7334_v18 = vmul.f32 %v6780_v7, %v13665_v32 }
 0x821   : > { %10791 = vmatpush3.bf16.msra.mxu0 %v10790_v63  ;;  %10280 = vmatprep.mubr.msk.f32.mxu0 %vm11157_vm1, %v13491_v47  ;;  %v10814_v60 = vpack.c.bf16 %v7332_v40, %v7331_v9  ;;  %v7255_v33 = vmul.f32 %v6779_v55, %v13666_v54  ;;  %v7256_v0 = vmul.f32 %v6780_v7, %v13667_v19  ;;  %v13082_v7 = vld [vmem:[%s13280_s9] sm:$0xff] }
 0x822   : > { %10248 = vmatmul.mubr.msk.f32.vlgmr.msra.gmra.mrb[126].mxu1 %vm1720_vm2, %v12725_v6  ;;  %10792 = vmatprep.subr.bf16.mxu0 %v13487_v5  ;;  %v10808_v56 = vpack.c.bf16 %v7254_v57, %v7253_v3  ;;  %v10817_v44 = vpack.c.bf16 %v7334_v18, %v7333_v43  ;;  %v13673_v3 = vld [vmem:[#allocation75_spill] sm:$0xff]  ;;  %v13674_v43 = vld [vmem:[#allocation76_spill] sm:$0xff] }
 0x823   : > { %10785 = vmatpush3.bf16.msra.mxu1 %v10784_v25  ;;  %10269 = vmatprep.mubr.msk.f32.mxu1 %vm11157_vm1, %v13491_v47  ;;  %v10811_v63 = vpack.c.bf16 %v7256_v0, %v7255_v33 }
 0x824   : > { %10786 = vmatprep.subr.bf16.mxu1 %v13487_v5 }
 0x825   : > { %10794 = vmatpush3.bf16.msra.mxu0 %v10793_v50  ;;  %v13669_v50 = vld [vmem:[#allocation71_spill] sm:$0xff] }
 0x826   : > { %10801 = vmatprep.subr.bf16.mxu0 %v13487_v5 }
 0x827   : > { %10788 = vmatpush3.bf16.msra.mxu1 %v10787_v51 }
 0x828   : > { %10281 = vmatmul.mubr.msk.f32.vlgmr.msra.gmra.mrb[124].mxu0 %vm1720_vm2, %v12725_v6  ;;  %10795 = vmatprep.subr.bf16.mxu1 %v13487_v5 }
 0x829   : > { %10803 = vmatpush3.bf16.msra.mxu0 %v10802_v30  ;;  %10302 = vmatprep.mubr.msk.f32.mxu0 %vm11157_vm1, %v13491_v47 }
 0x82a   : > { %10270 = vmatmul.mubr.msk.f32.vlgmr.msra.gmra.mrb[128].mxu1 %vm1720_vm2, %v12725_v6  ;;  %10804 = vmatprep.subr.bf16.mxu0 %v13487_v5 }
 0x82b   : > { %10797 = vmatpush3.bf16.msra.mxu1 %v10796_v29  ;;  %10291 = vmatprep.mubr.msk.f32.mxu1 %vm11157_vm1, %v13491_v47 }
 0x82c   : > { %10798 = vmatprep.subr.bf16.mxu1 %v13487_v5 }
 0x82d   : > { %10806 = vmatpush3.bf16.msra.mxu0 %v10805_v8 }
 0x82e   : > { %10813 = vmatprep.subr.bf16.mxu0 %v13487_v5 }
 0x82f   : > { %10800 = vmatpush3.bf16.msra.mxu1 %v10799_v34 }
 0x830   : > { %10303 = vmatmul.mubr.msk.f32.vlgmr.msra.gmra.mrb[126].mxu0 %vm1720_vm2, %v12725_v6  ;;  %10807 = vmatprep.subr.bf16.mxu1 %v13487_v5 }
 0x831   : > { %10815 = vmatpush3.bf16.msra.mxu0 %v10814_v60  ;;  %10324 = vmatprep.mubr.msk.f32.mxu0 %vm11157_vm1, %v13491_v47  ;;  %v13675_v60 = vld [vmem:[#allocation77_spill] sm:$0xff] }
 0x832   : > { %10292 = vmatmul.mubr.msk.f32.vlgmr.msra.gmra.mrb[130].mxu1 %vm1720_vm2, %v12725_v6  ;;  %10816 = vmatprep.subr.bf16.mxu0 %v13487_v5 }
 0x833   : > { %10809 = vmatpush3.bf16.msra.mxu1 %v10808_v56  ;;  %10313 = vmatprep.mubr.msk.f32.mxu1 %vm11157_vm1, %v13491_v47  ;;  %v13668_v47 = vld [vmem:[#allocation60_spill] sm:$0xff] }
 0x834   : > { %10810 = vmatprep.subr.bf16.mxu1 %v13487_v5 }
 0x835   : > { %10818 = vmatpush3.bf16.msra.mxu0 %v10817_v44 }
 0x837   : > { %10812 = vmatpush3.bf16.msra.mxu1 %v10811_v63 }
 0x838   : > { %10325 = vmatmul.mubr.msk.f32.vlgmr.msra.gmra.mrb[128].mxu0 %vm1720_vm2, %v12725_v6 }
 0x839   : > { %10337 = vmatprep.mubr.msk.f32.mxu0 %vm2380_vm3, %v13082_v7 }
 0x83a   : > { %10314 = vmatmul.mubr.msk.f32.vlgmr.msra.gmra.mrb[132].mxu1 %vm1720_vm2, %v12725_v6  ;;  %v13671_v6 = vld [vmem:[#allocation73_spill] sm:$0xff] }
 0x83b   : > { %10329 = vmatprep.mubr.msk.f32.mxu1 %vm2380_vm3, %v13082_v7 }
 0x8e4   : > { %v10207_v5 = vpop.f32.mrb[118].mxu1 }
 0x8e5   : > { %v6633_v25 = vadd.f32 %v10207_v5, %v13668_v47  ;;  %v6627_v55 = vpop.f32.mrb[119].mxu1 }
 0x8e6   : > { %v6628_v51 = vadd.f32 %v6627_v55, %v13669_v50 }
 0x8e7   : > { %v6667_v30 = vmax.f32 %v6633_v25, 0.0 }
 0x8e8   : > { %v6666_v22 = vmax.f32 %v6628_v51, 0.0  ;;  %v10210_v14 = vpop.f32.mrb[120].mxu1 }
 0x8e9   : > { %8785 = vst [vmem:[%s12465_s23 + $0x88] sm:$0xff] %v6667_v30  ;;  %v6643_v38 = vadd.f32 %v10210_v14, %v13670_v52  ;;  %v6637_v49 = vpop.f32.mrb[121].mxu1 }
 0x8ea   : > { %8784 = vst [vmem:[%s12465_s23 + $0x80] sm:$0xff] %v6666_v22  ;;  %v6638_v29 = vadd.f32 %v6637_v49, %v13671_v6 }
 0x8eb   : > { %v6669_v41 = vmax.f32 %v6643_v38, 0.0 }
 0x8ec   : > { %v6668_v9 = vmax.f32 %v6638_v29, 0.0 }
 0x8ed   : > { %8787 = vst [vmem:[%s12465_s23 + $0x98] sm:$0xff] %v6669_v41  ;;  %v10213_v8 = vpop.f32.mrb[122].mxu1 }
 0x8ee   : > { %8786 = vst [vmem:[%s12465_s23 + $0x90] sm:$0xff] %v6668_v9  ;;  %v6653_v40 = vadd.f32 %v10213_v8, %v13672_v58  ;;  %v6647_v16 = vpop.f32.mrb[123].mxu1 }
 0x8ef   : > { %v6648_v34 = vadd.f32 %v6647_v16, %v13673_v3 }
 0x8f0   : > { %v6671_v12 = vmax.f32 %v6653_v40, 0.0 }
 0x8f1   : > { %v6670_v57 = vmax.f32 %v6648_v34, 0.0  ;;  %v10216_v39 = vpop.f32.mrb[124].mxu1 }
 0x8f2   : > { %8789 = vst [vmem:[%s12465_s23 + $0xa8] sm:$0xff] %v6671_v12  ;;  %v6663_v32 = vadd.f32 %v10216_v39, %v13674_v43  ;;  %v6657_v18 = vpop.f32.mrb[125].mxu1 }
 0x8f3   : > { %8788 = vst [vmem:[%s12465_s23 + $0xa0] sm:$0xff] %v6670_v57  ;;  %v6658_v54 = vadd.f32 %v6657_v18, %v13675_v60  ;;  %v6933_v33 = vpop.f32.mrb[122].mxu0 }
 0x8f4   : > { %v6673_v19 = vmax.f32 %v6663_v32, 0.0  ;;  %v10260_v0 = vpop.f32.mrb[123].mxu0 }
 0x8f5   : > { %v6672_v56 = vmax.f32 %v6658_v54, 0.0  ;;  %v6855_v44 = vpop.f32.mrb[126].mxu1 }
 0x8f6   : > { %8791 = vst [vmem:[%s12465_s23 + $0xb8] sm:$0xff] %v6673_v19  ;;  %v10249_v63 = vpop.f32.mrb[127].mxu1  ;;  %v7405_v5 = vmax.f32 %v6855_v44, %v6933_v33 }
 0x8f7   : > { %8790 = vst [vmem:[%s12465_s23 + $0xb0] sm:$0xff] %v6672_v56 }
 0x8fb   : > { %v7089_v25 = vpop.f32.mrb[124].mxu0 }
 0x8fc   : > { %v10282_v55 = vpop.f32.mrb[125].mxu0 }
 0x8fd   : > { %v7011_v51 = vpop.f32.mrb[128].mxu1 }
 0x8fe   : > { %v7406_v30 = vmax.f32 %v7405_v5, %v7011_v51  ;;  %v10271_v22 = vpop.f32.mrb[129].mxu1 }
 0x900   : > { %v7407_v14 = vmax.f32 %v7406_v30, %v7089_v25 }
 0x903   : > { %v7245_v38 = vpop.f32.mrb[126].mxu0 }
 0x904   : > { %v10304_v49 = vpop.f32.mrb[127].mxu0 }
 0x905   : > { %v7167_v29 = vpop.f32.mrb[130].mxu1 }
 0x906   : > { %v7408_v41 = vmax.f32 %v7407_v14, %v7167_v29  ;;  %v10293_v9 = vpop.f32.mrb[131].mxu1 }
 0x908   : > { %v7409_v8 = vmax.f32 %v7408_v41, %v7245_v38 }
 0x90b   : > { %v7401_v40 = vpop.f32.mrb[128].mxu0 }
 0x90c   : > { %v10326_v16 = vpop.f32.mrb[129].mxu0 }
 0x90d   : > { %v7323_v34 = vpop.f32.mrb[132].mxu1 }
 0x90e   : > { %v7410_v12 = vmax.f32 %v7409_v8, %v7323_v34  ;;  %v10315_v57 = vpop.f32.mrb[133].mxu1 }
 0x910   : > { %v7411_v39 = vmax.f32 %v7410_v12, %v7401_v40 }
 0x912   : > { %v7412_v32 = vsub.f32 %v6855_v44, %v7411_v39  ;;  %v7415_v18 = vsub.f32 %v6933_v33, %v7411_v39  ;;  %v7418_v54 = vsub.f32 %v7011_v51, %v7411_v39  ;;  %v7421_v19 = vsub.f32 %v7089_v25, %v7411_v39 }
 0x913   : > { %v7424_v0 = vsub.f32 %v7167_v29, %v7411_v39  ;;  %v7427_v56 = vsub.f32 %v7245_v38, %v7411_v39  ;;  %v7430_v63 = vsub.f32 %v7323_v34, %v7411_v39  ;;  %v7433_v5 = vsub.f32 %v7401_v40, %v7411_v39 }
 0x914   : > { %v7413_v55 = vmul.f32 1.442695, %v7412_v32  ;;  %v7416_v30 = vmul.f32 1.442695, %v7415_v18  ;;  %v7419_v22 = vmul.f32 1.442695, %v7418_v54 }
 0x915   : > { %v7422_v14 = vmul.f32 1.442695, %v7421_v19  ;;  %v7425_v49 = vmul.f32 1.442695, %v7424_v0  ;;  %v7428_v41 = vmul.f32 1.442695, %v7427_v56 }
 0x916   : > { %10966 = vpow2.f32 %v7413_v55  ;;  %v7431_v9 = vmul.f32 1.442695, %v7430_v63  ;;  %v7434_v33 = vmul.f32 1.442695, %v7433_v5 }
 0x917   : > { %10968 = vpow2.f32 %v7416_v30 }
 0x918   : > { %10970 = vpow2.f32 %v7419_v22 }
 0x919   : > { %10972 = vpow2.f32 %v7422_v14 }
 0x91a   : > { %10974 = vpow2.f32 %v7425_v49  ;;  %v11002_v49 = vld [vmem:[%s13280_s9 + $0x8] sm:$0xff] }
 0x91b   : > { %10976 = vpow2.f32 %v7428_v41  ;;  %v11003_v41 = vld [vmem:[%s13280_s9 + $0x10] sm:$0xff] }
 0x91c   : > { %10978 = vpow2.f32 %v7431_v9  ;;  %v11004_v9 = vld [vmem:[%s13280_s9 + $0x18] sm:$0xff] }
 0x91d   : > { %10980 = vpow2.f32 %v7434_v33 }
 0x920   : > { %v10967_v44 = vpop.eup %10966 }
 0x921   : > { %v10969_v25 = vpop.eup %10968 }
 0x922   : > { %v7436_v51 = vadd.f32 %v10969_v25, %v10967_v44  ;;  %v10971_v38 = vpop.eup %10970 }
 0x923   : > { %v10973_v8 = vpop.eup %10972 }
 0x924   : > { %v7437_v29 = vadd.f32 %v10971_v38, %v7436_v51  ;;  %v10975_v16 = vpop.eup %10974 }
 0x925   : > { %v10977_v12 = vpop.eup %10976 }
 0x926   : > { %v7438_v40 = vadd.f32 %v10973_v8, %v7437_v29  ;;  %v10979_v39 = vpop.eup %10978 }
 0x927   : > { %v10981_v18 = vpop.eup %10980 }
 0x928   : > { %v7439_v34 = vadd.f32 %v10975_v16, %v7438_v40 }
 0x92a   : > { %v7440_v57 = vadd.f32 %v10977_v12, %v7439_v34 }
 0x92c   : > { %v7441_v32 = vadd.f32 %v10979_v39, %v7440_v57  ;;  %v13676_v57 = vld [vmem:[#allocation17_spill] sm:$0xff] }
 0x92e   : > { %v7442_v54 = vadd.f32 %v10981_v18, %v7441_v32  ;;  %v13677_v32 = vld [vmem:[#allocation16_spill] sm:$0xff] }
 0x930   : > { %10982 = vrcp.f32 %v7442_v54 }
 0x93a   : > { %v10983_v19 = vpop.eup %10982 }
 0x93b   : > { %v7444_v0 = vmul.f32 %v10983_v19, %v10967_v44  ;;  %v7538_v56 = vmul.f32 %v10983_v19, %v10969_v25  ;;  %v7636_v63 = vmul.f32 %v10983_v19, %v10971_v38  ;;  %v7734_v5 = vmul.f32 %v10983_v19, %v10973_v8 }
 0x93c   : > { %v7832_v55 = vmul.f32 %v10983_v19, %v10975_v16  ;;  %v7930_v30 = vmul.f32 %v10983_v19, %v10977_v12  ;;  %v8028_v22 = vmul.f32 %v10983_v19, %v10979_v39  ;;  %v8126_v14 = vmul.f32 %v10983_v19, %v10981_v18  ;;  %v13678_v19 = vld [vmem:[#allocation67_spill] sm:$0xff] }
 0x93d   : > { %10327 = vmatprep.subr.mxu1 %v7444_v0  ;;  %10335 = vmatprep.subr.mxu0 %v7538_v56 }
 0x93e   : > { %10328 = vmatpush3.msra.mxu1 %v7444_v0  ;;  %10336 = vmatpush3.msra.mxu0 %v7538_v56  ;;  %v13679_v0 = vld [vmem:[#allocation69_spill] sm:$0xff] }
 0x93f   : > { %10330 = vmatmul.mubr.msk.f32.vlgmr.msra.gmra.mrb[134].mxu1 %vm2380_vm3, %v11002_v49  ;;  %10338 = vmatmul.mubr.msk.f32.vlgmr.msra.gmra.mrb[130].mxu0 %vm2380_vm3, %v11002_v49 }
 0x940   : > { %10343 = vmatprep.subr.mxu1 %v7636_v63  ;;  %10351 = vmatprep.subr.mxu0 %v7734_v5 }
 0x941   : > { %10344 = vmatpush3.msra.mxu1 %v7636_v63  ;;  %10352 = vmatpush3.msra.mxu0 %v7734_v5 }
 0x942   : > { %10359 = vmatprep.subr.mxu1 %v7832_v55  ;;  %10367 = vmatprep.subr.mxu0 %v7930_v30 }
 0x943   : > { %10332 = vmatprep.mubr.msk.f32.mxu1 %vm2380_vm3, %v11003_v41  ;;  %10340 = vmatprep.mubr.msk.f32.mxu0 %vm2380_vm3, %v11003_v41 }
 0x944   : > { %10333 = vmatmul.mubr.msk.f32.gmra.mrb[136].mxu1 %vm2380_vm3, %v11004_v9  ;;  %10341 = vmatmul.mubr.msk.f32.gmra.mrb[132].mxu0 %vm2380_vm3, %v11004_v9 }
 0x945   : > { %10345 = vmatprep.mubr.msk.f32.mxu1 %vm2380_vm3, %v13082_v7  ;;  %10353 = vmatprep.mubr.msk.f32.mxu0 %vm2380_vm3, %v13082_v7 }
 0x948   : > { %10346 = vmatmul.mubr.msk.f32.vlgmr.msra.gmra.mrb[138].mxu1 %vm2380_vm3, %v11002_v49  ;;  %10354 = vmatmul.mubr.msk.f32.vlgmr.msra.gmra.mrb[134].mxu0 %vm2380_vm3, %v11002_v49 }
 0x949   : > { %10360 = vmatpush3.msra.mxu1 %v7832_v55  ;;  %10368 = vmatpush3.msra.mxu0 %v7930_v30  ;;  %v13680_v55 = vld [vmem:[#allocation66_spill] sm:$0xff] }
 0x94a   : > { %10375 = vmatprep.subr.mxu1 %v8028_v22  ;;  %10383 = vmatprep.subr.mxu0 %v8126_v14 }
 0x94b   : > { %10348 = vmatprep.mubr.msk.f32.mxu1 %vm2380_vm3, %v11003_v41  ;;  %10356 = vmatprep.mubr.msk.f32.mxu0 %vm2380_vm3, %v11003_v41 }
 0x94c   : > { %10349 = vmatmul.mubr.msk.f32.gmra.mrb[140].mxu1 %vm2380_vm3, %v11004_v9  ;;  %10357 = vmatmul.mubr.msk.f32.gmra.mrb[136].mxu0 %vm2380_vm3, %v11004_v9 }
 0x94d   : > { %10361 = vmatprep.mubr.msk.f32.mxu1 %vm2380_vm3, %v13082_v7  ;;  %10369 = vmatprep.mubr.msk.f32.mxu0 %vm2380_vm3, %v13082_v7 }
 0x950   : > { %10362 = vmatmul.mubr.msk.f32.vlgmr.msra.gmra.mrb[142].mxu1 %vm2380_vm3, %v11002_v49  ;;  %10370 = vmatmul.mubr.msk.f32.vlgmr.msra.gmra.mrb[138].mxu0 %vm2380_vm3, %v11002_v49 }
 0x951   : > { %10376 = vmatpush3.msra.mxu1 %v8028_v22  ;;  %10384 = vmatpush3.msra.mxu0 %v8126_v14 }
 0x952   : > { %10364 = vmatprep.mubr.msk.f32.mxu1 %vm2380_vm3, %v11003_v41  ;;  %10372 = vmatprep.mubr.msk.f32.mxu0 %vm2380_vm3, %v11003_v41 }
 0x954   : > { %10365 = vmatmul.mubr.msk.f32.gmra.mrb[144].mxu1 %vm2380_vm3, %v11004_v9  ;;  %10373 = vmatmul.mubr.msk.f32.gmra.mrb[140].mxu0 %vm2380_vm3, %v11004_v9 }
 0x955   : > { %10377 = vmatprep.mubr.msk.f32.mxu1 %vm2380_vm3, %v13082_v7  ;;  %10385 = vmatprep.mubr.msk.f32.mxu0 %vm2380_vm3, %v13082_v7 }
 0x958   : > { %10378 = vmatmul.mubr.msk.f32.vlgmr.msra.gmra.mrb[146].mxu1 %vm2380_vm3, %v11002_v49  ;;  %10386 = vmatmul.mubr.msk.f32.vlgmr.msra.gmra.mrb[142].mxu0 %vm2380_vm3, %v11002_v49 }
 0x959   : > { %10380 = vmatprep.mubr.msk.f32.mxu1 %vm2380_vm3, %v11003_v41  ;;  %10388 = vmatprep.mubr.msk.f32.mxu0 %vm2380_vm3, %v11003_v41  ;;  %v13681_v41 = vld [vmem:[#allocation21_spill] sm:$0xff] }
 0x95c   : > { %10381 = vmatmul.mubr.msk.f32.gmra.mrb[148].mxu1 %vm2380_vm3, %v11004_v9  ;;  %10389 = vmatmul.mubr.msk.f32.gmra.mrb[144].mxu0 %vm2380_vm3, %v11004_v9 }
 0x95d   : > { %10399 = vmatprep.mubr.msk.f32.mxu1 %vm1720_vm2, %v12880_v23 }
 0xa12   : > { %v10331_v33 = vpop.f32.mrb[134].mxu1  ;;  %v10339_v44 = vpop.f32.mrb[130].mxu0 }
 0xa13   : > { %v7535_v25 = vmul.f32 %v10331_v33, %v13623_v48  ;;  %v7629_v7 = vmul.f32 %v10339_v44, %v13624_v37  ;;  %v7511_v51 = vpop.f32.mrb[135].mxu1  ;;  %v7605_v38 = vpop.f32.mrb[131].mxu0  ;;  %v13682_v44 = vld [vmem:[#allocation22_spill] sm:$0xff] }
 0xa14   : > { %v7534_v29 = vmul.f32 %v7511_v51, %v13625_v27  ;;  %v7628_v8 = vmul.f32 %v7605_v38, %v13626_v4 }
 0xa15   : > { %v7633_v40 = vadd.f32 %v7629_v7, %v7535_v25 }
 0xa16   : > { %v7632_v16 = vadd.f32 %v7628_v8, %v7534_v29  ;;  %v13683_v29 = vld [vmem:[#allocation14_spill] sm:$0xff] }
 0xa17   : > { %v10334_v34 = vpop.f32.mrb[136].mxu1  ;;  %v10342_v12 = vpop.f32.mrb[132].mxu0 }
 0xa18   : > { %v7537_v39 = vmul.f32 %v10334_v34, %v13676_v57  ;;  %v7631_v23 = vmul.f32 %v10342_v12, %v13677_v32  ;;  %v7521_v18 = vpop.f32.mrb[137].mxu1  ;;  %v7615_v54 = vpop.f32.mrb[133].mxu0 }
 0xa19   : > { %v7536_v48 = vmul.f32 %v7521_v18, %v13678_v19  ;;  %v7630_v37 = vmul.f32 %v7615_v54, %v13679_v0 }
 0xa1a   : > { %v7635_v56 = vadd.f32 %v7631_v23, %v7537_v39 }
 0xa1b   : > { %v7634_v63 = vadd.f32 %v7630_v37, %v7536_v48  ;;  %v10347_v5 = vpop.f32.mrb[138].mxu1  ;;  %v10355_v27 = vpop.f32.mrb[134].mxu0 }
 0xa1c   : > { %v7727_v4 = vmul.f32 %v10347_v5, %v13680_v55  ;;  %v7703_v30 = vpop.f32.mrb[139].mxu1  ;;  %v7801_v22 = vpop.f32.mrb[135].mxu0  ;;  %v7825_v9 = vmul.f32 %v10355_v27, %v13681_v41 }
 0xa1d   : > { %v7726_v14 = vmul.f32 %v7703_v30, %v13632_v1  ;;  %v7824_v25 = vmul.f32 %v7801_v22, %v13682_v44 }
 0xa1e   : > { %v7731_v49 = vadd.f32 %v7727_v4, %v7633_v40 }
 0xa1f   : > { %v7730_v33 = vadd.f32 %v7726_v14, %v7632_v16  ;;  %v10350_v7 = vpop.f32.mrb[140].mxu1  ;;  %v10358_v51 = vpop.f32.mrb[136].mxu0 }
 0xa20   : > { %v7829_v38 = vadd.f32 %v7825_v9, %v7731_v49  ;;  %v7729_v8 = vmul.f32 %v10350_v7, %v13683_v29  ;;  %v7713_v34 = vpop.f32.mrb[141].mxu1  ;;  %v7811_v12 = vpop.f32.mrb[137].mxu0  ;;  %v7827_v23 = vmul.f32 %v10358_v51, %v13637_v2 }
 0xa21   : > { %v7828_v57 = vadd.f32 %v7824_v25, %v7730_v33  ;;  %v7728_v39 = vmul.f32 %v7713_v34, %v13636_v45  ;;  %v7826_v40 = vmul.f32 %v7811_v12, %v13638_v21 }
 0xa22   : > { %v7733_v32 = vadd.f32 %v7729_v8, %v7635_v56 }
 0xa23   : > { %v7732_v1 = vadd.f32 %v7728_v39, %v7634_v63  ;;  %v10363_v18 = vpop.f32.mrb[142].mxu1  ;;  %v10371_v16 = vpop.f32.mrb[138].mxu0 }
 0xa24   : > { %v7831_v54 = vadd.f32 %v7827_v23, %v7733_v32  ;;  %v7923_v19 = vmul.f32 %v10363_v18, %v13639_v53  ;;  %v7899_v48 = vpop.f32.mrb[143].mxu1  ;;  %v7997_v0 = vpop.f32.mrb[139].mxu0  ;;  %v8021_v55 = vmul.f32 %v10371_v16, %v13583_v28 }
 0xa25   : > { %v7830_v37 = vadd.f32 %v7826_v40, %v7732_v1  ;;  %v7922_v5 = vmul.f32 %v7899_v48, %v13582_v36  ;;  %v8020_v56 = vmul.f32 %v7997_v0, %v13584_v46  ;;  %v13684_v40 = vld [vmem:[#allocation27_spill] sm:$0xff] }
 0xa26   : > { %v7927_v27 = vadd.f32 %v7923_v19, %v7829_v38  ;;  %v13686_v19 = vld [vmem:[#allocation33_spill] sm:$0xff] }
 0xa27   : > { %v7926_v45 = vadd.f32 %v7922_v5, %v7828_v57  ;;  %v10366_v2 = vpop.f32.mrb[144].mxu1  ;;  %v10374_v63 = vpop.f32.mrb[140].mxu0 }
 0xa28   : > { %v8025_v4 = vadd.f32 %v8021_v55, %v7927_v27  ;;  %v7925_v21 = vmul.f32 %v10366_v2, %v13585_v10  ;;  %v7909_v30 = vpop.f32.mrb[145].mxu1  ;;  %v8007_v22 = vpop.f32.mrb[141].mxu0  ;;  %v8023_v41 = vmul.f32 %v10374_v63, %v12273_v20 }
 0xa29   : > { %v8024_v14 = vadd.f32 %v8020_v56, %v7926_v45  ;;  %v7924_v53 = vmul.f32 %v7909_v30, %v13586_v59  ;;  %v8022_v9 = vmul.f32 %v8007_v22, %v12278_v26 }
 0xa2a   : > { %v7929_v49 = vadd.f32 %v7925_v21, %v7831_v54 }
 0xa2b   : > { %v7928_v36 = vadd.f32 %v7924_v53, %v7830_v37  ;;  %v10379_v28 = vpop.f32.mrb[146].mxu1  ;;  %v10387_v33 = vpop.f32.mrb[142].mxu0 }
 0xa2c   : > { %v8027_v44 = vadd.f32 %v8023_v41, %v7929_v49  ;;  %v8119_v46 = vmul.f32 %v10379_v28, %v12263_v62  ;;  %v8095_v25 = vpop.f32.mrb[147].mxu1  ;;  %v8193_v7 = vpop.f32.mrb[143].mxu0  ;;  %v8217_v29 = vmul.f32 %v10387_v33, %v12289_v15 }
 0xa2d   : > { %v8026_v51 = vadd.f32 %v8022_v9, %v7928_v36  ;;  %v8118_v10 = vmul.f32 %v8095_v25, %v12268_v31  ;;  %v8216_v8 = vmul.f32 %v8193_v7, %v12294_v42 }
 0xa2e   : > { %v8123_v38 = vadd.f32 %v8119_v46, %v8025_v4 }
 0xa2f   : > { %v8122_v59 = vadd.f32 %v8118_v10, %v8024_v14  ;;  %v10382_v20 = vpop.f32.mrb[148].mxu1  ;;  %v10390_v34 = vpop.f32.mrb[144].mxu0 }
 0xa30   : > { %v8221_v12 = vadd.f32 %v8217_v29, %v8123_v38  ;;  %v8121_v26 = vmul.f32 %v10382_v20, %v12283_v35  ;;  %v8105_v57 = vpop.f32.mrb[149].mxu1  ;;  %v8203_v39 = vpop.f32.mrb[145].mxu0  ;;  %v8219_v1 = vmul.f32 %v10390_v34, %v12301_v61  ;;  %v13685_v35 = vld [vmem:[#allocation19_spill] sm:$0xff] }
 0xa31   : > { %v8220_v32 = vadd.f32 %v8216_v8, %v8122_v59  ;;  %v8120_v62 = vmul.f32 %v8105_v57, %v12286_v17  ;;  %v8218_v18 = vmul.f32 %v8203_v39, %v13684_v40  ;;  %v13687_v17 = vld [vmem:[#allocation35_spill] sm:$0xff] }
 0xa32   : > { %v8125_v23 = vadd.f32 %v8121_v26, %v8027_v44  ;;  %v13688_v61 = vld [vmem:[#allocation23_spill] sm:$0xff] }
 0xa33   : > { %v8124_v31 = vadd.f32 %v8120_v62, %v8026_v51  ;;  %v10819_v15 = vpack.c.bf16 %v8221_v12, %v8220_v32 }
 0xa34   : > { %v8223_v16 = vadd.f32 %v8219_v1, %v8125_v23 }
 0xa35   : > { %v8222_v54 = vadd.f32 %v8218_v18, %v8124_v31  ;;  %10820 = vmatprep.subr.bf16.mxu1 %v10819_v15 }
 0xa36   : > { %10822 = vmatpush3.bf16.msra.mxu1 %v10819_v15 }
 0xa37   : > { %v10823_v42 = vpack.c.bf16 %v8223_v16, %v8222_v54 }
 0xa39   : > { %10824 = vmatprep.subr.bf16.mxu1 %v10823_v42 }
 0xa3a   : > { %10826 = vmatpush3.bf16.msra.mxu1 %v10823_v42 }
 0xa3d   : > { %10400 = vmatmul.mubr.msk.f32.vlgmr.msra.gmra.mrb[150].mxu1 %vm1720_vm2, %v13685_v35 }
 0xa3e   : > { %10402 = vmatprep.mubr.msk.f32.mxu1 %vm1720_vm2, %v13686_v19 }
 0xa41   : > { %10403 = vmatmul.mubr.msk.f32.gmra.mrb[152].mxu1 %vm1720_vm2, %v13687_v17 }
 0xa42   : > { %10405 = vmatprep.mubr.msk.f32.mxu1 %vm1720_vm2, %v13688_v61 }
 0xa45   : > { %10406 = vmatmul.mubr.msk.f32.gmra.mrb[154].mxu1 %vm1720_vm2, %v12994_v24 }
 0xa46   : > { %10408 = vmatprep.mubr.msk.f32.mxu1 %vm1720_vm2, %v13007_v11 }
 0xa49   : > { %10409 = vmatmul.mubr.msk.f32.gmra.mrb[156].mxu1 %vm1720_vm2, %v13022_v13 }
 0xb10   : > { %v10401_v48 = vpop.f32.mrb[150].mxu1 }
 0xb11   : > { %v8296_v0 = vadd.f32 %v10401_v48, %v13668_v47  ;;  %v8290_v37 = vpop.f32.mrb[151].mxu1 }
 0xb12   : > { %v8291_v5 = vadd.f32 %v8290_v37, %v13669_v50 }
 0xb13   : > { %v8330_v27 = vmax.f32 %v8296_v0, 0.0 }
 0xb14   : > { %v8329_v55 = vmax.f32 %v8291_v5, 0.0  ;;  %v10404_v45 = vpop.f32.mrb[152].mxu1 }
 0xb15   : > { %8853 = vst [vmem:[%s12465_s23 + $0xc8] sm:$0xff] %v8330_v27  ;;  %v8306_v24 = vadd.f32 %v10404_v45, %v13670_v52  ;;  %v8300_v11 = vpop.f32.mrb[153].mxu1 }
 0xb16   : > { %8852 = vst [vmem:[%s12465_s23 + $0xc0] sm:$0xff] %v8329_v55  ;;  %v8301_v13 = vadd.f32 %v8300_v11, %v13671_v6 }
 0xb17   : > { %v8332_v56 = vmax.f32 %v8306_v24, 0.0 }
 0xb18   : > { %v8331_v47 = vmax.f32 %v8301_v13, 0.0  ;;  %v10407_v2 = vpop.f32.mrb[154].mxu1 }
 0xb19   : > { %8855 = vst [vmem:[%s12465_s23 + $0xd8] sm:$0xff] %v8332_v56  ;;  %v8316_v50 = vadd.f32 %v10407_v2, %v13672_v58  ;;  %v8310_v63 = vpop.f32.mrb[155].mxu1 }
 0xb1a   : > { %8854 = vst [vmem:[%s12465_s23 + $0xd0] sm:$0xff] %v8331_v47  ;;  %v8311_v4 = vadd.f32 %v8310_v63, %v13673_v3 }
 0xb1b   : > { %v8334_v52 = vmax.f32 %v8316_v50, 0.0 }
 0xb1c   : > { %v8333_v21 = vmax.f32 %v8311_v4, 0.0  ;;  %v10410_v30 = vpop.f32.mrb[156].mxu1 }
 0xb1d   : > { %8857 = vst [vmem:[%s12465_s23 + $0xe8] sm:$0xff] %v8334_v52  ;;  %v8326_v6 = vadd.f32 %v10410_v30, %v13674_v43  ;;  %v8320_v22 = vpop.f32.mrb[157].mxu1 }
 0xb1e   : > { %8856 = vst [vmem:[%s12465_s23 + $0xe0] sm:$0xff] %v8333_v21  ;;  %v8321_v58 = vadd.f32 %v8320_v22, %v13675_v60 }
 0xb1f   : > { %v8336_v14 = vmax.f32 %v8326_v6, 0.0 }
 0xb20   : > { %v8335_v3 = vmax.f32 %v8321_v58, 0.0 }
 0xb21   : > { %8859 = vst [vmem:[%s12465_s23 + $0xf8] sm:$0xff] %v8336_v14 }
 0xb22   : > { %8858 = vst [vmem:[%s12465_s23 + $0xf0] sm:$0xff] %v8335_v3 }
 0xb23   : > { %11076 = shalt.err (!%p11073_p5)
}
 0xb24   : > { %s11077_s23 = scalar_lea.hbm %s13218_s24, 4096  ;;  %s11081_s12 = scalar_lea.hbm %s13689_s27, 8192 }
 0xb25   : > { %p11078_p9 = scmp.ne.s32.totalorder %s13218_s24, %s11077_s23  ;;  %p11082_p3 = scmp.lt.u32.totalorder %s13218_s24, %s13689_s27 }
 0xb26   : > { %p11083_p7 = scmp.lt.u32.totalorder %s11081_s12, %s11077_s23  ;;  %p11085_p4 = scmp.lt.u32.totalorder %s11077_s23, %s13218_s24 }
 0xb27   : > { %p11079_p1 = pnand %p11078_p9, %p11316_p10 }
 0xb28   : > { %p11084_p13 = por %p11083_p7, %p11082_p3 }
 0xb29   : > { %p11080_p2 = pneg %p11079_p1 }
 0xb2a   : > { %p11086_p6 = por %p11085_p4, %p11084_p13 }
 0xb2c   : > { %p11087_p8 = pnand %p11086_p6, %p11080_p2 }
 0xb2e   : > { %11090 = shalt.err (!%p11087_p8)
}
 0xb2f   : > { %s11160_s26 = smov 128   ;;  %s11161_s4 = smov 8  }
 0xb30   : > { %10835 = dma.vmem_to_hbm [thread:$0]  (%p11316_p10), %s13220_s11, 4096, %s13218_s24, %s8347_s16, %s11160_s26, %s11160_s26, %s11161_s4  }
 0xb31 PF: > { %s13690_s10 = sld [smem:[#allocation12_spill]]  ;;  %s13691_s21 = sld [smem:[#allocation13_spill]] }
 0xb32   : > { %p13693_p11 = scmp.ge.s32.totalorder %s11149_s18, 2 }
 0xb37   : > { %s8376_s25 = sand.u32 1, %s13690_s10   ;;  %p13692_p12 = scmp.ne.s32.totalorder %s13691_s21, 0 }
 0xb38   : > { %s8377_s23 = scalar_lea.sflag [#allocation5], %s8376_s25 }
 0xb39   : > { %p10846_p0 = pnand %p13693_p11, %p13692_p12 }
 0xb3b   : > { %11124 = dma.done.wait (!%p10846_p0), %s8377_s23, 4096  }
 0xb3c   : > { %11126 = vsyncadd (!%p10846_p0), %s8377_s23, 4294963200  ;;  %s27_s18 = sadd.s32 1, %s11149_s18   ;;  %s13694_s20 = smov %s11325_s13 }
 0xb3d   : > { %p24_p5 = scmp.ge.s32.totalorder %s27_s18, 4   ;;  %s13695_s13 = smov %s11133_s14 }
 0xb3e   : > { %s13696_s14 = smov %s11137_s15  ;;  %s13697_s15 = smov %s13694_s20 }
 0xb3f   : > { %s13698_s16 = smov %s11145_s17  ;;  %s13699_s17 = smov %s13701_s29 }
 0xb40   :  { %26 = sbr.rel (!%p24_p5) target bundleno = 10 (0xa), region = 132 }
 0xb47   :  { %8382 = vsyncpa [#allocation4], 1 }
 0xb48   :  { %8384 = vsyncpa [#allocation4 + $0x1], 1 }
 0xb49   :  { %8385 = vsyncpa [#allocation7], 1 }
 0xb4a   :  { %8386 = vsyncpa [#allocation5], 1 }
 0xb4b   :  { %8388 = vsyncpa [#allocation5 + $0x1], 1 }

</bundles_post_ra>
